<compile_context>
chip_gen: v5e
topology: v5e:2x2
jax: 0.10.0
libtpu: 0.0.40
codegen_flags: <defaults>
</compile_context>

<pallas_src>
import numpy as np
import jax
import jax.numpy as jnp
from jax.experimental import pallas as pl
from jax.experimental.pallas import tpu as pltpu

# ---------------------------------------------------------------------------
# Fixed module configuration
# ---------------------------------------------------------------------------
N_INPUT = 4
N_OUTPUT = 1
CHANNEL_BASE_POWER = 3          # lc(0)=8, lc(1)=16, lc(2)=32
KERNEL_SIZE = 3

WEIGHT_ORDER = ("bs1", "bs2", "bd1", "bd2", "bb1", "bb2",
                "bu0", "bup1", "bup2", "bu1", "bhd")


# ---------------------------------------------------------------------------
# Fused UNet kernel factory
# ---------------------------------------------------------------------------
def make_unet_kernel(h0, w0, n_input, channel_base_power, bt):
    del n_input  # widths are carried by the weight shapes
    c0 = 2 ** channel_base_power
    c1, c2 = 2 * c0, 4 * c0
    h1, w1 = h0 // 2, w0 // 2
    h2, w2 = h1 // 2, w1 // 2
    f32, bf16 = jnp.float32, jnp.bfloat16

    # -------- helpers (operate on lane-interleaved (rows, pix*C) f32 tiles) ----
    def pad_rows(a, h):
        """ReflectionPad2d(1), rows only (column pad is folded into weights)."""
        return jnp.concatenate([a[1:2, :], a, a[h - 2:h - 1, :]], axis=0)

    def pad_rows_up2(a, h):
        """Nearest 2x row upsample + reflection row-pad of the upsampled rows.
        Column duplication is folded into the consuming conv weight."""
        rows = [a[0:1, :]]
        for i in range(h):
            rows.append(a[i:i + 1, :])
            rows.append(a[i:i + 1, :])
        rows.append(a[h - 1:h, :])
        return jnp.concatenate(rows, axis=0)                  # (2h+2, L)

    def conv3m(padded_groups, w_ref, h):
        """3x3 conv as one MXU matmul over all packed images.

        padded_groups: list (len bt) of tuples of f32 row-padded tiles (h+2, L_g)
        w_ref:         (sum_g 3*L_g, N) bf16 block weight (dx taps, reflection
                       columns, pool-decimation / upsample-column-dup folded in)
        returns (bt*h, N) f32.
        """
        pieces = []
        for group in padded_groups:
            taps = []
            for p in group:
                taps += [p[dy:dy + h, :].astype(bf16) for dy in range(3)]
            pieces.append(jnp.concatenate(taps, axis=1))      # (h, K) bf16
        pm = pieces[0] if len(pieces) == 1 else jnp.concatenate(pieces, axis=0)
        return jnp.dot(pm, w_ref[...], preferred_element_type=f32)

    def split(y, h):
        return [y[i * h:(i + 1) * h, :] for i in range(bt)]

    def inorm_relu(y, h, w, c, relu=True):
        """InstanceNorm2d(affine=False, eps=1e-5) + ReLU; single-pass f32 stats."""
        n = float(h * w)
        s1 = jnp.sum(y, axis=0, keepdims=True)                # (1, w*c)
        s2 = jnp.sum(y * y, axis=0, keepdims=True)
        ww = w
        while ww > 1:                                         # fold pixels -> (1, c)
            half = (ww // 2) * c
            s1 = s1[:, :half] + s1[:, half:]
            s2 = s2[:, :half] + s2[:, half:]
            ww //= 2
        mean = s1 / n
        var = s2 / n - mean * mean                            # biased var (PyTorch IN)
        inv = jax.lax.rsqrt(jnp.maximum(var, 0.0) + 1e-5)
        mb, ib = mean, inv
        while mb.shape[1] < w * c:                            # log2(w) doublings
            mb = jnp.concatenate([mb, mb], axis=1)
            ib = jnp.concatenate([ib, ib], axis=1)
        y = (y - mb) * ib
        return jnp.maximum(y, 0.0) if relu else y

    def pool(a, h, w, c):
        """F.max_pool2d((2,2)): row-pair max + adjacent-column max; the even
        column decimation is folded into the next conv's weight."""
        rows = [jnp.maximum(a[2 * i:2 * i + 1, :], a[2 * i + 1:2 * i + 2, :])
                for i in range(h // 2)]
        ah = jnp.concatenate(rows, axis=0)                    # (h/2, w*c)
        return jnp.maximum(ah[:, :(w - 1) * c], ah[:, c:])     # (h/2, (w-1)*c)

    # ---------------------------- kernel body ----------------------------------
    def kernel(x_ref,
               bs1, bs2, bd1, bd2, bb1, bb2,
               bu0, bup1, bup2, bu1, bhd,
               o_ref):
        a0 = [x_ref[i].astype(f32) for i in range(bt)]        # each (h0, w0*n_in)

        # ---- encoder level 0: self.start (conv+IN+ReLU x2) + pool ----
        y = conv3m([(pad_rows(a, h0),) for a in a0], bs1, h0)
        d1 = [inorm_relu(t, h0, w0, c0) for t in split(y, h0)]
        y = conv3m([(pad_rows(a, h0),) for a in d1], bs2, h0)
        d1 = [inorm_relu(t, h0, w0, c0) for t in split(y, h0)]
        p1 = [pool(a, h0, w0, c0) for a in d1]                 # (h1, (w0-1)*c0)

        # ---- encoder level 1: down_layers[0] + pool ----
        y = conv3m([(pad_rows(a, h1),) for a in p1], bd1, h1)
        d2 = [inorm_relu(t, h1, w1, c1) for t in split(y, h1)]
        y = conv3m([(pad_rows(a, h1),) for a in d2], bd2, h1)
        d2 = [inorm_relu(t, h1, w1, c1) for t in split(y, h1)]
        p2 = [pool(a, h1, w1, c1) for a in d2]                 # (h2, (w1-1)*c1)

        # ---- bridge ----
        y = conv3m([(pad_rows(a, h2),) for a in p2], bb1, h2)
        b = [inorm_relu(t, h2, w2, c2) for t in split(y, h2)]
        y = conv3m([(pad_rows(a, h2),) for a in b], bb2, h2)
        b = [inorm_relu(t, h2, w2, c2) for t in split(y, h2)]

        # ---- decoder level 1: nearest-up 2x + upsampconvs[0] (linear conv) ----
        y = conv3m([(pad_rows_up2(a, h2),) for a in b], bu0, h1)
        u = split(y, h1)
        # up_layers[0] conv1 consumes cat((u, d2), dim=1): one K-concat matmul
        y = conv3m([(pad_rows(uu, h1), pad_rows(dd, h1)) for uu, dd in zip(u, d2)],
                   bup1, h1)
        v = [inorm_relu(t, h1, w1, c1) for t in split(y, h1)]
        y = conv3m([(pad_rows(a, h1),) for a in v], bup2, h1)
        v = [inorm_relu(t, h1, w1, c1) for t in split(y, h1)]

        # ---- decoder level 0: nearest-up 2x + upsampconvs[1] (linear conv) ----
        y = conv3m([(pad_rows_up2(a, h1),) for a in v], bu1, h0)
        q = split(y, h0)

        # ---- finish: 1x1 conv on cat((q, input), dim=1): one K-concat matmul ----
        pieces = [jnp.concatenate([qq.astype(bf16), aa.astype(bf16)], axis=1)
                  for qq, aa in zip(q, a0)]
        pm = pieces[0] if bt == 1 else jnp.concatenate(pieces, axis=0)
        y = jnp.dot(pm, bhd[...], preferred_element_type=f32)  # (bt*h0, w0*n_out)
        for i in range(bt):
            o_ref[i] = y[i * h0:(i + 1) * h0, :].astype(o_ref.dtype)

    return kernel


# ---------------------------------------------------------------------------
# Host-side weight preparation (folded block weights for the interleaved layout)
# ---------------------------------------------------------------------------
def _init_conv(key, k, cin, cout):
    # NOTE: layout here is (kh, kw, cin, cout); a real PyTorch Conv2d weight
    # (cout, cin, kh, kw) maps via w.transpose(2, 3, 1, 0).
    fan_in = k * k * cin
    return jax.random.normal(key, (k, k, cin, cout), jnp.float32) / np.sqrt(float(fan_in))


def _reflect_idx(j, w):
    if j < 0:
        return -j
    if j >= w:
        return 2 * w - 2 - j
    return j


def _conv3_matrix(w4, w_img, col_of, src_w, dtype=jnp.bfloat16):
    """(3,3,cin,cout) -> (3*src_w*cin, w_img*cout).

    Acts on the lane-concat of the 3 dy row-slices of a row-reflect-padded
    source tile whose conceptual pixel jj lives at physical column col_of(jj).
    dx taps, reflection column-pad, pool decimation and nearest-upsample column
    duplication are all folded in via col_of / accumulation."""
    w4 = np.asarray(w4, np.float32)
    _, _, cin, cout = w4.shape
    m = np.zeros((3 * src_w * cin, w_img * cout), np.float32)
    for j in range(w_img):
        for dy in range(3):
            for dx in range(3):
                jj = _reflect_idx(j + dx - 1, w_img)
                col = col_of(jj)
                r0 = dy * src_w * cin + col * cin
                m[r0:r0 + cin, j * cout:(j + 1) * cout] += w4[dy, dx]
    return jnp.asarray(m, dtype)


def _conv1_matrix(w4, w_img, dtype=jnp.bfloat16):
    """(1,1,cin,cout) -> (w_img*cin, w_img*cout) block-diagonal (1x1 conv)."""
    w4 = np.asarray(w4, np.float32)
    _, _, cin, cout = w4.shape
    m = np.zeros((w_img * cin, w_img * cout), np.float32)
    for j in range(w_img):
        m[j * cin:(j + 1) * cin, j * cout:(j + 1) * cout] = w4[0, 0]
    return jnp.asarray(m, dtype)


def init_unet_weights(key, *, h=16, w=16, n_input=N_INPUT, n_output=N_OUTPUT,
                      channel_base_power=CHANNEL_BASE_POWER):
    assert h == w and (w & (w - 1)) == 0 and w % 4 == 0
    c0 = 2 ** channel_base_power
    c1, c2 = 2 * c0, 4 * c0
    keys = jax.random.split(key, 11)
    w_s1 = _init_conv(keys[0], 3, n_input, c0)          # start
    w_s2 = _init_conv(keys[1], 3, c0, c0)
    w_d1 = _init_conv(keys[2], 3, c0, c1)               # down_layers[0]
    w_d2 = _init_conv(keys[3], 3, c1, c1)
    w_b1 = _init_conv(keys[4], 3, c1, c2)               # bridge
    w_b2 = _init_conv(keys[5], 3, c2, c2)
    w_u0 = _init_conv(keys[6], 3, c2, c1)               # upsampconvs[0]
    w_up1 = _init_conv(keys[7], 3, 2 * c1, c1)          # up_layers[0] conv1 (cat in)
    w_up2 = _init_conv(keys[8], 3, c1, c1)
    w_u1 = _init_conv(keys[9], 3, c1, c0)               # upsampconvs[1]
    w_f = _init_conv(keys[10], 1, c0 + n_input, n_output)   # finish 1x1

    w0_, w1_, w2_ = w, w // 2, w // 4
    ident = lambda jj: jj               # plain conv
    pool_col = lambda jj: 2 * jj        # conv after 2x2 max-pool (decimation fold)
    up_col = lambda jj: jj // 2         # conv after nearest 2x upsample (col-dup fold)

    return {
        "bs1": _conv3_matrix(w_s1, w0_, ident, w0_),
        "bs2": _conv3_matrix(w_s2, w0_, ident, w0_),
        "bd1": _conv3_matrix(w_d1, w1_, pool_col, 2 * w1_ - 1),
        "bd2": _conv3_matrix(w_d2, w1_, ident, w1_),
        "bb1": _conv3_matrix(w_b1, w2_, pool_col, 2 * w2_ - 1),
        "bb2": _conv3_matrix(w_b2, w2_, ident, w2_),
        "bu0": _conv3_matrix(w_u0, w1_, up_col, w1_ // 2),
        # cat order in the module is cat((x, skip)) -> x block first
        "bup1": jnp.concatenate(
            [_conv3_matrix(w_up1[:, :, :c1, :], w1_, ident, w1_),
             _conv3_matrix(w_up1[:, :, c1:, :], w1_, ident, w1_)], axis=0),
        "bup2": _conv3_matrix(w_up2, w1_, ident, w1_),
        "bu1": _conv3_matrix(w_u1, w0_, up_col, w0_ // 2),
        # finish: cat((x, input)) -> x block first
        "bhd": jnp.concatenate(
            [_conv1_matrix(w_f[:, :, :c0, :], w0_),
             _conv1_matrix(w_f[:, :, c0:, :], w0_)], axis=0),
    }


# ---------------------------------------------------------------------------
# Batch tile policy: pack images along matmul M, keep >=2 grid steps (v7x 2-TC)
# ---------------------------------------------------------------------------
def _pick_batch_tile(B, H, target_rows=128):
    bt = max(1, min(B, target_rows // max(H, 1)))
    while B % bt:
        bt -= 1
    if B // bt < 2:                       # keep two "parallel" steps when possible
        for cand in range(bt, 0, -1):
            if B % cand == 0 and B // cand >= 2:
                bt = cand
                break
    return bt


# ---------------------------------------------------------------------------
# Forward pass wrapper (single pallas_call)
# ---------------------------------------------------------------------------
def unet_forward(x_nchw, weights, batch_tile=None):
    B, cin, H, W = x_nchw.shape
    assert cin == N_INPUT and H == W and H % 4 == 0 and (W & (W - 1)) == 0
    bt = batch_tile if batch_tile is not None else _pick_batch_tile(B, H)
    assert B % bt == 0

    # lane-interleaved layout A[b, h, w*C + c]
    x2 = jnp.transpose(x_nchw, (0, 2, 3, 1)).reshape(B, H, W * cin)
    wlist = [weights[k] for k in WEIGHT_ORDER]
    kernel = make_unet_kernel(H, W, cin, CHANNEL_BASE_POWER, bt)

    # advisory cost estimate (MXU matmul work + HBM bytes)
    rows = (H, H, H // 2, H // 2, H // 4, H // 4,
            H // 2, H // 2, H // 2, H, H)
    flops = 2 * B * sum(r * wt.shape[0] * wt.shape[1] for r, wt in zip(rows, wlist))
    bytes_accessed = (x2.size * x2.dtype.itemsize
                      + sum(wt.size * wt.dtype.itemsize for wt in wlist)
                      + B * H * W * N_OUTPUT * 4)

    out = pl.pallas_call(
        kernel,
        out_shape=jax.ShapeDtypeStruct((B, H, W * N_OUTPUT), jnp.float32),
        grid=(B // bt,),
        in_specs=[pl.BlockSpec((bt, H, W * cin), lambda b: (b, 0, 0))]
                 # NOTE: constant-index weight blocks; ~1 MiB bf16 total after the
                 # host-side folds, so default double-buffering is well within the
                 # 32 MiB scoped VMEM budget (pl.Buffered(1) intentionally not used).
                 + [pl.BlockSpec(wt.shape, lambda b: (0, 0)) for wt in wlist],
        out_specs=pl.BlockSpec((bt, H, W * N_OUTPUT), lambda b: (b, 0, 0)),
        compiler_params=pltpu.CompilerParams(
            dimension_semantics=("parallel",),        # megacore / 2-TC split
            vmem_limit_bytes=32 * 1024 * 1024,
        ),
        cost_estimate=pl.CostEstimate(flops=flops,
                                      transcendentals=B * 144,
                                      bytes_accessed=bytes_accessed),
    )(x2, *wlist)

    out = out.reshape(B, H, W, N_OUTPUT)
    return jnp.transpose(out, (0, 3, 1, 2))           # back to NCHW


# ---------------------------------------------------------------------------
if __name__ == "__main__":
    key = jax.random.PRNGKey(0)
    k_in, k_par = jax.random.split(key)

    # PyTorch-convention input: NCHW
    x = jax.random.normal(k_in, (2, 4, 16, 16), jnp.float32)
    weights = init_unet_weights(k_par, h=16, w=16)

    fwd = jax.jit(unet_forward, static_argnames=("batch_tile",))

    y = fwd(x, weights)                                # bt=1, grid=(2,)
    jax.block_until_ready(y)
    assert y.shape == (2, 1, 16, 16), y.shape
    assert bool(jnp.all(jnp.isfinite(y)))

    # exercise the batch-packed path (bt=2, grid=(2,)) and check it matches
    x4 = jnp.concatenate([x, x], axis=0)
    y4 = fwd(x4, weights)
    jax.block_until_ready(y4)
    assert y4.shape == (4, 1, 16, 16), y4.shape
    assert bool(jnp.all(jnp.isfinite(y4)))
    assert bool(jnp.allclose(y4[:2], y, atol=1e-4, rtol=1e-4))
    assert bool(jnp.allclose(y4[2:], y, atol=1e-4, rtol=1e-4))

    print("KERNEL_OK")
</pallas_src>

<mosaic_0001>
module attributes {stable_mosaic.version = 11 : i64} {
  func.func @kernel(%arg0: i32, %arg1: memref<1x16x64xf32, #tpu.memory_space<vmem>>, %arg2: memref<192x128xbf16, #tpu.memory_space<vmem>>, %arg3: memref<384x128xbf16, #tpu.memory_space<vmem>>, %arg4: memref<360x128xbf16, #tpu.memory_space<vmem>>, %arg5: memref<384x128xbf16, #tpu.memory_space<vmem>>, %arg6: memref<336x128xbf16, #tpu.memory_space<vmem>>, %arg7: memref<384x128xbf16, #tpu.memory_space<vmem>>, %arg8: memref<384x128xbf16, #tpu.memory_space<vmem>>, %arg9: memref<768x128xbf16, #tpu.memory_space<vmem>>, %arg10: memref<384x128xbf16, #tpu.memory_space<vmem>>, %arg11: memref<384x128xbf16, #tpu.memory_space<vmem>>, %arg12: memref<192x16xbf16, #tpu.memory_space<vmem>>, %arg13: memref<1x16x16xf32, #tpu.memory_space<vmem>>) attributes {dimension_semantics = [#tpu.dimension_semantics<parallel>], iteration_bounds = array<i64: 2>, scalar_prefetch = 0 : i64, scratch_operands = 0 : i64, tpu.core_type = #tpu.core_type<tc>, window_params = [{transform_indices = @transform_0, window_bounds = array<i64: 1, 16, 64>}, {pipeline_mode = #tpu.pipeline_mode<synchronous>, transform_indices = @transform_1, window_bounds = array<i64: 192, 128>}, {pipeline_mode = #tpu.pipeline_mode<synchronous>, transform_indices = @transform_2, window_bounds = array<i64: 384, 128>}, {pipeline_mode = #tpu.pipeline_mode<synchronous>, transform_indices = @transform_3, window_bounds = array<i64: 360, 128>}, {pipeline_mode = #tpu.pipeline_mode<synchronous>, transform_indices = @transform_4, window_bounds = array<i64: 384, 128>}, {pipeline_mode = #tpu.pipeline_mode<synchronous>, transform_indices = @transform_5, window_bounds = array<i64: 336, 128>}, {pipeline_mode = #tpu.pipeline_mode<synchronous>, transform_indices = @transform_6, window_bounds = array<i64: 384, 128>}, {pipeline_mode = #tpu.pipeline_mode<synchronous>, transform_indices = @transform_7, window_bounds = array<i64: 384, 128>}, {pipeline_mode = #tpu.pipeline_mode<synchronous>, transform_indices = @transform_8, window_bounds = array<i64: 768, 128>}, {pipeline_mode = #tpu.pipeline_mode<synchronous>, transform_indices = @transform_9, window_bounds = array<i64: 384, 128>}, {pipeline_mode = #tpu.pipeline_mode<synchronous>, transform_indices = @transform_10, window_bounds = array<i64: 384, 128>}, {pipeline_mode = #tpu.pipeline_mode<synchronous>, transform_indices = @transform_11, window_bounds = array<i64: 192, 16>}, {transform_indices = @transform_12, window_bounds = array<i64: 1, 16, 16>}]} {
    %c0 = arith.constant 0 : index
    %c0_0 = arith.constant 0 : index
    %c0_1 = arith.constant 0 : index
    %0 = vector.load %arg1[%c0, %c0_0, %c0_1] : memref<1x16x64xf32, #tpu.memory_space<vmem>>, vector<1x16x64xf32>
    %1 = vector.shape_cast %0 : vector<1x16x64xf32> to vector<16x64xf32>
    %2 = vector.extract_strided_slice %1 {offsets = [1, 0], sizes = [1, 64], strides = [1, 1]} : vector<16x64xf32> to vector<1x64xf32>
    %3 = vector.extract_strided_slice %1 {offsets = [14, 0], sizes = [1, 64], strides = [1, 1]} : vector<16x64xf32> to vector<1x64xf32>
    %4 = tpu.concatenate %2, %1, %3 in 0 : vector<1x64xf32>, vector<16x64xf32>, vector<1x64xf32> -> vector<18x64xf32>
    %5 = vector.extract_strided_slice %4 {offsets = [0, 0], sizes = [16, 64], strides = [1, 1]} : vector<18x64xf32> to vector<16x64xf32>
    %6 = arith.truncf %5 : vector<16x64xf32> to vector<16x64xbf16>
    %7 = vector.extract_strided_slice %4 {offsets = [1, 0], sizes = [16, 64], strides = [1, 1]} : vector<18x64xf32> to vector<16x64xf32>
    %8 = arith.truncf %7 : vector<16x64xf32> to vector<16x64xbf16>
    %9 = vector.extract_strided_slice %4 {offsets = [2, 0], sizes = [16, 64], strides = [1, 1]} : vector<18x64xf32> to vector<16x64xf32>
    %10 = arith.truncf %9 : vector<16x64xf32> to vector<16x64xbf16>
    %11 = tpu.concatenate %6, %8, %10 in 1 : vector<16x64xbf16>, vector<16x64xbf16>, vector<16x64xbf16> -> vector<16x192xbf16>
    %c0_2 = arith.constant 0 : index
    %c0_3 = arith.constant 0 : index
    %12 = vector.load %arg2[%c0_2, %c0_3] : memref<192x128xbf16, #tpu.memory_space<vmem>>, vector<192x128xbf16>
    %cst = arith.constant dense<0.000000e+00> : vector<16x128xf32>
    %13 = tpu.matmul %11, %12, %cst {dimension_numbers = #tpu.dot_dimension_numbers<[1], [0], [0], [1], [0, 0, 1, 1], [], []>} : vector<16x192xbf16>, vector<192x128xbf16>, vector<16x128xf32> -> vector<16x128xf32>
    %cst_4 = arith.constant dense<0.000000e+00> : vector<128xf32>
    %14 = vector.multi_reduction <add>, %13, %cst_4 [0] : vector<16x128xf32> to vector<128xf32>
    %15 = vector.shape_cast %14 : vector<128xf32> to vector<1x128xf32>
    %16 = arith.mulf %13, %13 : vector<16x128xf32>
    %cst_5 = arith.constant dense<0.000000e+00> : vector<128xf32>
    %17 = vector.multi_reduction <add>, %16, %cst_5 [0] : vector<16x128xf32> to vector<128xf32>
    %18 = vector.shape_cast %17 : vector<128xf32> to vector<1x128xf32>
    %19 = vector.extract_strided_slice %15 {offsets = [0, 0], sizes = [1, 64], strides = [1, 1]} : vector<1x128xf32> to vector<1x64xf32>
    %20 = vector.extract_strided_slice %15 {offsets = [0, 64], sizes = [1, 64], strides = [1, 1]} : vector<1x128xf32> to vector<1x64xf32>
    %21 = arith.addf %19, %20 : vector<1x64xf32>
    %22 = vector.extract_strided_slice %18 {offsets = [0, 0], sizes = [1, 64], strides = [1, 1]} : vector<1x128xf32> to vector<1x64xf32>
    %23 = vector.extract_strided_slice %18 {offsets = [0, 64], sizes = [1, 64], strides = [1, 1]} : vector<1x128xf32> to vector<1x64xf32>
    %24 = arith.addf %22, %23 : vector<1x64xf32>
    %25 = vector.extract_strided_slice %21 {offsets = [0, 0], sizes = [1, 32], strides = [1, 1]} : vector<1x64xf32> to vector<1x32xf32>
    %26 = vector.extract_strided_slice %21 {offsets = [0, 32], sizes = [1, 32], strides = [1, 1]} : vector<1x64xf32> to vector<1x32xf32>
    %27 = arith.addf %25, %26 : vector<1x32xf32>
    %28 = vector.extract_strided_slice %24 {offsets = [0, 0], sizes = [1, 32], strides = [1, 1]} : vector<1x64xf32> to vector<1x32xf32>
    %29 = vector.extract_strided_slice %24 {offsets = [0, 32], sizes = [1, 32], strides = [1, 1]} : vector<1x64xf32> to vector<1x32xf32>
    %30 = arith.addf %28, %29 : vector<1x32xf32>
    %31 = vector.extract_strided_slice %27 {offsets = [0, 0], sizes = [1, 16], strides = [1, 1]} : vector<1x32xf32> to vector<1x16xf32>
    %32 = vector.extract_strided_slice %27 {offsets = [0, 16], sizes = [1, 16], strides = [1, 1]} : vector<1x32xf32> to vector<1x16xf32>
    %33 = arith.addf %31, %32 : vector<1x16xf32>
    %34 = vector.extract_strided_slice %30 {offsets = [0, 0], sizes = [1, 16], strides = [1, 1]} : vector<1x32xf32> to vector<1x16xf32>
    %35 = vector.extract_strided_slice %30 {offsets = [0, 16], sizes = [1, 16], strides = [1, 1]} : vector<1x32xf32> to vector<1x16xf32>
    %36 = arith.addf %34, %35 : vector<1x16xf32>
    %37 = vector.extract_strided_slice %33 {offsets = [0, 0], sizes = [1, 8], strides = [1, 1]} : vector<1x16xf32> to vector<1x8xf32>
    %38 = vector.extract_strided_slice %33 {offsets = [0, 8], sizes = [1, 8], strides = [1, 1]} : vector<1x16xf32> to vector<1x8xf32>
    %39 = arith.addf %37, %38 : vector<1x8xf32>
    %40 = vector.extract_strided_slice %36 {offsets = [0, 0], sizes = [1, 8], strides = [1, 1]} : vector<1x16xf32> to vector<1x8xf32>
    %41 = vector.extract_strided_slice %36 {offsets = [0, 8], sizes = [1, 8], strides = [1, 1]} : vector<1x16xf32> to vector<1x8xf32>
    %42 = arith.addf %40, %41 : vector<1x8xf32>
    %cst_6 = arith.constant 2.560000e+02 : f32
    %43 = vector.broadcast %cst_6 : f32 to vector<1x8xf32>
    %44 = arith.divf %39, %43 : vector<1x8xf32>
    %cst_7 = arith.constant 2.560000e+02 : f32
    %45 = vector.broadcast %cst_7 : f32 to vector<1x8xf32>
    %46 = arith.divf %42, %45 : vector<1x8xf32>
    %47 = arith.mulf %44, %44 : vector<1x8xf32>
    %48 = arith.subf %46, %47 : vector<1x8xf32>
    %cst_8 = arith.constant 0.000000e+00 : f32
    %49 = vector.broadcast %cst_8 : f32 to vector<1x8xf32>
    %50 = arith.maximumf %48, %49 : vector<1x8xf32>
    %cst_9 = arith.constant 9.99999974E-6 : f32
    %51 = vector.broadcast %cst_9 : f32 to vector<1x8xf32>
    %52 = arith.addf %50, %51 : vector<1x8xf32>
    %53 = math.rsqrt %52 : vector<1x8xf32>
    %54 = tpu.concatenate %44, %44 in 1 : vector<1x8xf32>, vector<1x8xf32> -> vector<1x16xf32>
    %55 = tpu.concatenate %53, %53 in 1 : vector<1x8xf32>, vector<1x8xf32> -> vector<1x16xf32>
    %56 = tpu.concatenate %54, %54 in 1 : vector<1x16xf32>, vector<1x16xf32> -> vector<1x32xf32>
    %57 = tpu.concatenate %55, %55 in 1 : vector<1x16xf32>, vector<1x16xf32> -> vector<1x32xf32>
    %58 = tpu.concatenate %56, %56 in 1 : vector<1x32xf32>, vector<1x32xf32> -> vector<1x64xf32>
    %59 = tpu.concatenate %57, %57 in 1 : vector<1x32xf32>, vector<1x32xf32> -> vector<1x64xf32>
    %60 = tpu.concatenate %58, %58 in 1 : vector<1x64xf32>, vector<1x64xf32> -> vector<1x128xf32>
    %61 = tpu.concatenate %59, %59 in 1 : vector<1x64xf32>, vector<1x64xf32> -> vector<1x128xf32>
    %62 = vector.broadcast %60 : vector<1x128xf32> to vector<16x128xf32>
    %63 = arith.subf %13, %62 : vector<16x128xf32>
    %64 = vector.broadcast %61 : vector<1x128xf32> to vector<16x128xf32>
    %65 = arith.mulf %63, %64 : vector<16x128xf32>
    %cst_10 = arith.constant 0.000000e+00 : f32
    %66 = vector.broadcast %cst_10 : f32 to vector<16x128xf32>
    %67 = arith.maximumf %65, %66 : vector<16x128xf32>
    %68 = vector.extract_strided_slice %67 {offsets = [1, 0], sizes = [1, 128], strides = [1, 1]} : vector<16x128xf32> to vector<1x128xf32>
    %69 = vector.extract_strided_slice %67 {offsets = [14, 0], sizes = [1, 128], strides = [1, 1]} : vector<16x128xf32> to vector<1x128xf32>
    %70 = tpu.concatenate %68, %67, %69 in 0 : vector<1x128xf32>, vector<16x128xf32>, vector<1x128xf32> -> vector<18x128xf32>
    %71 = vector.extract_strided_slice %70 {offsets = [0, 0], sizes = [16, 128], strides = [1, 1]} : vector<18x128xf32> to vector<16x128xf32>
    %72 = arith.truncf %71 : vector<16x128xf32> to vector<16x128xbf16>
    %73 = vector.extract_strided_slice %70 {offsets = [1, 0], sizes = [16, 128], strides = [1, 1]} : vector<18x128xf32> to vector<16x128xf32>
    %74 = arith.truncf %73 : vector<16x128xf32> to vector<16x128xbf16>
    %75 = vector.extract_strided_slice %70 {offsets = [2, 0], sizes = [16, 128], strides = [1, 1]} : vector<18x128xf32> to vector<16x128xf32>
    %76 = arith.truncf %75 : vector<16x128xf32> to vector<16x128xbf16>
    %77 = tpu.concatenate %72, %74, %76 in 1 : vector<16x128xbf16>, vector<16x128xbf16>, vector<16x128xbf16> -> vector<16x384xbf16>
    %c0_11 = arith.constant 0 : index
    %c0_12 = arith.constant 0 : index
    %78 = vector.load %arg3[%c0_11, %c0_12] : memref<384x128xbf16, #tpu.memory_space<vmem>>, vector<384x128xbf16>
    %cst_13 = arith.constant dense<0.000000e+00> : vector<16x128xf32>
    %79 = tpu.matmul %77, %78, %cst_13 {dimension_numbers = #tpu.dot_dimension_numbers<[1], [0], [0], [1], [0, 0, 1, 1], [], []>} : vector<16x384xbf16>, vector<384x128xbf16>, vector<16x128xf32> -> vector<16x128xf32>
    %cst_14 = arith.constant dense<0.000000e+00> : vector<128xf32>
    %80 = vector.multi_reduction <add>, %79, %cst_14 [0] : vector<16x128xf32> to vector<128xf32>
    %81 = vector.shape_cast %80 : vector<128xf32> to vector<1x128xf32>
    %82 = arith.mulf %79, %79 : vector<16x128xf32>
    %cst_15 = arith.constant dense<0.000000e+00> : vector<128xf32>
    %83 = vector.multi_reduction <add>, %82, %cst_15 [0] : vector<16x128xf32> to vector<128xf32>
    %84 = vector.shape_cast %83 : vector<128xf32> to vector<1x128xf32>
    %85 = vector.extract_strided_slice %81 {offsets = [0, 0], sizes = [1, 64], strides = [1, 1]} : vector<1x128xf32> to vector<1x64xf32>
    %86 = vector.extract_strided_slice %81 {offsets = [0, 64], sizes = [1, 64], strides = [1, 1]} : vector<1x128xf32> to vector<1x64xf32>
    %87 = arith.addf %85, %86 : vector<1x64xf32>
    %88 = vector.extract_strided_slice %84 {offsets = [0, 0], sizes = [1, 64], strides = [1, 1]} : vector<1x128xf32> to vector<1x64xf32>
    %89 = vector.extract_strided_slice %84 {offsets = [0, 64], sizes = [1, 64], strides = [1, 1]} : vector<1x128xf32> to vector<1x64xf32>
    %90 = arith.addf %88, %89 : vector<1x64xf32>
    %91 = vector.extract_strided_slice %87 {offsets = [0, 0], sizes = [1, 32], strides = [1, 1]} : vector<1x64xf32> to vector<1x32xf32>
    %92 = vector.extract_strided_slice %87 {offsets = [0, 32], sizes = [1, 32], strides = [1, 1]} : vector<1x64xf32> to vector<1x32xf32>
    %93 = arith.addf %91, %92 : vector<1x32xf32>
    %94 = vector.extract_strided_slice %90 {offsets = [0, 0], sizes = [1, 32], strides = [1, 1]} : vector<1x64xf32> to vector<1x32xf32>
    %95 = vector.extract_strided_slice %90 {offsets = [0, 32], sizes = [1, 32], strides = [1, 1]} : vector<1x64xf32> to vector<1x32xf32>
    %96 = arith.addf %94, %95 : vector<1x32xf32>
    %97 = vector.extract_strided_slice %93 {offsets = [0, 0], sizes = [1, 16], strides = [1, 1]} : vector<1x32xf32> to vector<1x16xf32>
    %98 = vector.extract_strided_slice %93 {offsets = [0, 16], sizes = [1, 16], strides = [1, 1]} : vector<1x32xf32> to vector<1x16xf32>
    %99 = arith.addf %97, %98 : vector<1x16xf32>
    %100 = vector.extract_strided_slice %96 {offsets = [0, 0], sizes = [1, 16], strides = [1, 1]} : vector<1x32xf32> to vector<1x16xf32>
    %101 = vector.extract_strided_slice %96 {offsets = [0, 16], sizes = [1, 16], strides = [1, 1]} : vector<1x32xf32> to vector<1x16xf32>
    %102 = arith.addf %100, %101 : vector<1x16xf32>
    %103 = vector.extract_strided_slice %99 {offsets = [0, 0], sizes = [1, 8], strides = [1, 1]} : vector<1x16xf32> to vector<1x8xf32>
    %104 = vector.extract_strided_slice %99 {offsets = [0, 8], sizes = [1, 8], strides = [1, 1]} : vector<1x16xf32> to vector<1x8xf32>
    %105 = arith.addf %103, %104 : vector<1x8xf32>
    %106 = vector.extract_strided_slice %102 {offsets = [0, 0], sizes = [1, 8], strides = [1, 1]} : vector<1x16xf32> to vector<1x8xf32>
    %107 = vector.extract_strided_slice %102 {offsets = [0, 8], sizes = [1, 8], strides = [1, 1]} : vector<1x16xf32> to vector<1x8xf32>
    %108 = arith.addf %106, %107 : vector<1x8xf32>
    %cst_16 = arith.constant 2.560000e+02 : f32
    %109 = vector.broadcast %cst_16 : f32 to vector<1x8xf32>
    %110 = arith.divf %105, %109 : vector<1x8xf32>
    %cst_17 = arith.constant 2.560000e+02 : f32
    %111 = vector.broadcast %cst_17 : f32 to vector<1x8xf32>
    %112 = arith.divf %108, %111 : vector<1x8xf32>
    %113 = arith.mulf %110, %110 : vector<1x8xf32>
    %114 = arith.subf %112, %113 : vector<1x8xf32>
    %cst_18 = arith.constant 0.000000e+00 : f32
    %115 = vector.broadcast %cst_18 : f32 to vector<1x8xf32>
    %116 = arith.maximumf %114, %115 : vector<1x8xf32>
    %cst_19 = arith.constant 9.99999974E-6 : f32
    %117 = vector.broadcast %cst_19 : f32 to vector<1x8xf32>
    %118 = arith.addf %116, %117 : vector<1x8xf32>
    %119 = math.rsqrt %118 : vector<1x8xf32>
    %120 = tpu.concatenate %110, %110 in 1 : vector<1x8xf32>, vector<1x8xf32> -> vector<1x16xf32>
    %121 = tpu.concatenate %119, %119 in 1 : vector<1x8xf32>, vector<1x8xf32> -> vector<1x16xf32>
    %122 = tpu.concatenate %120, %120 in 1 : vector<1x16xf32>, vector<1x16xf32> -> vector<1x32xf32>
    %123 = tpu.concatenate %121, %121 in 1 : vector<1x16xf32>, vector<1x16xf32> -> vector<1x32xf32>
    %124 = tpu.concatenate %122, %122 in 1 : vector<1x32xf32>, vector<1x32xf32> -> vector<1x64xf32>
    %125 = tpu.concatenate %123, %123 in 1 : vector<1x32xf32>, vector<1x32xf32> -> vector<1x64xf32>
    %126 = tpu.concatenate %124, %124 in 1 : vector<1x64xf32>, vector<1x64xf32> -> vector<1x128xf32>
    %127 = tpu.concatenate %125, %125 in 1 : vector<1x64xf32>, vector<1x64xf32> -> vector<1x128xf32>
    %128 = vector.broadcast %126 : vector<1x128xf32> to vector<16x128xf32>
    %129 = arith.subf %79, %128 : vector<16x128xf32>
    %130 = vector.broadcast %127 : vector<1x128xf32> to vector<16x128xf32>
    %131 = arith.mulf %129, %130 : vector<16x128xf32>
    %cst_20 = arith.constant 0.000000e+00 : f32
    %132 = vector.broadcast %cst_20 : f32 to vector<16x128xf32>
    %133 = arith.maximumf %131, %132 : vector<16x128xf32>
    %134 = vector.extract_strided_slice %133 {offsets = [0, 0], sizes = [1, 128], strides = [1, 1]} : vector<16x128xf32> to vector<1x128xf32>
    %135 = vector.extract_strided_slice %133 {offsets = [1, 0], sizes = [1, 128], strides = [1, 1]} : vector<16x128xf32> to vector<1x128xf32>
    %136 = arith.maximumf %134, %135 : vector<1x128xf32>
    %137 = vector.extract_strided_slice %133 {offsets = [2, 0], sizes = [1, 128], strides = [1, 1]} : vector<16x128xf32> to vector<1x128xf32>
    %138 = vector.extract_strided_slice %133 {offsets = [3, 0], sizes = [1, 128], strides = [1, 1]} : vector<16x128xf32> to vector<1x128xf32>
    %139 = arith.maximumf %137, %138 : vector<1x128xf32>
    %140 = vector.extract_strided_slice %133 {offsets = [4, 0], sizes = [1, 128], strides = [1, 1]} : vector<16x128xf32> to vector<1x128xf32>
    %141 = vector.extract_strided_slice %133 {offsets = [5, 0], sizes = [1, 128], strides = [1, 1]} : vector<16x128xf32> to vector<1x128xf32>
    %142 = arith.maximumf %140, %141 : vector<1x128xf32>
    %143 = vector.extract_strided_slice %133 {offsets = [6, 0], sizes = [1, 128], strides = [1, 1]} : vector<16x128xf32> to vector<1x128xf32>
    %144 = vector.extract_strided_slice %133 {offsets = [7, 0], sizes = [1, 128], strides = [1, 1]} : vector<16x128xf32> to vector<1x128xf32>
    %145 = arith.maximumf %143, %144 : vector<1x128xf32>
    %146 = vector.extract_strided_slice %133 {offsets = [8, 0], sizes = [1, 128], strides = [1, 1]} : vector<16x128xf32> to vector<1x128xf32>
    %147 = vector.extract_strided_slice %133 {offsets = [9, 0], sizes = [1, 128], strides = [1, 1]} : vector<16x128xf32> to vector<1x128xf32>
    %148 = arith.maximumf %146, %147 : vector<1x128xf32>
    %149 = vector.extract_strided_slice %133 {offsets = [10, 0], sizes = [1, 128], strides = [1, 1]} : vector<16x128xf32> to vector<1x128xf32>
    %150 = vector.extract_strided_slice %133 {offsets = [11, 0], sizes = [1, 128], strides = [1, 1]} : vector<16x128xf32> to vector<1x128xf32>
    %151 = arith.maximumf %149, %150 : vector<1x128xf32>
    %152 = vector.extract_strided_slice %133 {offsets = [12, 0], sizes = [1, 128], strides = [1, 1]} : vector<16x128xf32> to vector<1x128xf32>
    %153 = vector.extract_strided_slice %133 {offsets = [13, 0], sizes = [1, 128], strides = [1, 1]} : vector<16x128xf32> to vector<1x128xf32>
    %154 = arith.maximumf %152, %153 : vector<1x128xf32>
    %155 = vector.extract_strided_slice %133 {offsets = [14, 0], sizes = [1, 128], strides = [1, 1]} : vector<16x128xf32> to vector<1x128xf32>
    %156 = vector.extract_strided_slice %133 {offsets = [15, 0], sizes = [1, 128], strides = [1, 1]} : vector<16x128xf32> to vector<1x128xf32>
    %157 = arith.maximumf %155, %156 : vector<1x128xf32>
    %158 = tpu.concatenate %136, %139, %142, %145, %148, %151, %154, %157 in 0 : vector<1x128xf32>, vector<1x128xf32>, vector<1x128xf32>, vector<1x128xf32>, vector<1x128xf32>, vector<1x128xf32>, vector<1x128xf32>, vector<1x128xf32> -> vector<8x128xf32>
    %159 = vector.extract_strided_slice %158 {offsets = [0, 0], sizes = [8, 120], strides = [1, 1]} : vector<8x128xf32> to vector<8x120xf32>
    %160 = vector.extract_strided_slice %158 {offsets = [0, 8], sizes = [8, 120], strides = [1, 1]} : vector<8x128xf32> to vector<8x120xf32>
    %161 = arith.maximumf %159, %160 : vector<8x120xf32>
    %162 = vector.extract_strided_slice %161 {offsets = [1, 0], sizes = [1, 120], strides = [1, 1]} : vector<8x120xf32> to vector<1x120xf32>
    %163 = vector.extract_strided_slice %161 {offsets = [6, 0], sizes = [1, 120], strides = [1, 1]} : vector<8x120xf32> to vector<1x120xf32>
    %164 = tpu.concatenate %162, %161, %163 in 0 : vector<1x120xf32>, vector<8x120xf32>, vector<1x120xf32> -> vector<10x120xf32>
    %165 = vector.extract_strided_slice %164 {offsets = [0, 0], sizes = [8, 120], strides = [1, 1]} : vector<10x120xf32> to vector<8x120xf32>
    %166 = arith.truncf %165 : vector<8x120xf32> to vector<8x120xbf16>
    %167 = vector.extract_strided_slice %164 {offsets = [1, 0], sizes = [8, 120], strides = [1, 1]} : vector<10x120xf32> to vector<8x120xf32>
    %168 = arith.truncf %167 : vector<8x120xf32> to vector<8x120xbf16>
    %169 = vector.extract_strided_slice %164 {offsets = [2, 0], sizes = [8, 120], strides = [1, 1]} : vector<10x120xf32> to vector<8x120xf32>
    %170 = arith.truncf %169 : vector<8x120xf32> to vector<8x120xbf16>
    %171 = tpu.concatenate %166, %168, %170 in 1 : vector<8x120xbf16>, vector<8x120xbf16>, vector<8x120xbf16> -> vector<8x360xbf16>
    %c0_21 = arith.constant 0 : index
    %c0_22 = arith.constant 0 : index
    %172 = vector.load %arg4[%c0_21, %c0_22] : memref<360x128xbf16, #tpu.memory_space<vmem>>, vector<360x128xbf16>
    %cst_23 = arith.constant dense<0.000000e+00> : vector<8x128xf32>
    %173 = tpu.matmul %171, %172, %cst_23 {dimension_numbers = #tpu.dot_dimension_numbers<[1], [0], [0], [1], [0, 0, 1, 1], [], []>} : vector<8x360xbf16>, vector<360x128xbf16>, vector<8x128xf32> -> vector<8x128xf32>
    %cst_24 = arith.constant dense<0.000000e+00> : vector<128xf32>
    %174 = vector.multi_reduction <add>, %173, %cst_24 [0] : vector<8x128xf32> to vector<128xf32>
    %175 = vector.shape_cast %174 : vector<128xf32> to vector<1x128xf32>
    %176 = arith.mulf %173, %173 : vector<8x128xf32>
    %cst_25 = arith.constant dense<0.000000e+00> : vector<128xf32>
    %177 = vector.multi_reduction <add>, %176, %cst_25 [0] : vector<8x128xf32> to vector<128xf32>
    %178 = vector.shape_cast %177 : vector<128xf32> to vector<1x128xf32>
    %179 = vector.extract_strided_slice %175 {offsets = [0, 0], sizes = [1, 64], strides = [1, 1]} : vector<1x128xf32> to vector<1x64xf32>
    %180 = vector.extract_strided_slice %175 {offsets = [0, 64], sizes = [1, 64], strides = [1, 1]} : vector<1x128xf32> to vector<1x64xf32>
    %181 = arith.addf %179, %180 : vector<1x64xf32>
    %182 = vector.extract_strided_slice %178 {offsets = [0, 0], sizes = [1, 64], strides = [1, 1]} : vector<1x128xf32> to vector<1x64xf32>
    %183 = vector.extract_strided_slice %178 {offsets = [0, 64], sizes = [1, 64], strides = [1, 1]} : vector<1x128xf32> to vector<1x64xf32>
    %184 = arith.addf %182, %183 : vector<1x64xf32>
    %185 = vector.extract_strided_slice %181 {offsets = [0, 0], sizes = [1, 32], strides = [1, 1]} : vector<1x64xf32> to vector<1x32xf32>
    %186 = vector.extract_strided_slice %181 {offsets = [0, 32], sizes = [1, 32], strides = [1, 1]} : vector<1x64xf32> to vector<1x32xf32>
    %187 = arith.addf %185, %186 : vector<1x32xf32>
    %188 = vector.extract_strided_slice %184 {offsets = [0, 0], sizes = [1, 32], strides = [1, 1]} : vector<1x64xf32> to vector<1x32xf32>
    %189 = vector.extract_strided_slice %184 {offsets = [0, 32], sizes = [1, 32], strides = [1, 1]} : vector<1x64xf32> to vector<1x32xf32>
    %190 = arith.addf %188, %189 : vector<1x32xf32>
    %191 = vector.extract_strided_slice %187 {offsets = [0, 0], sizes = [1, 16], strides = [1, 1]} : vector<1x32xf32> to vector<1x16xf32>
    %192 = vector.extract_strided_slice %187 {offsets = [0, 16], sizes = [1, 16], strides = [1, 1]} : vector<1x32xf32> to vector<1x16xf32>
    %193 = arith.addf %191, %192 : vector<1x16xf32>
    %194 = vector.extract_strided_slice %190 {offsets = [0, 0], sizes = [1, 16], strides = [1, 1]} : vector<1x32xf32> to vector<1x16xf32>
    %195 = vector.extract_strided_slice %190 {offsets = [0, 16], sizes = [1, 16], strides = [1, 1]} : vector<1x32xf32> to vector<1x16xf32>
    %196 = arith.addf %194, %195 : vector<1x16xf32>
    %cst_26 = arith.constant 6.400000e+01 : f32
    %197 = vector.broadcast %cst_26 : f32 to vector<1x16xf32>
    %198 = arith.divf %193, %197 : vector<1x16xf32>
    %cst_27 = arith.constant 6.400000e+01 : f32
    %199 = vector.broadcast %cst_27 : f32 to vector<1x16xf32>
    %200 = arith.divf %196, %199 : vector<1x16xf32>
    %201 = arith.mulf %198, %198 : vector<1x16xf32>
    %202 = arith.subf %200, %201 : vector<1x16xf32>
    %cst_28 = arith.constant 0.000000e+00 : f32
    %203 = vector.broadcast %cst_28 : f32 to vector<1x16xf32>
    %204 = arith.maximumf %202, %203 : vector<1x16xf32>
    %cst_29 = arith.constant 9.99999974E-6 : f32
    %205 = vector.broadcast %cst_29 : f32 to vector<1x16xf32>
    %206 = arith.addf %204, %205 : vector<1x16xf32>
    %207 = math.rsqrt %206 : vector<1x16xf32>
    %208 = tpu.concatenate %198, %198 in 1 : vector<1x16xf32>, vector<1x16xf32> -> vector<1x32xf32>
    %209 = tpu.concatenate %207, %207 in 1 : vector<1x16xf32>, vector<1x16xf32> -> vector<1x32xf32>
    %210 = tpu.concatenate %208, %208 in 1 : vector<1x32xf32>, vector<1x32xf32> -> vector<1x64xf32>
    %211 = tpu.concatenate %209, %209 in 1 : vector<1x32xf32>, vector<1x32xf32> -> vector<1x64xf32>
    %212 = tpu.concatenate %210, %210 in 1 : vector<1x64xf32>, vector<1x64xf32> -> vector<1x128xf32>
    %213 = tpu.concatenate %211, %211 in 1 : vector<1x64xf32>, vector<1x64xf32> -> vector<1x128xf32>
    %214 = vector.broadcast %212 : vector<1x128xf32> to vector<8x128xf32>
    %215 = arith.subf %173, %214 : vector<8x128xf32>
    %216 = vector.broadcast %213 : vector<1x128xf32> to vector<8x128xf32>
    %217 = arith.mulf %215, %216 : vector<8x128xf32>
    %cst_30 = arith.constant 0.000000e+00 : f32
    %218 = vector.broadcast %cst_30 : f32 to vector<8x128xf32>
    %219 = arith.maximumf %217, %218 : vector<8x128xf32>
    %220 = vector.extract_strided_slice %219 {offsets = [1, 0], sizes = [1, 128], strides = [1, 1]} : vector<8x128xf32> to vector<1x128xf32>
    %221 = vector.extract_strided_slice %219 {offsets = [6, 0], sizes = [1, 128], strides = [1, 1]} : vector<8x128xf32> to vector<1x128xf32>
    %222 = tpu.concatenate %220, %219, %221 in 0 : vector<1x128xf32>, vector<8x128xf32>, vector<1x128xf32> -> vector<10x128xf32>
    %223 = vector.extract_strided_slice %222 {offsets = [0, 0], sizes = [8, 128], strides = [1, 1]} : vector<10x128xf32> to vector<8x128xf32>
    %224 = arith.truncf %223 : vector<8x128xf32> to vector<8x128xbf16>
    %225 = vector.extract_strided_slice %222 {offsets = [1, 0], sizes = [8, 128], strides = [1, 1]} : vector<10x128xf32> to vector<8x128xf32>
    %226 = arith.truncf %225 : vector<8x128xf32> to vector<8x128xbf16>
    %227 = vector.extract_strided_slice %222 {offsets = [2, 0], sizes = [8, 128], strides = [1, 1]} : vector<10x128xf32> to vector<8x128xf32>
    %228 = arith.truncf %227 : vector<8x128xf32> to vector<8x128xbf16>
    %229 = tpu.concatenate %224, %226, %228 in 1 : vector<8x128xbf16>, vector<8x128xbf16>, vector<8x128xbf16> -> vector<8x384xbf16>
    %c0_31 = arith.constant 0 : index
    %c0_32 = arith.constant 0 : index
    %230 = vector.load %arg5[%c0_31, %c0_32] : memref<384x128xbf16, #tpu.memory_space<vmem>>, vector<384x128xbf16>
    %cst_33 = arith.constant dense<0.000000e+00> : vector<8x128xf32>
    %231 = tpu.matmul %229, %230, %cst_33 {dimension_numbers = #tpu.dot_dimension_numbers<[1], [0], [0], [1], [0, 0, 1, 1], [], []>} : vector<8x384xbf16>, vector<384x128xbf16>, vector<8x128xf32> -> vector<8x128xf32>
    %cst_34 = arith.constant dense<0.000000e+00> : vector<128xf32>
    %232 = vector.multi_reduction <add>, %231, %cst_34 [0] : vector<8x128xf32> to vector<128xf32>
    %233 = vector.shape_cast %232 : vector<128xf32> to vector<1x128xf32>
    %234 = arith.mulf %231, %231 : vector<8x128xf32>
    %cst_35 = arith.constant dense<0.000000e+00> : vector<128xf32>
    %235 = vector.multi_reduction <add>, %234, %cst_35 [0] : vector<8x128xf32> to vector<128xf32>
    %236 = vector.shape_cast %235 : vector<128xf32> to vector<1x128xf32>
    %237 = vector.extract_strided_slice %233 {offsets = [0, 0], sizes = [1, 64], strides = [1, 1]} : vector<1x128xf32> to vector<1x64xf32>
    %238 = vector.extract_strided_slice %233 {offsets = [0, 64], sizes = [1, 64], strides = [1, 1]} : vector<1x128xf32> to vector<1x64xf32>
    %239 = arith.addf %237, %238 : vector<1x64xf32>
    %240 = vector.extract_strided_slice %236 {offsets = [0, 0], sizes = [1, 64], strides = [1, 1]} : vector<1x128xf32> to vector<1x64xf32>
    %241 = vector.extract_strided_slice %236 {offsets = [0, 64], sizes = [1, 64], strides = [1, 1]} : vector<1x128xf32> to vector<1x64xf32>
    %242 = arith.addf %240, %241 : vector<1x64xf32>
    %243 = vector.extract_strided_slice %239 {offsets = [0, 0], sizes = [1, 32], strides = [1, 1]} : vector<1x64xf32> to vector<1x32xf32>
    %244 = vector.extract_strided_slice %239 {offsets = [0, 32], sizes = [1, 32], strides = [1, 1]} : vector<1x64xf32> to vector<1x32xf32>
    %245 = arith.addf %243, %244 : vector<1x32xf32>
    %246 = vector.extract_strided_slice %242 {offsets = [0, 0], sizes = [1, 32], strides = [1, 1]} : vector<1x64xf32> to vector<1x32xf32>
    %247 = vector.extract_strided_slice %242 {offsets = [0, 32], sizes = [1, 32], strides = [1, 1]} : vector<1x64xf32> to vector<1x32xf32>
    %248 = arith.addf %246, %247 : vector<1x32xf32>
    %249 = vector.extract_strided_slice %245 {offsets = [0, 0], sizes = [1, 16], strides = [1, 1]} : vector<1x32xf32> to vector<1x16xf32>
    %250 = vector.extract_strided_slice %245 {offsets = [0, 16], sizes = [1, 16], strides = [1, 1]} : vector<1x32xf32> to vector<1x16xf32>
    %251 = arith.addf %249, %250 : vector<1x16xf32>
    %252 = vector.extract_strided_slice %248 {offsets = [0, 0], sizes = [1, 16], strides = [1, 1]} : vector<1x32xf32> to vector<1x16xf32>
    %253 = vector.extract_strided_slice %248 {offsets = [0, 16], sizes = [1, 16], strides = [1, 1]} : vector<1x32xf32> to vector<1x16xf32>
    %254 = arith.addf %252, %253 : vector<1x16xf32>
    %cst_36 = arith.constant 6.400000e+01 : f32
    %255 = vector.broadcast %cst_36 : f32 to vector<1x16xf32>
    %256 = arith.divf %251, %255 : vector<1x16xf32>
    %cst_37 = arith.constant 6.400000e+01 : f32
    %257 = vector.broadcast %cst_37 : f32 to vector<1x16xf32>
    %258 = arith.divf %254, %257 : vector<1x16xf32>
    %259 = arith.mulf %256, %256 : vector<1x16xf32>
    %260 = arith.subf %258, %259 : vector<1x16xf32>
    %cst_38 = arith.constant 0.000000e+00 : f32
    %261 = vector.broadcast %cst_38 : f32 to vector<1x16xf32>
    %262 = arith.maximumf %260, %261 : vector<1x16xf32>
    %cst_39 = arith.constant 9.99999974E-6 : f32
    %263 = vector.broadcast %cst_39 : f32 to vector<1x16xf32>
    %264 = arith.addf %262, %263 : vector<1x16xf32>
    %265 = math.rsqrt %264 : vector<1x16xf32>
    %266 = tpu.concatenate %256, %256 in 1 : vector<1x16xf32>, vector<1x16xf32> -> vector<1x32xf32>
    %267 = tpu.concatenate %265, %265 in 1 : vector<1x16xf32>, vector<1x16xf32> -> vector<1x32xf32>
    %268 = tpu.concatenate %266, %266 in 1 : vector<1x32xf32>, vector<1x32xf32> -> vector<1x64xf32>
    %269 = tpu.concatenate %267, %267 in 1 : vector<1x32xf32>, vector<1x32xf32> -> vector<1x64xf32>
    %270 = tpu.concatenate %268, %268 in 1 : vector<1x64xf32>, vector<1x64xf32> -> vector<1x128xf32>
    %271 = tpu.concatenate %269, %269 in 1 : vector<1x64xf32>, vector<1x64xf32> -> vector<1x128xf32>
    %272 = vector.broadcast %270 : vector<1x128xf32> to vector<8x128xf32>
    %273 = arith.subf %231, %272 : vector<8x128xf32>
    %274 = vector.broadcast %271 : vector<1x128xf32> to vector<8x128xf32>
    %275 = arith.mulf %273, %274 : vector<8x128xf32>
    %cst_40 = arith.constant 0.000000e+00 : f32
    %276 = vector.broadcast %cst_40 : f32 to vector<8x128xf32>
    %277 = arith.maximumf %275, %276 : vector<8x128xf32>
    %278 = vector.extract_strided_slice %277 {offsets = [0, 0], sizes = [1, 128], strides = [1, 1]} : vector<8x128xf32> to vector<1x128xf32>
    %279 = vector.extract_strided_slice %277 {offsets = [1, 0], sizes = [1, 128], strides = [1, 1]} : vector<8x128xf32> to vector<1x128xf32>
    %280 = arith.maximumf %278, %279 : vector<1x128xf32>
    %281 = vector.extract_strided_slice %277 {offsets = [2, 0], sizes = [1, 128], strides = [1, 1]} : vector<8x128xf32> to vector<1x128xf32>
    %282 = vector.extract_strided_slice %277 {offsets = [3, 0], sizes = [1, 128], strides = [1, 1]} : vector<8x128xf32> to vector<1x128xf32>
    %283 = arith.maximumf %281, %282 : vector<1x128xf32>
    %284 = vector.extract_strided_slice %277 {offsets = [4, 0], sizes = [1, 128], strides = [1, 1]} : vector<8x128xf32> to vector<1x128xf32>
    %285 = vector.extract_strided_slice %277 {offsets = [5, 0], sizes = [1, 128], strides = [1, 1]} : vector<8x128xf32> to vector<1x128xf32>
    %286 = arith.maximumf %284, %285 : vector<1x128xf32>
    %287 = vector.extract_strided_slice %277 {offsets = [6, 0], sizes = [1, 128], strides = [1, 1]} : vector<8x128xf32> to vector<1x128xf32>
    %288 = vector.extract_strided_slice %277 {offsets = [7, 0], sizes = [1, 128], strides = [1, 1]} : vector<8x128xf32> to vector<1x128xf32>
    %289 = arith.maximumf %287, %288 : vector<1x128xf32>
    %290 = tpu.concatenate %280, %283, %286, %289 in 0 : vector<1x128xf32>, vector<1x128xf32>, vector<1x128xf32>, vector<1x128xf32> -> vector<4x128xf32>
    %291 = vector.extract_strided_slice %290 {offsets = [0, 0], sizes = [4, 112], strides = [1, 1]} : vector<4x128xf32> to vector<4x112xf32>
    %292 = vector.extract_strided_slice %290 {offsets = [0, 16], sizes = [4, 112], strides = [1, 1]} : vector<4x128xf32> to vector<4x112xf32>
    %293 = arith.maximumf %291, %292 : vector<4x112xf32>
    %294 = vector.extract_strided_slice %293 {offsets = [1, 0], sizes = [1, 112], strides = [1, 1]} : vector<4x112xf32> to vector<1x112xf32>
    %295 = vector.extract_strided_slice %293 {offsets = [2, 0], sizes = [1, 112], strides = [1, 1]} : vector<4x112xf32> to vector<1x112xf32>
    %296 = tpu.concatenate %294, %293, %295 in 0 : vector<1x112xf32>, vector<4x112xf32>, vector<1x112xf32> -> vector<6x112xf32>
    %297 = vector.extract_strided_slice %296 {offsets = [0, 0], sizes = [4, 112], strides = [1, 1]} : vector<6x112xf32> to vector<4x112xf32>
    %298 = arith.truncf %297 : vector<4x112xf32> to vector<4x112xbf16>
    %299 = vector.extract_strided_slice %296 {offsets = [1, 0], sizes = [4, 112], strides = [1, 1]} : vector<6x112xf32> to vector<4x112xf32>
    %300 = arith.truncf %299 : vector<4x112xf32> to vector<4x112xbf16>
    %301 = vector.extract_strided_slice %296 {offsets = [2, 0], sizes = [4, 112], strides = [1, 1]} : vector<6x112xf32> to vector<4x112xf32>
    %302 = arith.truncf %301 : vector<4x112xf32> to vector<4x112xbf16>
    %303 = tpu.concatenate %298, %300, %302 in 1 : vector<4x112xbf16>, vector<4x112xbf16>, vector<4x112xbf16> -> vector<4x336xbf16>
    %c0_41 = arith.constant 0 : index
    %c0_42 = arith.constant 0 : index
    %304 = vector.load %arg6[%c0_41, %c0_42] : memref<336x128xbf16, #tpu.memory_space<vmem>>, vector<336x128xbf16>
    %cst_43 = arith.constant dense<0.000000e+00> : vector<4x128xf32>
    %305 = tpu.matmul %303, %304, %cst_43 {dimension_numbers = #tpu.dot_dimension_numbers<[1], [0], [0], [1], [0, 0, 1, 1], [], []>} : vector<4x336xbf16>, vector<336x128xbf16>, vector<4x128xf32> -> vector<4x128xf32>
    %cst_44 = arith.constant dense<0.000000e+00> : vector<128xf32>
    %306 = vector.multi_reduction <add>, %305, %cst_44 [0] : vector<4x128xf32> to vector<128xf32>
    %307 = vector.shape_cast %306 : vector<128xf32> to vector<1x128xf32>
    %308 = arith.mulf %305, %305 : vector<4x128xf32>
    %cst_45 = arith.constant dense<0.000000e+00> : vector<128xf32>
    %309 = vector.multi_reduction <add>, %308, %cst_45 [0] : vector<4x128xf32> to vector<128xf32>
    %310 = vector.shape_cast %309 : vector<128xf32> to vector<1x128xf32>
    %311 = vector.extract_strided_slice %307 {offsets = [0, 0], sizes = [1, 64], strides = [1, 1]} : vector<1x128xf32> to vector<1x64xf32>
    %312 = vector.extract_strided_slice %307 {offsets = [0, 64], sizes = [1, 64], strides = [1, 1]} : vector<1x128xf32> to vector<1x64xf32>
    %313 = arith.addf %311, %312 : vector<1x64xf32>
    %314 = vector.extract_strided_slice %310 {offsets = [0, 0], sizes = [1, 64], strides = [1, 1]} : vector<1x128xf32> to vector<1x64xf32>
    %315 = vector.extract_strided_slice %310 {offsets = [0, 64], sizes = [1, 64], strides = [1, 1]} : vector<1x128xf32> to vector<1x64xf32>
    %316 = arith.addf %314, %315 : vector<1x64xf32>
    %317 = vector.extract_strided_slice %313 {offsets = [0, 0], sizes = [1, 32], strides = [1, 1]} : vector<1x64xf32> to vector<1x32xf32>
    %318 = vector.extract_strided_slice %313 {offsets = [0, 32], sizes = [1, 32], strides = [1, 1]} : vector<1x64xf32> to vector<1x32xf32>
    %319 = arith.addf %317, %318 : vector<1x32xf32>
    %320 = vector.extract_strided_slice %316 {offsets = [0, 0], sizes = [1, 32], strides = [1, 1]} : vector<1x64xf32> to vector<1x32xf32>
    %321 = vector.extract_strided_slice %316 {offsets = [0, 32], sizes = [1, 32], strides = [1, 1]} : vector<1x64xf32> to vector<1x32xf32>
    %322 = arith.addf %320, %321 : vector<1x32xf32>
    %cst_46 = arith.constant 1.600000e+01 : f32
    %323 = vector.broadcast %cst_46 : f32 to vector<1x32xf32>
    %324 = arith.divf %319, %323 : vector<1x32xf32>
    %cst_47 = arith.constant 1.600000e+01 : f32
    %325 = vector.broadcast %cst_47 : f32 to vector<1x32xf32>
    %326 = arith.divf %322, %325 : vector<1x32xf32>
    %327 = arith.mulf %324, %324 : vector<1x32xf32>
    %328 = arith.subf %326, %327 : vector<1x32xf32>
    %cst_48 = arith.constant 0.000000e+00 : f32
    %329 = vector.broadcast %cst_48 : f32 to vector<1x32xf32>
    %330 = arith.maximumf %328, %329 : vector<1x32xf32>
    %cst_49 = arith.constant 9.99999974E-6 : f32
    %331 = vector.broadcast %cst_49 : f32 to vector<1x32xf32>
    %332 = arith.addf %330, %331 : vector<1x32xf32>
    %333 = math.rsqrt %332 : vector<1x32xf32>
    %334 = tpu.concatenate %324, %324 in 1 : vector<1x32xf32>, vector<1x32xf32> -> vector<1x64xf32>
    %335 = tpu.concatenate %333, %333 in 1 : vector<1x32xf32>, vector<1x32xf32> -> vector<1x64xf32>
    %336 = tpu.concatenate %334, %334 in 1 : vector<1x64xf32>, vector<1x64xf32> -> vector<1x128xf32>
    %337 = tpu.concatenate %335, %335 in 1 : vector<1x64xf32>, vector<1x64xf32> -> vector<1x128xf32>
    %338 = vector.broadcast %336 : vector<1x128xf32> to vector<4x128xf32>
    %339 = arith.subf %305, %338 : vector<4x128xf32>
    %340 = vector.broadcast %337 : vector<1x128xf32> to vector<4x128xf32>
    %341 = arith.mulf %339, %340 : vector<4x128xf32>
    %cst_50 = arith.constant 0.000000e+00 : f32
    %342 = vector.broadcast %cst_50 : f32 to vector<4x128xf32>
    %343 = arith.maximumf %341, %342 : vector<4x128xf32>
    %344 = vector.extract_strided_slice %343 {offsets = [1, 0], sizes = [1, 128], strides = [1, 1]} : vector<4x128xf32> to vector<1x128xf32>
    %345 = vector.extract_strided_slice %343 {offsets = [2, 0], sizes = [1, 128], strides = [1, 1]} : vector<4x128xf32> to vector<1x128xf32>
    %346 = tpu.concatenate %344, %343, %345 in 0 : vector<1x128xf32>, vector<4x128xf32>, vector<1x128xf32> -> vector<6x128xf32>
    %347 = vector.extract_strided_slice %346 {offsets = [0, 0], sizes = [4, 128], strides = [1, 1]} : vector<6x128xf32> to vector<4x128xf32>
    %348 = arith.truncf %347 : vector<4x128xf32> to vector<4x128xbf16>
    %349 = vector.extract_strided_slice %346 {offsets = [1, 0], sizes = [4, 128], strides = [1, 1]} : vector<6x128xf32> to vector<4x128xf32>
    %350 = arith.truncf %349 : vector<4x128xf32> to vector<4x128xbf16>
    %351 = vector.extract_strided_slice %346 {offsets = [2, 0], sizes = [4, 128], strides = [1, 1]} : vector<6x128xf32> to vector<4x128xf32>
    %352 = arith.truncf %351 : vector<4x128xf32> to vector<4x128xbf16>
    %353 = tpu.concatenate %348, %350, %352 in 1 : vector<4x128xbf16>, vector<4x128xbf16>, vector<4x128xbf16> -> vector<4x384xbf16>
    %c0_51 = arith.constant 0 : index
    %c0_52 = arith.constant 0 : index
    %354 = vector.load %arg7[%c0_51, %c0_52] : memref<384x128xbf16, #tpu.memory_space<vmem>>, vector<384x128xbf16>
    %cst_53 = arith.constant dense<0.000000e+00> : vector<4x128xf32>
    %355 = tpu.matmul %353, %354, %cst_53 {dimension_numbers = #tpu.dot_dimension_numbers<[1], [0], [0], [1], [0, 0, 1, 1], [], []>} : vector<4x384xbf16>, vector<384x128xbf16>, vector<4x128xf32> -> vector<4x128xf32>
    %cst_54 = arith.constant dense<0.000000e+00> : vector<128xf32>
    %356 = vector.multi_reduction <add>, %355, %cst_54 [0] : vector<4x128xf32> to vector<128xf32>
    %357 = vector.shape_cast %356 : vector<128xf32> to vector<1x128xf32>
    %358 = arith.mulf %355, %355 : vector<4x128xf32>
    %cst_55 = arith.constant dense<0.000000e+00> : vector<128xf32>
    %359 = vector.multi_reduction <add>, %358, %cst_55 [0] : vector<4x128xf32> to vector<128xf32>
    %360 = vector.shape_cast %359 : vector<128xf32> to vector<1x128xf32>
    %361 = vector.extract_strided_slice %357 {offsets = [0, 0], sizes = [1, 64], strides = [1, 1]} : vector<1x128xf32> to vector<1x64xf32>
    %362 = vector.extract_strided_slice %357 {offsets = [0, 64], sizes = [1, 64], strides = [1, 1]} : vector<1x128xf32> to vector<1x64xf32>
    %363 = arith.addf %361, %362 : vector<1x64xf32>
    %364 = vector.extract_strided_slice %360 {offsets = [0, 0], sizes = [1, 64], strides = [1, 1]} : vector<1x128xf32> to vector<1x64xf32>
    %365 = vector.extract_strided_slice %360 {offsets = [0, 64], sizes = [1, 64], strides = [1, 1]} : vector<1x128xf32> to vector<1x64xf32>
    %366 = arith.addf %364, %365 : vector<1x64xf32>
    %367 = vector.extract_strided_slice %363 {offsets = [0, 0], sizes = [1, 32], strides = [1, 1]} : vector<1x64xf32> to vector<1x32xf32>
    %368 = vector.extract_strided_slice %363 {offsets = [0, 32], sizes = [1, 32], strides = [1, 1]} : vector<1x64xf32> to vector<1x32xf32>
    %369 = arith.addf %367, %368 : vector<1x32xf32>
    %370 = vector.extract_strided_slice %366 {offsets = [0, 0], sizes = [1, 32], strides = [1, 1]} : vector<1x64xf32> to vector<1x32xf32>
    %371 = vector.extract_strided_slice %366 {offsets = [0, 32], sizes = [1, 32], strides = [1, 1]} : vector<1x64xf32> to vector<1x32xf32>
    %372 = arith.addf %370, %371 : vector<1x32xf32>
    %cst_56 = arith.constant 1.600000e+01 : f32
    %373 = vector.broadcast %cst_56 : f32 to vector<1x32xf32>
    %374 = arith.divf %369, %373 : vector<1x32xf32>
    %cst_57 = arith.constant 1.600000e+01 : f32
    %375 = vector.broadcast %cst_57 : f32 to vector<1x32xf32>
    %376 = arith.divf %372, %375 : vector<1x32xf32>
    %377 = arith.mulf %374, %374 : vector<1x32xf32>
    %378 = arith.subf %376, %377 : vector<1x32xf32>
    %cst_58 = arith.constant 0.000000e+00 : f32
    %379 = vector.broadcast %cst_58 : f32 to vector<1x32xf32>
    %380 = arith.maximumf %378, %379 : vector<1x32xf32>
    %cst_59 = arith.constant 9.99999974E-6 : f32
    %381 = vector.broadcast %cst_59 : f32 to vector<1x32xf32>
    %382 = arith.addf %380, %381 : vector<1x32xf32>
    %383 = math.rsqrt %382 : vector<1x32xf32>
    %384 = tpu.concatenate %374, %374 in 1 : vector<1x32xf32>, vector<1x32xf32> -> vector<1x64xf32>
    %385 = tpu.concatenate %383, %383 in 1 : vector<1x32xf32>, vector<1x32xf32> -> vector<1x64xf32>
    %386 = tpu.concatenate %384, %384 in 1 : vector<1x64xf32>, vector<1x64xf32> -> vector<1x128xf32>
    %387 = tpu.concatenate %385, %385 in 1 : vector<1x64xf32>, vector<1x64xf32> -> vector<1x128xf32>
    %388 = vector.broadcast %386 : vector<1x128xf32> to vector<4x128xf32>
    %389 = arith.subf %355, %388 : vector<4x128xf32>
    %390 = vector.broadcast %387 : vector<1x128xf32> to vector<4x128xf32>
    %391 = arith.mulf %389, %390 : vector<4x128xf32>
    %cst_60 = arith.constant 0.000000e+00 : f32
    %392 = vector.broadcast %cst_60 : f32 to vector<4x128xf32>
    %393 = arith.maximumf %391, %392 : vector<4x128xf32>
    %394 = vector.extract_strided_slice %393 {offsets = [0, 0], sizes = [1, 128], strides = [1, 1]} : vector<4x128xf32> to vector<1x128xf32>
    %395 = vector.extract_strided_slice %393 {offsets = [0, 0], sizes = [1, 128], strides = [1, 1]} : vector<4x128xf32> to vector<1x128xf32>
    %396 = vector.extract_strided_slice %393 {offsets = [0, 0], sizes = [1, 128], strides = [1, 1]} : vector<4x128xf32> to vector<1x128xf32>
    %397 = vector.extract_strided_slice %393 {offsets = [1, 0], sizes = [1, 128], strides = [1, 1]} : vector<4x128xf32> to vector<1x128xf32>
    %398 = vector.extract_strided_slice %393 {offsets = [1, 0], sizes = [1, 128], strides = [1, 1]} : vector<4x128xf32> to vector<1x128xf32>
    %399 = vector.extract_strided_slice %393 {offsets = [2, 0], sizes = [1, 128], strides = [1, 1]} : vector<4x128xf32> to vector<1x128xf32>
    %400 = vector.extract_strided_slice %393 {offsets = [2, 0], sizes = [1, 128], strides = [1, 1]} : vector<4x128xf32> to vector<1x128xf32>
    %401 = vector.extract_strided_slice %393 {offsets = [3, 0], sizes = [1, 128], strides = [1, 1]} : vector<4x128xf32> to vector<1x128xf32>
    %402 = vector.extract_strided_slice %393 {offsets = [3, 0], sizes = [1, 128], strides = [1, 1]} : vector<4x128xf32> to vector<1x128xf32>
    %403 = vector.extract_strided_slice %393 {offsets = [3, 0], sizes = [1, 128], strides = [1, 1]} : vector<4x128xf32> to vector<1x128xf32>
    %404 = tpu.concatenate %394, %395, %396, %397, %398, %399, %400, %401, %402, %403 in 0 : vector<1x128xf32>, vector<1x128xf32>, vector<1x128xf32>, vector<1x128xf32>, vector<1x128xf32>, vector<1x128xf32>, vector<1x128xf32>, vector<1x128xf32>, vector<1x128xf32>, vector<1x128xf32> -> vector<10x128xf32>
    %405 = vector.extract_strided_slice %404 {offsets = [0, 0], sizes = [8, 128], strides = [1, 1]} : vector<10x128xf32> to vector<8x128xf32>
    %406 = arith.truncf %405 : vector<8x128xf32> to vector<8x128xbf16>
    %407 = vector.extract_strided_slice %404 {offsets = [1, 0], sizes = [8, 128], strides = [1, 1]} : vector<10x128xf32> to vector<8x128xf32>
    %408 = arith.truncf %407 : vector<8x128xf32> to vector<8x128xbf16>
    %409 = vector.extract_strided_slice %404 {offsets = [2, 0], sizes = [8, 128], strides = [1, 1]} : vector<10x128xf32> to vector<8x128xf32>
    %410 = arith.truncf %409 : vector<8x128xf32> to vector<8x128xbf16>
    %411 = tpu.concatenate %406, %408, %410 in 1 : vector<8x128xbf16>, vector<8x128xbf16>, vector<8x128xbf16> -> vector<8x384xbf16>
    %c0_61 = arith.constant 0 : index
    %c0_62 = arith.constant 0 : index
    %412 = vector.load %arg8[%c0_61, %c0_62] : memref<384x128xbf16, #tpu.memory_space<vmem>>, vector<384x128xbf16>
    %cst_63 = arith.constant dense<0.000000e+00> : vector<8x128xf32>
    %413 = tpu.matmul %411, %412, %cst_63 {dimension_numbers = #tpu.dot_dimension_numbers<[1], [0], [0], [1], [0, 0, 1, 1], [], []>} : vector<8x384xbf16>, vector<384x128xbf16>, vector<8x128xf32> -> vector<8x128xf32>
    %414 = vector.extract_strided_slice %413 {offsets = [1, 0], sizes = [1, 128], strides = [1, 1]} : vector<8x128xf32> to vector<1x128xf32>
    %415 = vector.extract_strided_slice %413 {offsets = [6, 0], sizes = [1, 128], strides = [1, 1]} : vector<8x128xf32> to vector<1x128xf32>
    %416 = tpu.concatenate %414, %413, %415 in 0 : vector<1x128xf32>, vector<8x128xf32>, vector<1x128xf32> -> vector<10x128xf32>
    %417 = vector.extract_strided_slice %277 {offsets = [1, 0], sizes = [1, 128], strides = [1, 1]} : vector<8x128xf32> to vector<1x128xf32>
    %418 = vector.extract_strided_slice %277 {offsets = [6, 0], sizes = [1, 128], strides = [1, 1]} : vector<8x128xf32> to vector<1x128xf32>
    %419 = tpu.concatenate %417, %277, %418 in 0 : vector<1x128xf32>, vector<8x128xf32>, vector<1x128xf32> -> vector<10x128xf32>
    %420 = vector.extract_strided_slice %416 {offsets = [0, 0], sizes = [8, 128], strides = [1, 1]} : vector<10x128xf32> to vector<8x128xf32>
    %421 = arith.truncf %420 : vector<8x128xf32> to vector<8x128xbf16>
    %422 = vector.extract_strided_slice %416 {offsets = [1, 0], sizes = [8, 128], strides = [1, 1]} : vector<10x128xf32> to vector<8x128xf32>
    %423 = arith.truncf %422 : vector<8x128xf32> to vector<8x128xbf16>
    %424 = vector.extract_strided_slice %416 {offsets = [2, 0], sizes = [8, 128], strides = [1, 1]} : vector<10x128xf32> to vector<8x128xf32>
    %425 = arith.truncf %424 : vector<8x128xf32> to vector<8x128xbf16>
    %426 = vector.extract_strided_slice %419 {offsets = [0, 0], sizes = [8, 128], strides = [1, 1]} : vector<10x128xf32> to vector<8x128xf32>
    %427 = arith.truncf %426 : vector<8x128xf32> to vector<8x128xbf16>
    %428 = vector.extract_strided_slice %419 {offsets = [1, 0], sizes = [8, 128], strides = [1, 1]} : vector<10x128xf32> to vector<8x128xf32>
    %429 = arith.truncf %428 : vector<8x128xf32> to vector<8x128xbf16>
    %430 = vector.extract_strided_slice %419 {offsets = [2, 0], sizes = [8, 128], strides = [1, 1]} : vector<10x128xf32> to vector<8x128xf32>
    %431 = arith.truncf %430 : vector<8x128xf32> to vector<8x128xbf16>
    %432 = tpu.concatenate %421, %423, %425, %427, %429, %431 in 1 : vector<8x128xbf16>, vector<8x128xbf16>, vector<8x128xbf16>, vector<8x128xbf16>, vector<8x128xbf16>, vector<8x128xbf16> -> vector<8x768xbf16>
    %c0_64 = arith.constant 0 : index
    %c0_65 = arith.constant 0 : index
    %433 = vector.load %arg9[%c0_64, %c0_65] : memref<768x128xbf16, #tpu.memory_space<vmem>>, vector<768x128xbf16>
    %cst_66 = arith.constant dense<0.000000e+00> : vector<8x128xf32>
    %434 = tpu.matmul %432, %433, %cst_66 {dimension_numbers = #tpu.dot_dimension_numbers<[1], [0], [0], [1], [0, 0, 1, 1], [], []>} : vector<8x768xbf16>, vector<768x128xbf16>, vector<8x128xf32> -> vector<8x128xf32>
    %cst_67 = arith.constant dense<0.000000e+00> : vector<128xf32>
    %435 = vector.multi_reduction <add>, %434, %cst_67 [0] : vector<8x128xf32> to vector<128xf32>
    %436 = vector.shape_cast %435 : vector<128xf32> to vector<1x128xf32>
    %437 = arith.mulf %434, %434 : vector<8x128xf32>
    %cst_68 = arith.constant dense<0.000000e+00> : vector<128xf32>
    %438 = vector.multi_reduction <add>, %437, %cst_68 [0] : vector<8x128xf32> to vector<128xf32>
    %439 = vector.shape_cast %438 : vector<128xf32> to vector<1x128xf32>
    %440 = vector.extract_strided_slice %436 {offsets = [0, 0], sizes = [1, 64], strides = [1, 1]} : vector<1x128xf32> to vector<1x64xf32>
    %441 = vector.extract_strided_slice %436 {offsets = [0, 64], sizes = [1, 64], strides = [1, 1]} : vector<1x128xf32> to vector<1x64xf32>
    %442 = arith.addf %440, %441 : vector<1x64xf32>
    %443 = vector.extract_strided_slice %439 {offsets = [0, 0], sizes = [1, 64], strides = [1, 1]} : vector<1x128xf32> to vector<1x64xf32>
    %444 = vector.extract_strided_slice %439 {offsets = [0, 64], sizes = [1, 64], strides = [1, 1]} : vector<1x128xf32> to vector<1x64xf32>
    %445 = arith.addf %443, %444 : vector<1x64xf32>
    %446 = vector.extract_strided_slice %442 {offsets = [0, 0], sizes = [1, 32], strides = [1, 1]} : vector<1x64xf32> to vector<1x32xf32>
    %447 = vector.extract_strided_slice %442 {offsets = [0, 32], sizes = [1, 32], strides = [1, 1]} : vector<1x64xf32> to vector<1x32xf32>
    %448 = arith.addf %446, %447 : vector<1x32xf32>
    %449 = vector.extract_strided_slice %445 {offsets = [0, 0], sizes = [1, 32], strides = [1, 1]} : vector<1x64xf32> to vector<1x32xf32>
    %450 = vector.extract_strided_slice %445 {offsets = [0, 32], sizes = [1, 32], strides = [1, 1]} : vector<1x64xf32> to vector<1x32xf32>
    %451 = arith.addf %449, %450 : vector<1x32xf32>
    %452 = vector.extract_strided_slice %448 {offsets = [0, 0], sizes = [1, 16], strides = [1, 1]} : vector<1x32xf32> to vector<1x16xf32>
    %453 = vector.extract_strided_slice %448 {offsets = [0, 16], sizes = [1, 16], strides = [1, 1]} : vector<1x32xf32> to vector<1x16xf32>
    %454 = arith.addf %452, %453 : vector<1x16xf32>
    %455 = vector.extract_strided_slice %451 {offsets = [0, 0], sizes = [1, 16], strides = [1, 1]} : vector<1x32xf32> to vector<1x16xf32>
    %456 = vector.extract_strided_slice %451 {offsets = [0, 16], sizes = [1, 16], strides = [1, 1]} : vector<1x32xf32> to vector<1x16xf32>
    %457 = arith.addf %455, %456 : vector<1x16xf32>
    %cst_69 = arith.constant 6.400000e+01 : f32
    %458 = vector.broadcast %cst_69 : f32 to vector<1x16xf32>
    %459 = arith.divf %454, %458 : vector<1x16xf32>
    %cst_70 = arith.constant 6.400000e+01 : f32
    %460 = vector.broadcast %cst_70 : f32 to vector<1x16xf32>
    %461 = arith.divf %457, %460 : vector<1x16xf32>
    %462 = arith.mulf %459, %459 : vector<1x16xf32>
    %463 = arith.subf %461, %462 : vector<1x16xf32>
    %cst_71 = arith.constant 0.000000e+00 : f32
    %464 = vector.broadcast %cst_71 : f32 to vector<1x16xf32>
    %465 = arith.maximumf %463, %464 : vector<1x16xf32>
    %cst_72 = arith.constant 9.99999974E-6 : f32
    %466 = vector.broadcast %cst_72 : f32 to vector<1x16xf32>
    %467 = arith.addf %465, %466 : vector<1x16xf32>
    %468 = math.rsqrt %467 : vector<1x16xf32>
    %469 = tpu.concatenate %459, %459 in 1 : vector<1x16xf32>, vector<1x16xf32> -> vector<1x32xf32>
    %470 = tpu.concatenate %468, %468 in 1 : vector<1x16xf32>, vector<1x16xf32> -> vector<1x32xf32>
    %471 = tpu.concatenate %469, %469 in 1 : vector<1x32xf32>, vector<1x32xf32> -> vector<1x64xf32>
    %472 = tpu.concatenate %470, %470 in 1 : vector<1x32xf32>, vector<1x32xf32> -> vector<1x64xf32>
    %473 = tpu.concatenate %471, %471 in 1 : vector<1x64xf32>, vector<1x64xf32> -> vector<1x128xf32>
    %474 = tpu.concatenate %472, %472 in 1 : vector<1x64xf32>, vector<1x64xf32> -> vector<1x128xf32>
    %475 = vector.broadcast %473 : vector<1x128xf32> to vector<8x128xf32>
    %476 = arith.subf %434, %475 : vector<8x128xf32>
    %477 = vector.broadcast %474 : vector<1x128xf32> to vector<8x128xf32>
    %478 = arith.mulf %476, %477 : vector<8x128xf32>
    %cst_73 = arith.constant 0.000000e+00 : f32
    %479 = vector.broadcast %cst_73 : f32 to vector<8x128xf32>
    %480 = arith.maximumf %478, %479 : vector<8x128xf32>
    %481 = vector.extract_strided_slice %480 {offsets = [1, 0], sizes = [1, 128], strides = [1, 1]} : vector<8x128xf32> to vector<1x128xf32>
    %482 = vector.extract_strided_slice %480 {offsets = [6, 0], sizes = [1, 128], strides = [1, 1]} : vector<8x128xf32> to vector<1x128xf32>
    %483 = tpu.concatenate %481, %480, %482 in 0 : vector<1x128xf32>, vector<8x128xf32>, vector<1x128xf32> -> vector<10x128xf32>
    %484 = vector.extract_strided_slice %483 {offsets = [0, 0], sizes = [8, 128], strides = [1, 1]} : vector<10x128xf32> to vector<8x128xf32>
    %485 = arith.truncf %484 : vector<8x128xf32> to vector<8x128xbf16>
    %486 = vector.extract_strided_slice %483 {offsets = [1, 0], sizes = [8, 128], strides = [1, 1]} : vector<10x128xf32> to vector<8x128xf32>
    %487 = arith.truncf %486 : vector<8x128xf32> to vector<8x128xbf16>
    %488 = vector.extract_strided_slice %483 {offsets = [2, 0], sizes = [8, 128], strides = [1, 1]} : vector<10x128xf32> to vector<8x128xf32>
    %489 = arith.truncf %488 : vector<8x128xf32> to vector<8x128xbf16>
    %490 = tpu.concatenate %485, %487, %489 in 1 : vector<8x128xbf16>, vector<8x128xbf16>, vector<8x128xbf16> -> vector<8x384xbf16>
    %c0_74 = arith.constant 0 : index
    %c0_75 = arith.constant 0 : index
    %491 = vector.load %arg10[%c0_74, %c0_75] : memref<384x128xbf16, #tpu.memory_space<vmem>>, vector<384x128xbf16>
    %cst_76 = arith.constant dense<0.000000e+00> : vector<8x128xf32>
    %492 = tpu.matmul %490, %491, %cst_76 {dimension_numbers = #tpu.dot_dimension_numbers<[1], [0], [0], [1], [0, 0, 1, 1], [], []>} : vector<8x384xbf16>, vector<384x128xbf16>, vector<8x128xf32> -> vector<8x128xf32>
    %cst_77 = arith.constant dense<0.000000e+00> : vector<128xf32>
    %493 = vector.multi_reduction <add>, %492, %cst_77 [0] : vector<8x128xf32> to vector<128xf32>
    %494 = vector.shape_cast %493 : vector<128xf32> to vector<1x128xf32>
    %495 = arith.mulf %492, %492 : vector<8x128xf32>
    %cst_78 = arith.constant dense<0.000000e+00> : vector<128xf32>
    %496 = vector.multi_reduction <add>, %495, %cst_78 [0] : vector<8x128xf32> to vector<128xf32>
    %497 = vector.shape_cast %496 : vector<128xf32> to vector<1x128xf32>
    %498 = vector.extract_strided_slice %494 {offsets = [0, 0], sizes = [1, 64], strides = [1, 1]} : vector<1x128xf32> to vector<1x64xf32>
    %499 = vector.extract_strided_slice %494 {offsets = [0, 64], sizes = [1, 64], strides = [1, 1]} : vector<1x128xf32> to vector<1x64xf32>
    %500 = arith.addf %498, %499 : vector<1x64xf32>
    %501 = vector.extract_strided_slice %497 {offsets = [0, 0], sizes = [1, 64], strides = [1, 1]} : vector<1x128xf32> to vector<1x64xf32>
    %502 = vector.extract_strided_slice %497 {offsets = [0, 64], sizes = [1, 64], strides = [1, 1]} : vector<1x128xf32> to vector<1x64xf32>
    %503 = arith.addf %501, %502 : vector<1x64xf32>
    %504 = vector.extract_strided_slice %500 {offsets = [0, 0], sizes = [1, 32], strides = [1, 1]} : vector<1x64xf32> to vector<1x32xf32>
    %505 = vector.extract_strided_slice %500 {offsets = [0, 32], sizes = [1, 32], strides = [1, 1]} : vector<1x64xf32> to vector<1x32xf32>
    %506 = arith.addf %504, %505 : vector<1x32xf32>
    %507 = vector.extract_strided_slice %503 {offsets = [0, 0], sizes = [1, 32], strides = [1, 1]} : vector<1x64xf32> to vector<1x32xf32>
    %508 = vector.extract_strided_slice %503 {offsets = [0, 32], sizes = [1, 32], strides = [1, 1]} : vector<1x64xf32> to vector<1x32xf32>
    %509 = arith.addf %507, %508 : vector<1x32xf32>
    %510 = vector.extract_strided_slice %506 {offsets = [0, 0], sizes = [1, 16], strides = [1, 1]} : vector<1x32xf32> to vector<1x16xf32>
    %511 = vector.extract_strided_slice %506 {offsets = [0, 16], sizes = [1, 16], strides = [1, 1]} : vector<1x32xf32> to vector<1x16xf32>
    %512 = arith.addf %510, %511 : vector<1x16xf32>
    %513 = vector.extract_strided_slice %509 {offsets = [0, 0], sizes = [1, 16], strides = [1, 1]} : vector<1x32xf32> to vector<1x16xf32>
    %514 = vector.extract_strided_slice %509 {offsets = [0, 16], sizes = [1, 16], strides = [1, 1]} : vector<1x32xf32> to vector<1x16xf32>
    %515 = arith.addf %513, %514 : vector<1x16xf32>
    %cst_79 = arith.constant 6.400000e+01 : f32
    %516 = vector.broadcast %cst_79 : f32 to vector<1x16xf32>
    %517 = arith.divf %512, %516 : vector<1x16xf32>
    %cst_80 = arith.constant 6.400000e+01 : f32
    %518 = vector.broadcast %cst_80 : f32 to vector<1x16xf32>
    %519 = arith.divf %515, %518 : vector<1x16xf32>
    %520 = arith.mulf %517, %517 : vector<1x16xf32>
    %521 = arith.subf %519, %520 : vector<1x16xf32>
    %cst_81 = arith.constant 0.000000e+00 : f32
    %522 = vector.broadcast %cst_81 : f32 to vector<1x16xf32>
    %523 = arith.maximumf %521, %522 : vector<1x16xf32>
    %cst_82 = arith.constant 9.99999974E-6 : f32
    %524 = vector.broadcast %cst_82 : f32 to vector<1x16xf32>
    %525 = arith.addf %523, %524 : vector<1x16xf32>
    %526 = math.rsqrt %525 : vector<1x16xf32>
    %527 = tpu.concatenate %517, %517 in 1 : vector<1x16xf32>, vector<1x16xf32> -> vector<1x32xf32>
    %528 = tpu.concatenate %526, %526 in 1 : vector<1x16xf32>, vector<1x16xf32> -> vector<1x32xf32>
    %529 = tpu.concatenate %527, %527 in 1 : vector<1x32xf32>, vector<1x32xf32> -> vector<1x64xf32>
    %530 = tpu.concatenate %528, %528 in 1 : vector<1x32xf32>, vector<1x32xf32> -> vector<1x64xf32>
    %531 = tpu.concatenate %529, %529 in 1 : vector<1x64xf32>, vector<1x64xf32> -> vector<1x128xf32>
    %532 = tpu.concatenate %530, %530 in 1 : vector<1x64xf32>, vector<1x64xf32> -> vector<1x128xf32>
    %533 = vector.broadcast %531 : vector<1x128xf32> to vector<8x128xf32>
    %534 = arith.subf %492, %533 : vector<8x128xf32>
    %535 = vector.broadcast %532 : vector<1x128xf32> to vector<8x128xf32>
    %536 = arith.mulf %534, %535 : vector<8x128xf32>
    %cst_83 = arith.constant 0.000000e+00 : f32
    %537 = vector.broadcast %cst_83 : f32 to vector<8x128xf32>
    %538 = arith.maximumf %536, %537 : vector<8x128xf32>
    %539 = vector.extract_strided_slice %538 {offsets = [0, 0], sizes = [1, 128], strides = [1, 1]} : vector<8x128xf32> to vector<1x128xf32>
    %540 = vector.extract_strided_slice %538 {offsets = [0, 0], sizes = [1, 128], strides = [1, 1]} : vector<8x128xf32> to vector<1x128xf32>
    %541 = vector.extract_strided_slice %538 {offsets = [0, 0], sizes = [1, 128], strides = [1, 1]} : vector<8x128xf32> to vector<1x128xf32>
    %542 = vector.extract_strided_slice %538 {offsets = [1, 0], sizes = [1, 128], strides = [1, 1]} : vector<8x128xf32> to vector<1x128xf32>
    %543 = vector.extract_strided_slice %538 {offsets = [1, 0], sizes = [1, 128], strides = [1, 1]} : vector<8x128xf32> to vector<1x128xf32>
    %544 = vector.extract_strided_slice %538 {offsets = [2, 0], sizes = [1, 128], strides = [1, 1]} : vector<8x128xf32> to vector<1x128xf32>
    %545 = vector.extract_strided_slice %538 {offsets = [2, 0], sizes = [1, 128], strides = [1, 1]} : vector<8x128xf32> to vector<1x128xf32>
    %546 = vector.extract_strided_slice %538 {offsets = [3, 0], sizes = [1, 128], strides = [1, 1]} : vector<8x128xf32> to vector<1x128xf32>
    %547 = vector.extract_strided_slice %538 {offsets = [3, 0], sizes = [1, 128], strides = [1, 1]} : vector<8x128xf32> to vector<1x128xf32>
    %548 = vector.extract_strided_slice %538 {offsets = [4, 0], sizes = [1, 128], strides = [1, 1]} : vector<8x128xf32> to vector<1x128xf32>
    %549 = vector.extract_strided_slice %538 {offsets = [4, 0], sizes = [1, 128], strides = [1, 1]} : vector<8x128xf32> to vector<1x128xf32>
    %550 = vector.extract_strided_slice %538 {offsets = [5, 0], sizes = [1, 128], strides = [1, 1]} : vector<8x128xf32> to vector<1x128xf32>
    %551 = vector.extract_strided_slice %538 {offsets = [5, 0], sizes = [1, 128], strides = [1, 1]} : vector<8x128xf32> to vector<1x128xf32>
    %552 = vector.extract_strided_slice %538 {offsets = [6, 0], sizes = [1, 128], strides = [1, 1]} : vector<8x128xf32> to vector<1x128xf32>
    %553 = vector.extract_strided_slice %538 {offsets = [6, 0], sizes = [1, 128], strides = [1, 1]} : vector<8x128xf32> to vector<1x128xf32>
    %554 = vector.extract_strided_slice %538 {offsets = [7, 0], sizes = [1, 128], strides = [1, 1]} : vector<8x128xf32> to vector<1x128xf32>
    %555 = vector.extract_strided_slice %538 {offsets = [7, 0], sizes = [1, 128], strides = [1, 1]} : vector<8x128xf32> to vector<1x128xf32>
    %556 = vector.extract_strided_slice %538 {offsets = [7, 0], sizes = [1, 128], strides = [1, 1]} : vector<8x128xf32> to vector<1x128xf32>
    %557 = tpu.concatenate %539, %540, %541, %542, %543, %544, %545, %546, %547, %548, %549, %550, %551, %552, %553, %554 in 0 : vector<1x128xf32>, vector<1x128xf32>, vector<1x128xf32>, vector<1x128xf32>, vector<1x128xf32>, vector<1x128xf32>, vector<1x128xf32>, vector<1x128xf32>, vector<1x128xf32>, vector<1x128xf32>, vector<1x128xf32>, vector<1x128xf32>, vector<1x128xf32>, vector<1x128xf32>, vector<1x128xf32>, vector<1x128xf32> -> vector<16x128xf32>
    %558 = tpu.concatenate %555, %556 in 0 : vector<1x128xf32>, vector<1x128xf32> -> vector<2x128xf32>
    %559 = tpu.concatenate %557, %558 in 0 : vector<16x128xf32>, vector<2x128xf32> -> vector<18x128xf32>
    %560 = vector.extract_strided_slice %559 {offsets = [0, 0], sizes = [16, 128], strides = [1, 1]} : vector<18x128xf32> to vector<16x128xf32>
    %561 = arith.truncf %560 : vector<16x128xf32> to vector<16x128xbf16>
    %562 = vector.extract_strided_slice %559 {offsets = [1, 0], sizes = [16, 128], strides = [1, 1]} : vector<18x128xf32> to vector<16x128xf32>
    %563 = arith.truncf %562 : vector<16x128xf32> to vector<16x128xbf16>
    %564 = vector.extract_strided_slice %559 {offsets = [2, 0], sizes = [16, 128], strides = [1, 1]} : vector<18x128xf32> to vector<16x128xf32>
    %565 = arith.truncf %564 : vector<16x128xf32> to vector<16x128xbf16>
    %566 = tpu.concatenate %561, %563, %565 in 1 : vector<16x128xbf16>, vector<16x128xbf16>, vector<16x128xbf16> -> vector<16x384xbf16>
    %c0_84 = arith.constant 0 : index
    %c0_85 = arith.constant 0 : index
    %567 = vector.load %arg11[%c0_84, %c0_85] : memref<384x128xbf16, #tpu.memory_space<vmem>>, vector<384x128xbf16>
    %cst_86 = arith.constant dense<0.000000e+00> : vector<16x128xf32>
    %568 = tpu.matmul %566, %567, %cst_86 {dimension_numbers = #tpu.dot_dimension_numbers<[1], [0], [0], [1], [0, 0, 1, 1], [], []>} : vector<16x384xbf16>, vector<384x128xbf16>, vector<16x128xf32> -> vector<16x128xf32>
    %569 = arith.truncf %568 : vector<16x128xf32> to vector<16x128xbf16>
    %570 = arith.truncf %1 : vector<16x64xf32> to vector<16x64xbf16>
    %571 = tpu.concatenate %569, %570 in 1 : vector<16x128xbf16>, vector<16x64xbf16> -> vector<16x192xbf16>
    %c0_87 = arith.constant 0 : index
    %c0_88 = arith.constant 0 : index
    %572 = vector.load %arg12[%c0_87, %c0_88] : memref<192x16xbf16, #tpu.memory_space<vmem>>, vector<192x16xbf16>
    %cst_89 = arith.constant dense<0.000000e+00> : vector<16x16xf32>
    %573 = tpu.matmul %571, %572, %cst_89 {dimension_numbers = #tpu.dot_dimension_numbers<[1], [0], [0], [1], [0, 0, 1, 1], [], []>} : vector<16x192xbf16>, vector<192x16xbf16>, vector<16x16xf32> -> vector<16x16xf32>
    %c0_90 = arith.constant 0 : index
    %c0_91 = arith.constant 0 : index
    %c0_92 = arith.constant 0 : index
    %574 = vector.load %arg13[%c0_90, %c0_91, %c0_92] : memref<1x16x16xf32, #tpu.memory_space<vmem>>, vector<1x16x16xf32>
    %575 = vector.shape_cast %574 : vector<1x16x16xf32> to vector<16x16xf32>
    %576 = vector.shape_cast %573 : vector<16x16xf32> to vector<1x16x16xf32>
    tpu.vector_store %arg13[%c0_90, %c0_91, %c0_92], %576 {strides = array<i32>} : memref<1x16x16xf32, #tpu.memory_space<vmem>>, vector<1x16x16xf32>,
    return
  }
  func.func @transform_0(%arg0: i32) -> (i32, i32, i32) {
    %c0_i32 = arith.constant 0 : i32
    %c0_i32_0 = arith.constant 0 : i32
    %c0_i32_1 = arith.constant 0 : i32
    return %arg0, %c0_i32, %c0_i32_0 : i32, i32, i32
  }
  func.func @transform_1(%arg0: i32) -> (i32, i32) {
    %c0_i32 = arith.constant 0 : i32
    %c0_i32_0 = arith.constant 0 : i32
    %c0_i32_1 = arith.constant 0 : i32
    return %c0_i32, %c0_i32_0 : i32, i32
  }
  func.func @transform_2(%arg0: i32) -> (i32, i32) {
    %c0_i32 = arith.constant 0 : i32
    %c0_i32_0 = arith.constant 0 : i32
    %c0_i32_1 = arith.constant 0 : i32
    return %c0_i32, %c0_i32_0 : i32, i32
  }
  func.func @transform_3(%arg0: i32) -> (i32, i32) {
    %c0_i32 = arith.constant 0 : i32
    %c0_i32_0 = arith.constant 0 : i32
    %c0_i32_1 = arith.constant 0 : i32
    return %c0_i32, %c0_i32_0 : i32, i32
  }
  func.func @transform_4(%arg0: i32) -> (i32, i32) {
    %c0_i32 = arith.constant 0 : i32
    %c0_i32_0 = arith.constant 0 : i32
    %c0_i32_1 = arith.constant 0 : i32
    return %c0_i32, %c0_i32_0 : i32, i32
  }
  func.func @transform_5(%arg0: i32) -> (i32, i32) {
    %c0_i32 = arith.constant 0 : i32
    %c0_i32_0 = arith.constant 0 : i32
    %c0_i32_1 = arith.constant 0 : i32
    return %c0_i32, %c0_i32_0 : i32, i32
  }
  func.func @transform_6(%arg0: i32) -> (i32, i32) {
    %c0_i32 = arith.constant 0 : i32
    %c0_i32_0 = arith.constant 0 : i32
    %c0_i32_1 = arith.constant 0 : i32
    return %c0_i32, %c0_i32_0 : i32, i32
  }
  func.func @transform_7(%arg0: i32) -> (i32, i32) {
    %c0_i32 = arith.constant 0 : i32
    %c0_i32_0 = arith.constant 0 : i32
    %c0_i32_1 = arith.constant 0 : i32
    return %c0_i32, %c0_i32_0 : i32, i32
  }
  func.func @transform_8(%arg0: i32) -> (i32, i32) {
    %c0_i32 = arith.constant 0 : i32
    %c0_i32_0 = arith.constant 0 : i32
    %c0_i32_1 = arith.constant 0 : i32
    return %c0_i32, %c0_i32_0 : i32, i32
  }
  func.func @transform_9(%arg0: i32) -> (i32, i32) {
    %c0_i32 = arith.constant 0 : i32
    %c0_i32_0 = arith.constant 0 : i32
    %c0_i32_1 = arith.constant 0 : i32
    return %c0_i32, %c0_i32_0 : i32, i32
  }
  func.func @transform_10(%arg0: i32) -> (i32, i32) {
    %c0_i32 = arith.constant 0 : i32
    %c0_i32_0 = arith.constant 0 : i32
    %c0_i32_1 = arith.constant 0 : i32
    return %c0_i32, %c0_i32_0 : i32, i32
  }
  func.func @transform_11(%arg0: i32) -> (i32, i32) {
    %c0_i32 = arith.constant 0 : i32
    %c0_i32_0 = arith.constant 0 : i32
    %c0_i32_1 = arith.constant 0 : i32
    return %c0_i32, %c0_i32_0 : i32, i32
  }
  func.func @transform_12(%arg0: i32) -> (i32, i32, i32) {
    %c0_i32 = arith.constant 0 : i32
    %c0_i32_0 = arith.constant 0 : i32
    %c0_i32_1 = arith.constant 0 : i32
    return %arg0, %c0_i32, %c0_i32_0 : i32, i32, i32
  }
}

</mosaic_0001>

<bundles_post_ra>
// kernel: unet_forward.1
= control target key start
LH: loop header
LB: loop body
LE: loop exit
PB: predicated region body
PF: predicated region fallthrough
CT: control target
= control target key end

     0   :  { %s7130_s0 = inlined_call_operand.vmem [shape: f32[2,16,64], index: 0, kind: input, shape index: {}]   ;;  %s7131_s1 = inlined_call_operand.vmem [shape: bf16[192,128], index: 1, kind: input, shape index: {}]   ;;  %s7132_s2 = inlined_call_operand.hbm [shape: bf16[384,128], index: 2, kind: input, shape index: {}]   ;;  %s7133_s3 = inlined_call_operand.hbm [shape: bf16[360,128], index: 3, kind: input, shape index: {}]   ;;  %s7134_s4 = inlined_call_operand.hbm [shape: bf16[384,128], index: 4, kind: input, shape index: {}]   ;;  %s7135_s5 = inlined_call_operand.hbm [shape: bf16[336,128], index: 5, kind: input, shape index: {}]   ;;  %s7136_s6 = inlined_call_operand.hbm [shape: bf16[384,128], index: 6, kind: input, shape index: {}]   ;;  %s7137_s7 = inlined_call_operand.hbm [shape: bf16[384,128], index: 7, kind: input, shape index: {}]   ;;  %s7138_s8 = inlined_call_operand.vmem [shape: bf16[768,128], index: 8, kind: input, shape index: {}]   ;;  %s7139_s9 = inlined_call_operand.hbm [shape: bf16[384,128], index: 9, kind: input, shape index: {}]   ;;  %s7140_s10 = inlined_call_operand.hbm [shape: bf16[384,128], index: 10, kind: input, shape index: {}]   ;;  %s7141_s11 = inlined_call_operand.vmem [shape: bf16[192,16], index: 11, kind: input, shape index: {}]   ;;  %s7142_s12 = inlined_call_operand.hbm [shape: f32[2,16,16], index: 12, kind: output, shape index: {}]  }
   0x1   :  { %7149 = sst [smem:[#allocation28_spill]] %s7133_s3 }
   0x2   :  { %7150 = sst [smem:[#allocation29_spill]] %s7135_s5 }
   0x3   :  { %17 = vsyncpa [#allocation3], 0 }
   0x4   :  { %18 = vsyncpa [#allocation6], 0 }
   0x5   :  { %19 = vsyncpa [#allocation9], 0 }
   0x6   :  { %20 = vsyncpa [#allocation12], 0 }
   0x7   :  { %21 = vsyncpa [#allocation15], 0 }
   0x8   :  { %22 = vsyncpa [#allocation4], 0 }
   0x9   :  { %24 = vsyncpa [#allocation4 + $0x1], 0  ;;  %s6396_s21 = smov 0   ;;  %s6398_s22 = smov 0  }
   0xa   :  { %s6400_s23 = smov 0   ;;  %s6402_s24 = smov 0  }
   0xb LB: > { %7151 = sst [smem:[#allocation23_spill]] %s6296_s21  ;;  %s6417_s25 = sadd.s32 4294967295, %s6308_s24   ;;  %s6308_s24 = sphi %s6402_s24, %s7165_s24   ;;  %s6304_s23 = sphi %s6400_s23, %s7167_s23   ;;  %s6300_s22 = sphi %s6398_s22, %s7169_s22   ;;  %s6296_s21 = sphi %s6396_s21, %s7168_s21  }
   0xc   : > { %7152 = sst [smem:[#allocation24_spill]] %s6304_s23  ;;  %s4500_s26 = sadd.s32 4294967294, %s6308_s24  }
   0xd   : > { %s6421_s27 = sadd.s32 1, %s6308_s24   ;;  %s294_s28 = sadd.s32 1, %s6304_s23 }
   0xe   : > { %7153 = sst [smem:[#allocation25_spill]] %s6421_s27  ;;  %s291_s29 = ssub.s32 %s6308_s24, %s6421_s27 }
   0xf   : > { %p304_p0 = scmp.ne.s32.totalorder %s6304_s23, %s6300_s22  ;;  %p292_p1 = scmp.eq.s32.totalorder %s291_s29, 0 }
  0x10   : > { %p305_p2 = scmp.eq.s32.totalorder %s6417_s25, 1  ;;  %p310_p3 = scmp.ne.s32.totalorder %s6300_s22, %s6296_s21 }
  0x11   : > { %p311_p4 = scmp.eq.s32.totalorder %s4500_s26, 1  ;;  %p4501_p7 = scmp.ge.s32.totalorder %s6308_s24, 1 }
  0x12   : > { %s6432_s30 = scalar_select %p292_p1, %s6304_s23, %s294_s28  }
  0x13   : > { %p6434_p5 = por %p305_p2, %p304_p0  ;;  %p6438_p6 = por %p311_p4, %p310_p3 }
  0x14   : > { %7154 = sst [smem:[#allocation26_spill]] %s6432_s30  ;;  %p318_p8 = scmp.lt.s32.totalorder %s6308_s24, 3 }
  0x15   : > { %s7156_s14 = scalar_select %p6438_p6, 1, 0 }
  0x16   : > { %p5892_p9 = scmp.eq.s32.totalorder %s6417_s25, 0  ;;  %p6445_p10 = pnand %p4501_p7, %p318_p8 }
  0x17   : > { %7157 = sst [smem:[#allocation27_spill]] %s7156_s14  ;;  %s6310_s29 = smov [#allocation5]  }
  0x18   : > { %s7159_s3 = sld [smem:[#allocation28_spill]]  ;;  %p5863_p11 = pneg %p6445_p10 }
  0x19   : > { %s7160_s5 = sld [smem:[#allocation29_spill]]  ;;  %s348_s30 = sshll.u32 %s6310_s29, 4  ;;  %s349_s30 = int_to_ptr.vmem [resolvable:$true] %s348_s30 }
  0x1a   : > { %p6459_p12 = pnand %p5892_p9, %p5863_p11  ;;  %s6311_s16 = smov 64  }
  0x1b   : > { %s6312_s17 = smov 4   ;;  %s6313_s19 = smov [#allocation8]  }
  0x1c   : > { %s376_s20 = sshll.u32 %s6313_s19, 4  ;;  %s402_s23 = sshll.u32 %s7137_s7, 4  ;;  %s377_s20 = int_to_ptr.vmem [resolvable:$true] %s376_s20  ;;  %s403_s23 = int_to_ptr.hbm [resolvable:$true] %s402_s23 }
  0x1d   : > { %s332_s14 = sshll.u32 %s7132_s2, 4  ;;  %s6314_s21 = smov [#allocation11]   ;;  %s333_s14 = int_to_ptr.hbm [resolvable:$true] %s332_s14 }
  0x1e   : > { %s346_s18 = sshll.u32 %s7159_s3, 4  ;;  %s6315_s3 = smov [#allocation2]   ;;  %s347_s18 = int_to_ptr.hbm [resolvable:$true] %s346_s18 }
  0x1f   : > { %s374_s26 = sshll.u32 %s7160_s5, 4  ;;  %s334_s5 = sshll.u32 %s6315_s3, 4  ;;  %s375_s26 = int_to_ptr.hbm [resolvable:$true] %s374_s26  ;;  %s335_s5 = int_to_ptr.vmem [resolvable:$true] %s334_s5 }
  0x20   : > { %5869 = dma.hbm_to_vmem [thread:$0]  (!%p6459_p12), %s347_s18, 2880, %s349_s30, [#allocation6], %s6311_s16, %s6311_s16, %s6312_s17  }
  0x21   : > { %5875 = dma.hbm_to_vmem [thread:$0]  (!%p6459_p12), %s375_s26, 2688, %s377_s20, [#allocation9], %s6311_s16, %s6311_s16, %s6312_s17  }
  0x22   : > { %s404_s30 = sshll.u32 %s6314_s21, 4  ;;  %s360_s26 = sshll.u32 %s7134_s4, 4  ;;  %s405_s30 = int_to_ptr.vmem [resolvable:$true] %s404_s30  ;;  %s361_s26 = int_to_ptr.hbm [resolvable:$true] %s360_s26 }
  0x23   : > { %5881 = dma.hbm_to_vmem [thread:$0]  (!%p6459_p12), %s403_s23, 3072, %s405_s30, [#allocation12], %s6311_s16, %s6311_s16, %s6312_s17  }
  0x24   : > { %5866 = dma.hbm_to_vmem [thread:$0]  (!%p6459_p12), %s333_s14, 3072, %s335_s5, [#allocation3], %s6311_s16, %s6311_s16, %s6312_s17  }
  0x25   : > { %s388_s20 = sshll.u32 %s7136_s6, 4  ;;  %s6316_s29 = smov [#allocation7]   ;;  %s389_s20 = int_to_ptr.hbm [resolvable:$true] %s388_s20 }
  0x26   : > { %s362_s23 = sshll.u32 %s6316_s29, 4  ;;  %s6317_s30 = smov [#allocation10]   ;;  %s363_s23 = int_to_ptr.vmem [resolvable:$true] %s362_s23 }
  0x27   : > { %5872 = dma.hbm_to_vmem [thread:$0]  (!%p6459_p12), %s361_s26, 3072, %s363_s23, [#allocation6], %s6311_s16, %s6311_s16, %s6312_s17  }
  0x28   : > { %s390_s3 = sshll.u32 %s6317_s30, 4  ;;  %s419_s14 = sshll.u32 %s7139_s9, 4  ;;  %s391_s3 = int_to_ptr.vmem [resolvable:$true] %s390_s3  ;;  %s420_s14 = int_to_ptr.hbm [resolvable:$true] %s419_s14 }
  0x29   : > { %5878 = dma.hbm_to_vmem [thread:$0]  (!%p6459_p12), %s389_s20, 3072, %s391_s3, [#allocation9], %s6311_s16, %s6311_s16, %s6312_s17  }
  0x2a   : > { %s433_s27 = sshll.u32 %s7140_s10, 4  ;;  %s6318_s29 = smov [#allocation13]   ;;  %s434_s27 = int_to_ptr.hbm [resolvable:$true] %s433_s27 }
  0x2b   : > { %s421_s26 = sshll.u32 %s6318_s29, 4  ;;  %s6319_s23 = smov [#allocation14]   ;;  %s422_s26 = int_to_ptr.vmem [resolvable:$true] %s421_s26 }
  0x2c   : > { %5884 = dma.hbm_to_vmem [thread:$0]  (!%p6459_p12), %s420_s14, 3072, %s422_s26, [#allocation12], %s6311_s16, %s6311_s16, %s6312_s17  }
  0x2d   : > { %s435_s30 = sshll.u32 %s6319_s23, 4  ;;  %462 = sbr.rel (%p6445_p10) target bundleno = 7967 (0x1f1f), region = 68  ;;  %s436_s30 = int_to_ptr.vmem [resolvable:$true] %s435_s30 }
  0x2e   : > { %5887 = dma.hbm_to_vmem [thread:$0]  (!%p6459_p12), %s434_s27, 3072, %s436_s30, [#allocation15], %s6311_s16, %s6311_s16, %s6312_s17  }
  0x32   : > { %6271 = dma.done.wait (%p5892_p9), [#allocation3], 3072  }
  0x33   : > { %6273 = vsyncadd (%p5892_p9), [#allocation3], 4294964224 }
  0x34   : > { %6275 = dma.done.wait (%p5892_p9), [#allocation6], 5952  }
  0x35   : > { %6277 = vsyncadd (%p5892_p9), [#allocation6], 4294961344 }
  0x36   : > { %6279 = dma.done.wait (%p5892_p9), [#allocation9], 5760  }
  0x37   : > { %6281 = vsyncadd (%p5892_p9), [#allocation9], 4294961536 }
  0x38   : > { %6283 = dma.done.wait (%p5892_p9), [#allocation12], 6144  }
  0x39   : > { %6285 = vsyncadd (%p5892_p9), [#allocation12], 4294961152 }
  0x3a   : > { %6287 = dma.done.wait (%p5892_p9), [#allocation15], 3072  }
  0x3b   : > { %6289 = vsyncadd (%p5892_p9), [#allocation15], 4294964224  ;;  %p540_p13 = scmp.lt.s32.totalorder %s6417_s25, 1  ;;  %vm552_vm0 = vcmask 1040384   ;;  %v5576_v2 = vld [vmem:[%s7131_s1 + $0x38] sm:$0xff]  ;;  %v5575_v7 = vld [vmem:[%s7131_s1 + $0x30] sm:$0xff] }
  0x3c   : > { %696 = vmatpush.bf16.msra.mxu0 %v5576_v2  ;;  %v5580_v8 = vld [vmem:[%s7131_s1 + $0x58] sm:$0xff]  ;;  %v5579_v15 = vld [vmem:[%s7131_s1 + $0x50] sm:$0xff]  ;;  %v5574_v19 = vld [vmem:[%s7131_s1 + $0x28] sm:$0xff]  ;;  %vm574_vm1 = vsmask.f32 7424  ;;  %vm589_vm2 = vcmask 1046528  }
  0x3d   : > { %s541_s15 = scalar_select %p540_p13, %s6417_s25, 1  ;;  %714 = vmatpush.bf16.msra.mxu1 %v5580_v8  ;;  %v5578_v22 = vld [vmem:[%s7131_s1 + $0x48] sm:$0xff]  ;;  %v5573_v26 = vld [vmem:[%s7131_s1 + $0x20] sm:$0xff]  ;;  %v5572_v33 = vld [vmem:[%s7131_s1 + $0x18] sm:$0xff]  ;;  %vm593_vm3 = vcmask 523264   ;;  %vm807_vm8 = vcmask 64512  }
  0x3e   : > { %v5577_v29 = vld [vmem:[%s7131_s1 + $0x40] sm:$0xff]  ;;  %s6320_s14 = smov 64   ;;  %v5571_v36 = vld [vmem:[%s7131_s1 + $0x10] sm:$0xff]  ;;  %v5570_v37 = vld [vmem:[%s7131_s1 + $0x8] sm:$0xff]  ;;  %s6321_s30 = smov 96   ;;  %vm818_vm9 = vcmask 130048  }
  0x3f   : > { %s5568_s28 = sshll.u32 %s541_s15, 4  ;;  %v5569_v38 = vld [vmem:[%s7131_s1] sm:$0xff]  ;;  %s6322_s15 = smov 112   ;;  %vm829_vm10 = vcmask 261120   ;;  %vm1276_vm14 = vcmask 1041408   ;;  %vm1278_vm15 = vcmask 1042432  }
  0x40   : > { %s6548_s20 = scalar_lea.vmem %s7130_s0, %s5568_s28  ;;  %697 = vmatpush.bf16.msra.mxu0 %v5575_v7  ;;  %s6323_s28 = smov 120  }
  0x41   : > { %v546_v0 = vld [vmem:[%s6548_s20] sm:$0xff]  ;;  %v547_v1 = vld [vmem:[%s6548_s20 + $0x8] sm:$0xff]  ;;  %715 = vmatpush.bf16.msra.mxu1 %v5579_v15  ;;  %s7148_s16 = smov 8   ;;  %s6326_s17 = smov 16  }
  0x42   : > { %v549_v3 = vrot.slane %v546_v0, 1  ;;  %v553_v4 = vrot.slane %v546_v0, 7  ;;  %v554_v5 = vrot.slane %v547_v1, 7  ;;  %v559_v6 = vrot.slane %v547_v1, 5  ;;  %s6327_s3 = smov 32   ;;  %s537_s27 = sand.u32 1, %s6300_s22  }
  0x43   : > { %s4520_s29 = sshll.u32 %s537_s27, 4  ;;  %s5828_s26 = sshll.u32 %s6417_s25, 4 }
  0x44   : > { %v555_v9 = vsel %vm552_vm0, %v553_v4, %v554_v5  ;;  %v561_v10 = vsel %vm552_vm0, %v549_v3, %v553_v4  ;;  %v562_v11 = vsel %vm552_vm0, %v554_v5, %v559_v6  ;;  %698 = vmatpush.bf16.msra.mxu0 %v5574_v19  ;;  %s539_s23 = scalar_lea.vmem [#allocation16], %s4520_s29  ;;  %s4355_s19 = scalar_lea.hbm %s7142_s12, %s5828_s26 }
  0x45   : > { %v563_v12 = vpack.c.bf16 %v561_v10, %v561_v10  ;;  %v564_v13 = vpack.c.bf16 %v555_v9, %v555_v9  ;;  %v565_v14 = vpack.c.bf16 %v562_v11, %v562_v11  ;;  %716 = vmatpush.bf16.msra.mxu1 %v5578_v22  ;;  %v6324_v11 = vmov 256.0   ;;  %s6246_s5 = scalar_lea.hbm %s7142_s12, 32 }
  0x46   : > { %5962 = vrcp.f32 %v6324_v11 }
  0x47   : > { %v568_v16 = vunpack.c.l.b16 %v563_v12  ;;  %v569_v17 = vunpack.c.l.b16 %v564_v13  ;;  %v572_v18 = vunpack.c.l.b16 %v565_v14 }
  0x48   : > { %699 = vmatpush.bf16.msra.mxu0 %v5573_v26 }
  0x49   : > { %v570_v20 = vpack.c.b16 %v569_v17, %v568_v16  ;;  %v573_v21 = vpack.c.b16 %v572_v18, %v572_v18  ;;  %717 = vmatpush.bf16.msra.mxu1 %v5577_v29 }
  0x4b   : > { %v576_v23 = vshrl.u32 %v570_v20, 16  ;;  %v578_v24 = vshll.u32 %v570_v20, 16  ;;  %v583_v25 = vshll.u32 %v573_v21, 16  ;;  %v590_v30 = vrot.slane %v570_v20, 1 }
  0x4c   : > { %v591_v31 = vrot.slane %v573_v21, 1  ;;  %700 = vmatpush.bf16.msra.mxu0 %v5572_v33  ;;  %v5963_v12 = vpop.eup %5962 }
  0x4d   : > { %v580_v27 = vrot.slane %v578_v24, 1  ;;  %v585_v28 = vrot.slane %v583_v25, 1  ;;  %v781_v13 = vmul.f32 256.0, %v5963_v12  ;;  %vm785_vm4 = vweird.f32 %v5963_v12 }
  0x4e   : > { %v592_v35 = vsel %vm589_vm2, %v590_v30, %v591_v31 }
  0x4f   : > { %v581_v32 = vor.u32 %v580_v27, %v576_v23  ;;  %4571 = vmatmul.msk.bf16.vlgmr.msra.gmra.mxu1 %vm593_vm3, %v592_v35  ;;  %v782_v14 = vsub.f32 1.0, %v781_v13 }
  0x50   : > { %701 = vmatpush.bf16.msra.mxu0 %v5571_v36 }
  0x51   : > { %v586_v34 = vsel %vm574_vm1, %v581_v32, %v585_v28  ;;  %v783_v15 = vmul.f32 %v5963_v12, %v782_v14 }
  0x52   : > { %587 = vrot.lane.b32.xlu0 %v586_v34, %s6320_s14 }
  0x53   : > { %v784_v16 = vadd.f32 %v5963_v12, %v783_v15 }
  0x54   : > { %702 = vmatpush.bf16.msra.mxu0 %v5570_v37 }
  0x55   : > { %v6614_v21 = vsel %vm785_vm4, %v5963_v12, %v784_v16  ;;  %vm1280_vm4 = vcmask 1043456  }
  0x58   : > { %703 = vmatpush.bf16.msra.mxu0 %v5569_v38 }
  0xc4   : > { %v588_v39 = vpop.permute.xlu0 %587 }
  0xc5   : > { %v595_v40 = vsel %vm593_vm3, %v570_v20, %v588_v39 }
  0xc6   : > { %704 = vmatmul.bf16.vlgmr.msra.gmra.mxu0 %v595_v40 }
  0xcc   : > { %v719_v41 = vpop.f32.mrf.mxu1 }
  0xd4   : > { %v721_v44 = vpop.f32.mrf.mxu1 }
 0x143   : > { %v705_v42 = vpop.f32.mrf.mxu0 }
 0x144   : > { %v6596_v43 = vadd.f32 %v719_v41, %v705_v42 }
 0x146   : > { %v731_v47 = vmul.f32 %v6596_v43, %v6596_v43 }
 0x14b   : > { %v707_v45 = vpop.f32.mrf.mxu0 }
 0x14c   : > { %v6598_v46 = vadd.f32 %v721_v44, %v707_v45 }
 0x14e   : > { %v724_v48 = vadd.f32 %v6598_v46, %v6596_v43  ;;  %v732_v49 = vmul.f32 %v6598_v46, %v6598_v46 }
 0x150   : > { %v725_v50 = vrot.slane %v724_v48, 4  ;;  %v733_v51 = vadd.f32 %v732_v49, %v731_v47  ;;  %v5588_v49 = vld [vmem:[#allocation2 + $0x38] sm:$0xff] }
 0x151   : > { %1089 = vmatpush.bf16.msra.mxu2 %v5588_v49 }
 0x152   : > { %v726_v52 = vadd.f32 %v725_v50, %v724_v48  ;;  %v734_v53 = vrot.slane %v733_v51, 4  ;;  %v5604_v50 = vld [vmem:[#allocation2 + $0xb8] sm:$0xff] }
 0x153   : > { %1117 = vmatpush.bf16.msrb.mxu1 %v5604_v50 }
 0x154   : > { %v727_v54 = vrot.slane %v726_v52, 2  ;;  %v735_v55 = vadd.f32 %v734_v53, %v733_v51  ;;  %v5596_v51 = vld [vmem:[#allocation2 + $0x78] sm:$0xff]  ;;  %v5603_v53 = vld [vmem:[#allocation2 + $0xb0] sm:$0xff] }
 0x155   : > { %1103 = vmatpush.bf16.msra.mxu3 %v5596_v51 }
 0x156   : > { %v728_v56 = vadd.f32 %v727_v54, %v726_v52  ;;  %v736_v57 = vrot.slane %v735_v55, 2  ;;  %v5587_v52 = vld [vmem:[#allocation2 + $0x30] sm:$0xff] }
 0x157   : > { %v5595_v54 = vld [vmem:[#allocation2 + $0x70] sm:$0xff]  ;;  %1090 = vmatpush.bf16.msra.mxu2 %v5587_v52  ;;  %1118 = vmatpush.bf16.msrb.mxu1 %v5603_v53 }
 0x158   : > { %v729_v58 = vrot.slane %v728_v56, 1  ;;  %v737_v59 = vadd.f32 %v736_v57, %v735_v55  ;;  %v5586_v55 = vld [vmem:[#allocation2 + $0x28] sm:$0xff]  ;;  %v5585_v57 = vld [vmem:[#allocation2 + $0x20] sm:$0xff] }
 0x159   : > { %1104 = vmatpush.bf16.msra.mxu3 %v5595_v54 }
 0x15a   : > { %v730_v60 = vadd.f32 %v729_v58, %v728_v56  ;;  %v738_v61 = vrot.slane %v737_v59, 1  ;;  %v5602_v56 = vld [vmem:[#allocation2 + $0xa8] sm:$0xff] }
 0x15b   : > { %1091 = vmatpush.bf16.msra.mxu2 %v5586_v55  ;;  %1119 = vmatpush.bf16.msrb.mxu1 %v5602_v56  ;;  %v5594_v58 = vld [vmem:[#allocation2 + $0x68] sm:$0xff] }
 0x15c   : > { %741 = vrot.lane.b32.xlu0 %v730_v60, %s6320_s14  ;;  %v739_v62 = vadd.f32 %v738_v61, %v737_v59  ;;  %v5601_v59 = vld [vmem:[#allocation2 + $0xa0] sm:$0xff] }
 0x15d   : > { %1105 = vmatpush.bf16.msra.mxu3 %v5594_v58  ;;  %v5593_v61 = vld [vmem:[#allocation2 + $0x60] sm:$0xff] }
 0x15e   : > { %746 = vrot.lane.b32.xlu1 %v739_v62, %s6320_s14 }
 0x15f   : > { %1092 = vmatpush.bf16.msra.mxu2 %v5585_v57  ;;  %1120 = vmatpush.bf16.msrb.mxu1 %v5601_v59 }
 0x161   : > { %1106 = vmatpush.bf16.msra.mxu3 %v5593_v61 }
 0x1ce   : > { %v742_v63 = vpop.permute.xlu0 %741 }
 0x1cf   : > { %v744_v0 = vadd.f32 %v742_v63, %v730_v60  ;;  %v5584_v60 = vld [vmem:[#allocation2 + $0x18] sm:$0xff]  ;;  %v5583_v63 = vld [vmem:[#allocation2 + $0x10] sm:$0xff] }
 0x1d0   : > { %v747_v1 = vpop.permute.xlu1 %746  ;;  %1093 = vmatpush.bf16.msra.mxu2 %v5584_v60 }
 0x1d1   : > { %v749_v2 = vadd.f32 %v747_v1, %v739_v62  ;;  %751 = vrot.lane.b32.xlu1 %v744_v0, %s6321_s30  ;;  %v5600_v62 = vld [vmem:[#allocation2 + $0x98] sm:$0xff]  ;;  %v5599_v1 = vld [vmem:[#allocation2 + $0x90] sm:$0xff] }
 0x1d2   : > { %1121 = vmatpush.bf16.msrb.mxu1 %v5600_v62 }
 0x1d3   : > { %756 = vrot.lane.b32.xlu2 %v749_v2, %s6321_s30 }
 0x1d4   : > { %1094 = vmatpush.bf16.msra.mxu2 %v5583_v63 }
 0x1d6   : > { %1122 = vmatpush.bf16.msrb.mxu1 %v5599_v1 }
 0x22d   : > { %v757_v3 = vpop.permute.xlu2 %756 }
 0x22e   : > { %v759_v4 = vadd.f32 %v757_v3, %v749_v2  ;;  %v5582_v2 = vld [vmem:[#allocation2 + $0x8] sm:$0xff]  ;;  %v5591_v3 = vld [vmem:[#allocation2 + $0x50] sm:$0xff] }
 0x22f   : > { %1095 = vmatpush.bf16.msra.mxu2 %v5582_v2 }
 0x230   : > { %766 = vrot.lane.b32.xlu0 %v759_v4, %s6322_s15 }
 0x243   : > { %v752_v5 = vpop.permute.xlu1 %751 }
 0x244   : > { %v754_v6 = vadd.f32 %v752_v5, %v744_v0  ;;  %v5592_v0 = vld [vmem:[#allocation2 + $0x58] sm:$0xff]  ;;  %v5581_v5 = vld [vmem:[#allocation2] sm:$0xff] }
 0x245   : > { %1107 = vmatpush.bf16.msra.mxu3 %v5592_v0  ;;  %1096 = vmatpush.bf16.msra.mxu2 %v5581_v5 }
 0x246   : > { %761 = vrot.lane.b32.xlu2 %v754_v6, %s6322_s15 }
 0x249   : > { %1108 = vmatpush.bf16.msra.mxu3 %v5591_v3 }
 0x2a0   : > { %v762_v7 = vpop.permute.xlu2 %761 }
 0x2a1   : > { %v764_v8 = vadd.f32 %v762_v7, %v754_v6  ;;  %v5590_v6 = vld [vmem:[#allocation2 + $0x48] sm:$0xff]  ;;  %v5597_v7 = vld [vmem:[#allocation2 + $0x80] sm:$0xff] }
 0x2a2   : > { %v767_v9 = vpop.permute.xlu0 %766  ;;  %1109 = vmatpush.bf16.msra.mxu3 %v5590_v6 }
 0x2a3   : > { %v769_v10 = vadd.f32 %v767_v9, %v759_v4  ;;  %771 = vrot.lane.b32.xlu1 %v764_v8, %s6323_s28  ;;  %v5598_v4 = vld [vmem:[#allocation2 + $0x88] sm:$0xff] }
 0x2a4   : > { %1123 = vmatpush.bf16.msrb.mxu1 %v5598_v4 }
 0x2a5   : > { %776 = vrot.lane.b32.xlu2 %v769_v10, %s6323_s28 }
 0x2a8   : > { %1124 = vmatpush.bf16.msrb.mxu1 %v5597_v7 }
 0x2ff   : > { %v777_v17 = vpop.permute.xlu2 %776 }
 0x300   : > { %v779_v19 = vadd.f32 %v777_v17, %v769_v10 }
 0x302   : > { %v788_v23 = vmul.f32 %v6614_v21, %v779_v19 }
 0x315   : > { %v772_v18 = vpop.permute.xlu1 %771 }
 0x316   : > { %v774_v20 = vadd.f32 %v772_v18, %v764_v8  ;;  %v5589_v8 = vld [vmem:[#allocation2 + $0x40] sm:$0xff] }
 0x317   : > { %1110 = vmatpush.bf16.msra.mxu3 %v5589_v8 }
 0x318   : > { %v787_v22 = vmul.f32 %v6614_v21, %v774_v20 }
 0x31a   : > { %v789_v24 = vmul.f32 %v787_v22, %v787_v22  ;;  %804 = vrot.lane.b32.xlu0 %v787_v22, %s7148_s16 }
 0x31c   : > { %v790_v25 = vsub.f32 %v788_v23, %v789_v24 }
 0x31e   : > { %v791_v26 = vmax.f32 %v790_v25, 0.0 }
 0x320   : > { %v792_v27 = vadd.f32 1e-05, %v791_v26 }
 0x322   : > { %5964 = vrsqrt.f32 %v792_v27  ;;  %vm799_vm6 = vweird.f32 %v792_v27 }
 0x328   : > { %v5965_v28 = vpop.eup %5964 }
 0x329   : > { %v794_v29 = vmul.f32 %v5965_v28, %v792_v27  ;;  %vm800_vm5 = vweird.f32 %v5965_v28 }
 0x32a   : > { %vm801_vm7 = vmor %vm799_vm6, %vm800_vm5  ;;  %vm1282_vm5 = vcmask 1044480   ;;  %vm1284_vm6 = vcmask 1045504  }
 0x32b   : > { %v795_v30 = vmul.f32 %v5965_v28, %v794_v29 }
 0x32d   : > { %v796_v31 = vmul.f32 0.5, %v795_v30 }
 0x32f   : > { %v797_v32 = vsub.f32 1.5, %v796_v31 }
 0x331   : > { %v798_v33 = vmul.f32 %v5965_v28, %v797_v32 }
 0x333   : > { %v802_v34 = vsel %vm801_vm7, %v5965_v28, %v798_v33  ;;  %vm1510_vm7 = vcmask 850944  }
 0x334   : > { %810 = vrot.lane.b32.xlu1 %v802_v34, %s7148_s16 }
 0x38c   : > { %v805_v35 = vpop.permute.xlu0 %804 }
 0x38d   : > { %v808_v36 = vsel %vm807_vm8, %v787_v22, %v805_v35 }
 0x38e   : > { %815 = vrot.lane.b32.xlu2 %v808_v36, %s6326_s17 }
 0x3a6   : > { %v811_v37 = vpop.permute.xlu1 %810 }
 0x3a7   : > { %v813_v38 = vsel %vm807_vm8, %v802_v34, %v811_v37 }
 0x3a8   : > { %821 = vrot.lane.b32.xlu0 %v813_v38, %s6326_s17 }
 0x3e8   : > { %v816_v39 = vpop.permute.xlu2 %815 }
 0x3e9   : > { %v819_v40 = vsel %vm818_vm9, %v808_v36, %v816_v39 }
 0x3ea   : > { %826 = vrot.lane.b32.xlu1 %v819_v40, %s6327_s3 }
 0x41a   : > { %v822_v41 = vpop.permute.xlu0 %821 }
 0x41b   : > { %v824_v42 = vsel %vm818_vm9, %v813_v38, %v822_v41 }
 0x41c   : > { %832 = vrot.lane.b32.xlu2 %v824_v42, %s6327_s3 }
 0x45c   : > { %v827_v44 = vpop.permute.xlu1 %826 }
 0x45d   : > { %v830_v45 = vsel %vm829_vm10, %v819_v40, %v827_v44 }
 0x45e   : > { %837 = vrot.lane.b32.xlu0 %v830_v45, %s6320_s14 }
 0x476   : > { %v833_v47 = vpop.permute.xlu2 %832 }
 0x477   : > { %v835_v48 = vsel %vm829_vm10, %v824_v42, %v833_v47 }
 0x478   : > { %842 = vrot.lane.b32.xlu1 %v835_v48, %s6320_s14 }
 0x4d0   : > { %v838_v9 = vpop.permute.xlu0 %837 }
 0x4d1   : > { %v840_v10 = vsel %vm593_vm3, %v830_v45, %v838_v9 }
 0x4d2   : > { %v846_v11 = vperm.slane %v840_v10, 0 }
 0x4d4   : > { %v847_v14 = vsub.f32 %v6596_v43, %v846_v11  ;;  %v848_v15 = vsub.f32 %v6598_v46, %v846_v11 }
 0x4ea   : > { %v843_v12 = vpop.permute.xlu1 %842 }
 0x4eb   : > { %v845_v13 = vsel %vm593_vm3, %v835_v48, %v843_v12 }
 0x4ec   : > { %v849_v16 = vperm.slane %v845_v13, 0 }
 0x4ee   : > { %v850_v17 = vmul.f32 %v849_v16, %v847_v14  ;;  %v851_v18 = vmul.f32 %v849_v16, %v848_v15 }
 0x4f0   : > { %v852_v19 = vmax.f32 %v850_v17, 0.0  ;;  %v853_v20 = vmax.f32 %v851_v18, 0.0 }
 0x4f2   : > { %v855_v22 = vrot.slane %v852_v19, 1  ;;  %v858_v23 = vrot.slane %v852_v19, 7  ;;  %v859_v24 = vrot.slane %v853_v20, 7  ;;  %v864_v25 = vrot.slane %v853_v20, 5 }
 0x4f4   : > { %v860_v26 = vsel %vm552_vm0, %v858_v23, %v859_v24  ;;  %v866_v27 = vsel %vm552_vm0, %v855_v22, %v858_v23  ;;  %v867_v28 = vsel %vm552_vm0, %v859_v24, %v864_v25 }
 0x4f5   : > { %v868_v29 = vpack.c.bf16 %v866_v27, %v866_v27  ;;  %v869_v30 = vpack.c.bf16 %v860_v26, %v860_v26  ;;  %v870_v43 = vpack.c.bf16 %v867_v28, %v867_v28 }
 0x4f7   : > { %v873_v31 = vunpack.c.l.b16 %v868_v29  ;;  %v874_v46 = vunpack.c.l.b16 %v869_v30  ;;  %v878_v32 = vunpack.c.l.b16 %v870_v43 }
 0x4f9   : > { %v875_v33 = vpack.c.b16 %v874_v46, %v873_v31  ;;  %v879_v34 = vpack.c.b16 %v878_v32, %v878_v32 }
 0x4fb   : > { %1097 = vmatmul.bf16.vlgmr.msra.gmra.mxu2 %v875_v33  ;;  %v893_v35 = vrot.slane %v875_v33, 1  ;;  %v894_v36 = vrot.slane %v879_v34, 1  ;;  %v883_v37 = vshll.u32 %v875_v33, 16  ;;  %v888_v38 = vshll.u32 %v879_v34, 16 }
 0x4fc   : > { %v881_v40 = vshrl.u32 %v875_v33, 16 }
 0x4fd   : > { %v895_v39 = vsel %vm589_vm2, %v893_v35, %v894_v36  ;;  %v885_v41 = vrot.slane %v883_v37, 1  ;;  %v890_v44 = vrot.slane %v888_v38, 1 }
 0x4fe   : > { %1125 = vmatmul.bf16.vlgmr.msrb.gmra.mxu1 %v895_v39 }
 0x4ff   : > { %v886_v42 = vor.u32 %v885_v41, %v881_v40 }
 0x501   : > { %v891_v45 = vsel %vm574_vm1, %v886_v42, %v890_v44 }
 0x502   : > { %1111 = vmatmul.bf16.vlgmr.msra.gmra.mxu3 %v891_v45 }
 0x57b   : > { %v1126_v48 = vpop.f32.mrf.mxu1 }
 0x57e   : > { %v1098_v47 = vpop.f32.mrf.mxu2 }
 0x583   : > { %v1128_v55 = vpop.f32.mrf.mxu1 }
 0x585   : > { %v1112_v49 = vpop.f32.mrf.mxu3 }
 0x586   : > { %v1113_v50 = vadd.f32 %v1112_v49, %v1098_v47  ;;  %v1100_v51 = vpop.f32.mrf.mxu2 }
 0x588   : > { %v6641_v53 = vadd.f32 %v1126_v48, %v1113_v50 }
 0x58a   : > { %v1138_v57 = vmul.f32 %v6641_v53, %v6641_v53 }
 0x58d   : > { %v1114_v52 = vpop.f32.mrf.mxu3 }
 0x58e   : > { %v1115_v54 = vadd.f32 %v1114_v52, %v1100_v51 }
 0x590   : > { %v6643_v56 = vadd.f32 %v1128_v55, %v1115_v54 }
 0x592   : > { %v1131_v58 = vadd.f32 %v6643_v56, %v6641_v53  ;;  %v1139_v59 = vmul.f32 %v6643_v56, %v6643_v56 }
 0x594   : > { %v1132_v60 = vrot.slane %v1131_v58, 4  ;;  %v1140_v61 = vadd.f32 %v1139_v59, %v1138_v57 }
 0x596   : > { %v1133_v62 = vadd.f32 %v1132_v60, %v1131_v58  ;;  %v1141_v63 = vrot.slane %v1140_v61, 4 }
 0x598   : > { %v1134_v0 = vrot.slane %v1133_v62, 2  ;;  %v1142_v1 = vadd.f32 %v1141_v63, %v1140_v61 }
 0x59a   : > { %v1135_v2 = vadd.f32 %v1134_v0, %v1133_v62  ;;  %v1143_v3 = vrot.slane %v1142_v1, 2 }
 0x59c   : > { %v1136_v4 = vrot.slane %v1135_v2, 1  ;;  %v1144_v5 = vadd.f32 %v1143_v3, %v1142_v1 }
 0x59e   : > { %v1137_v6 = vadd.f32 %v1136_v4, %v1135_v2  ;;  %v1145_v7 = vrot.slane %v1144_v5, 1 }
 0x5a0   : > { %1148 = vrot.lane.b32.xlu2 %v1137_v6, %s6320_s14  ;;  %v1146_v8 = vadd.f32 %v1145_v7, %v1144_v5 }
 0x5a2   : > { %1153 = vrot.lane.b32.xlu0 %v1146_v8, %s6320_s14 }
 0x5fa   : > { %v1149_v9 = vpop.permute.xlu2 %1148 }
 0x5fb   : > { %v1151_v10 = vadd.f32 %v1149_v9, %v1137_v6 }
 0x5fd   : > { %1158 = vrot.lane.b32.xlu1 %v1151_v10, %s6321_s30 }
 0x614   : > { %v1154_v11 = vpop.permute.xlu0 %1153 }
 0x615   : > { %v1156_v12 = vadd.f32 %v1154_v11, %v1146_v8 }
 0x617   : > { %1163 = vrot.lane.b32.xlu2 %v1156_v12, %s6321_s30 }
 0x66f   : > { %v1159_v13 = vpop.permute.xlu1 %1158 }
 0x670   : > { %v1161_v14 = vadd.f32 %v1159_v13, %v1151_v10 }
 0x671   : > { %v1164_v15 = vpop.permute.xlu2 %1163 }
 0x672   : > { %v1166_v16 = vadd.f32 %v1164_v15, %v1156_v12  ;;  %1168 = vrot.lane.b32.xlu0 %v1161_v14, %s6322_s15 }
 0x674   : > { %1173 = vrot.lane.b32.xlu1 %v1166_v16, %s6322_s15 }
 0x6e4   : > { %v1169_v17 = vpop.permute.xlu0 %1168 }
 0x6e5   : > { %v1171_v18 = vadd.f32 %v1169_v17, %v1161_v14 }
 0x6e6   : > { %v1174_v19 = vpop.permute.xlu1 %1173 }
 0x6e7   : > { %v1176_v20 = vadd.f32 %v1174_v19, %v1166_v16  ;;  %1178 = vrot.lane.b32.xlu2 %v1171_v18, %s6323_s28  ;;  %v1374_v16 = vld [vmem:[#allocation5 + $0xb0] sm:$0xf]  ;;  %v5620_v19 = vld [vmem:[#allocation5 + $0x78] sm:$0xff] }
 0x6e8   : > { %v1464_v17 = vunpack.c.l.b16 %v1374_v16  ;;  %1529 = vmatpush.bf16.msrb.mxu2 %v5620_v19 }
 0x6e9   : > { %1183 = vrot.lane.b32.xlu0 %v1176_v20, %s6323_s28 }
 0x741   : > { %v1179_v22 = vpop.permute.xlu2 %1178 }
 0x742   : > { %v1181_v23 = vadd.f32 %v1179_v22, %v1171_v18  ;;  %v5612_v18 = vld [vmem:[#allocation5 + $0x38] sm:$0xff] }
 0x743   : > { %1516 = vmatpush.bf16.msrb.mxu0 %v5612_v18 }
 0x744   : > { %v1187_v24 = vmul.f32 %v1181_v23, %v6614_v21  ;;  %v5626_v23 = vld [vmem:[#allocation5 + $0xa8] sm:$0xff] }
 0x746   : > { %1204 = vrot.lane.b32.xlu1 %v1187_v24, %s7148_s16  ;;  %v1189_v28 = vmul.f32 %v1187_v24, %v1187_v24 }
 0x75b   : > { %v1184_v25 = vpop.permute.xlu0 %1183 }
 0x75c   : > { %v1186_v26 = vadd.f32 %v1184_v25, %v1176_v20  ;;  %v1487_v20 = vpack.c.b16 %v1464_v17, %v1464_v17 }
 0x75e   : > { %v1188_v27 = vmul.f32 %v1186_v26, %v6614_v21  ;;  %v1514_v22 = vsel %vm1280_vm4, %v1487_v20, 0  ;;  %v5624_v26 = vld [vmem:[#allocation5 + $0x98] sm:$0xff] }
 0x75f   : > { %1543 = vmatpush.bf16.msrb.mxu3 %v1514_v22 }
 0x760   : > { %v1190_v29 = vsub.f32 %v1188_v27, %v1189_v28 }
 0x762   : > { %v1191_v30 = vmax.f32 %v1190_v29, 0.0 }
 0x763   : > { %1544 = vmatpush.bf16.msrb.mxu3 %v5626_v23 }
 0x764   : > { %v1192_v43 = vadd.f32 1e-05, %v1191_v30 }
 0x766   : > { %5966 = vrsqrt.f32 %v1192_v43  ;;  %vm1199_vm12 = vweird.f32 %v1192_v43 }
 0x76c   : > { %v5967_v31 = vpop.eup %5966 }
 0x76d   : > { %v1194_v46 = vmul.f32 %v5967_v31, %v1192_v43  ;;  %vm1200_vm11 = vweird.f32 %v5967_v31  ;;  %v5623_v43 = vld [vmem:[#allocation5 + $0x90] sm:$0xff] }
 0x76e   : > { %vm1201_vm13 = vmor %vm1199_vm12, %vm1200_vm11  ;;  %vm1326_vm11 = vcmask 916480  }
 0x76f   : > { %v1195_v32 = vmul.f32 %v5967_v31, %v1194_v46 }
 0x771   : > { %v1196_v33 = vmul.f32 0.5, %v1195_v32 }
 0x773   : > { %v1197_v34 = vsub.f32 1.5, %v1196_v33 }
 0x775   : > { %v1198_v35 = vmul.f32 %v5967_v31, %v1197_v34 }
 0x777   : > { %v1202_v36 = vsel %vm1201_vm13, %v5967_v31, %v1198_v35 }
 0x778   : > { %1209 = vrot.lane.b32.xlu2 %v1202_v36, %s7148_s16 }
 0x7b8   : > { %v1205_v37 = vpop.permute.xlu1 %1204 }
 0x7b9   : > { %v1207_v21 = vsel %vm807_vm8, %v1187_v24, %v1205_v37  ;;  %v5625_v24 = vld [vmem:[#allocation5 + $0xa0] sm:$0xff] }
 0x7ba   : > { %1214 = vrot.lane.b32.xlu0 %v1207_v21, %s6326_s17  ;;  %1545 = vmatpush.bf16.msrb.mxu3 %v5625_v24 }
 0x7be   : > { %1546 = vmatpush.bf16.msrb.mxu3 %v5624_v26 }
 0x7c2   : > { %1547 = vmatpush.bf16.msrb.mxu3 %v5623_v43 }
 0x7d2   : > { %v1210_v38 = vpop.permute.xlu2 %1209 }
 0x7d3   : > { %v1212_v39 = vsel %vm807_vm8, %v1202_v36, %v1210_v38  ;;  %v5622_v36 = vld [vmem:[#allocation5 + $0x88] sm:$0xff]  ;;  %vm1321_vm8 = vcmask 982016  }
 0x7d4   : > { %1219 = vrot.lane.b32.xlu1 %v1212_v39, %s6326_s17  ;;  %1548 = vmatpush.bf16.msrb.mxu3 %v5622_v36 }
 0x82c   : > { %v1215_v40 = vpop.permute.xlu0 %1214 }
 0x82d   : > { %v1217_v41 = vsel %vm818_vm9, %v1207_v21, %v1215_v40 }
 0x82e   : > { %1224 = vrot.lane.b32.xlu2 %v1217_v41, %s6327_s3 }
 0x846   : > { %v1220_v42 = vpop.permute.xlu1 %1219 }
 0x847   : > { %v1222_v44 = vsel %vm818_vm9, %v1212_v39, %v1220_v42  ;;  %v5621_v39 = vld [vmem:[#allocation5 + $0x80] sm:$0xff] }
 0x848   : > { %1229 = vrot.lane.b32.xlu0 %v1222_v44, %s6327_s3  ;;  %1549 = vmatpush.bf16.msrb.mxu3 %v5621_v39 }
 0x888   : > { %v1225_v45 = vpop.permute.xlu2 %1224 }
 0x889   : > { %v1227_v47 = vsel %vm829_vm10, %v1217_v41, %v1225_v45  ;;  %v5619_v45 = vld [vmem:[#allocation5 + $0x70] sm:$0xff] }
 0x88a   : > { %1234 = vrot.lane.b32.xlu1 %v1227_v47, %s6320_s14  ;;  %1530 = vmatpush.bf16.msrb.mxu2 %v5619_v45 }
 0x8ba   : > { %v1230_v48 = vpop.permute.xlu0 %1229 }
 0x8bb   : > { %v1232_v49 = vsel %vm829_vm10, %v1222_v44, %v1230_v48  ;;  %v5611_v44 = vld [vmem:[#allocation5 + $0x30] sm:$0xff]  ;;  %v5618_v48 = vld [vmem:[#allocation5 + $0x68] sm:$0xff] }
 0x8bc   : > { %1239 = vrot.lane.b32.xlu2 %v1232_v49, %s6320_s14  ;;  %1517 = vmatpush.bf16.msrb.mxu0 %v5611_v44 }
 0x8bd   : > { %1531 = vmatpush.bf16.msrb.mxu2 %v5618_v48 }
 0x8fc   : > { %v1235_v50 = vpop.permute.xlu1 %1234 }
 0x8fd   : > { %v1237_v51 = vsel %vm593_vm3, %v1227_v47, %v1235_v50  ;;  %v5610_v47 = vld [vmem:[#allocation5 + $0x28] sm:$0xff]  ;;  %v5617_v50 = vld [vmem:[#allocation5 + $0x60] sm:$0xff] }
 0x8fe   : > { %v1243_v52 = vperm.slane %v1237_v51, 0  ;;  %1518 = vmatpush.bf16.msrb.mxu0 %v5610_v47  ;;  %1532 = vmatpush.bf16.msrb.mxu2 %v5617_v50  ;;  %v5608_v51 = vld [vmem:[#allocation5 + $0x18] sm:$0xff] }
 0x900   : > { %v1244_v57 = vsub.f32 %v6641_v53, %v1243_v52  ;;  %v1245_v58 = vsub.f32 %v6643_v56, %v1243_v52  ;;  %v5616_v52 = vld [vmem:[#allocation5 + $0x58] sm:$0xff] }
 0x902   : > { %1533 = vmatpush.bf16.msrb.mxu2 %v5616_v52 }
 0x916   : > { %v1240_v54 = vpop.permute.xlu2 %1239 }
 0x917   : > { %v1242_v55 = vsel %vm593_vm3, %v1232_v49, %v1240_v54  ;;  %v5609_v49 = vld [vmem:[#allocation5 + $0x20] sm:$0xff]  ;;  %v5607_v54 = vld [vmem:[#allocation5 + $0x10] sm:$0xff] }
 0x918   : > { %v1246_v59 = vperm.slane %v1242_v55, 0  ;;  %1519 = vmatpush.bf16.msrb.mxu0 %v5609_v49  ;;  %v5615_v55 = vld [vmem:[#allocation5 + $0x50] sm:$0xff] }
 0x919   : > { %1534 = vmatpush.bf16.msrb.mxu2 %v5615_v55 }
 0x91a   : > { %v1247_v60 = vmul.f32 %v1246_v59, %v1244_v57  ;;  %v1248_v61 = vmul.f32 %v1246_v59, %v1245_v58  ;;  %v5606_v57 = vld [vmem:[#allocation5 + $0x8] sm:$0xff]  ;;  %v5605_v59 = vld [vmem:[#allocation5] sm:$0xff] }
 0x91b   : > { %v5614_v58 = vld [vmem:[#allocation5 + $0x48] sm:$0xff] }
 0x91c   : > { %v1249_v62 = vmax.f32 %v1247_v60, 0.0  ;;  %v1250_v63 = vmax.f32 %v1248_v61, 0.0  ;;  %1520 = vmatpush.bf16.msrb.mxu0 %v5608_v51  ;;  %v5613_v60 = vld [vmem:[#allocation5 + $0x40] sm:$0xff] }
 0x91d   : > { %1535 = vmatpush.bf16.msrb.mxu2 %v5614_v58 }
 0x91e   : > { %v1252_v0 = vrot.slane %v1249_v62, 1  ;;  %v1256_v1 = vrot.slane %v1250_v63, 1 }
 0x920   : > { %v1254_v2 = vmax.f32 %v1249_v62, %v1252_v0  ;;  %v1258_v3 = vmax.f32 %v1250_v63, %v1256_v1  ;;  %1521 = vmatpush.bf16.msrb.mxu0 %v5607_v54 }
 0x921   : > { %1536 = vmatpush.bf16.msrb.mxu2 %v5613_v60 }
 0x922   : > { %v1260_v4 = vrot.slane %v1254_v2, 1  ;;  %v1262_v5 = vrot.slane %v1254_v2, 2  ;;  %v1264_v6 = vrot.slane %v1254_v2, 3  ;;  %v1267_v53 = vrot.slane %v1258_v3, 4 }
 0x923   : > { %v1269_v8 = vrot.slane %v1258_v3, 5  ;;  %v1271_v10 = vrot.slane %v1258_v3, 6  ;;  %v1273_v12 = vrot.slane %v1258_v3, 7 }
 0x924   : > { %v1275_v7 = vsel %vm552_vm0, %v1254_v2, %v1260_v4  ;;  %1522 = vmatpush.bf16.msrb.mxu0 %v5606_v57 }
 0x925   : > { %v1277_v56 = vsel %vm1276_vm14, %v1275_v7, %v1262_v5 }
 0x926   : > { %v1279_v9 = vsel %vm1278_vm15, %v1277_v56, %v1264_v6 }
 0x927   : > { %v1281_v11 = vsel %vm1280_vm4, %v1279_v9, %v1267_v53 }
 0x928   : > { %v1283_v13 = vsel %vm1282_vm5, %v1281_v11, %v1269_v8  ;;  %1523 = vmatpush.bf16.msrb.mxu0 %v5605_v59 }
 0x929   : > { %v1285_v14 = vsel %vm1284_vm6, %v1283_v13, %v1271_v10 }
 0x92a   : > { %v1287_v15 = vsel %vm589_vm2, %v1285_v14, %v1273_v12 }
 0x92b   : > { %1289 = vrot.lane.b32.xlu0 %v1287_v15, %s6323_s28 }
 0x99d   : > { %v1290_v25 = vpop.permute.xlu0 %1289 }
 0x99e   : > { %v1292_v27 = vmax.f32 %v1287_v15, %v1290_v25 }
 0x9a0   : > { %v1294_v28 = vrot.slane %v1292_v27, 1  ;;  %v1296_v29 = vrot.slane %v1292_v27, 7  ;;  %v1298_v30 = vrot.slane %v1292_v27, 5 }
 0x9a2   : > { %v1300_v31 = vsel %vm552_vm0, %v1294_v28, %v1296_v29  ;;  %v1301_v46 = vsel %vm552_vm0, %v1296_v29, %v1298_v30  ;;  %v6328_v29 = vmov 64.0  }
 0x9a3   : > { %v1302_v32 = vpack.c.bf16 %v1300_v31, %v1300_v31  ;;  %v1303_v33 = vpack.c.bf16 %v1301_v46, %v1301_v46  ;;  %5968 = vrcp.f32 %v6328_v29 }
 0x9a5   : > { %v1307_v34 = vunpack.c.l.b16 %v1303_v33  ;;  %v1306_v35 = vunpack.c.l.b16 %v1302_v32 }
 0x9a7   : > { %v1308_v37 = vpack.c.b16 %v1307_v34, %v1306_v35 }
 0x9a9   : > { %v1318_v21 = vrot.slane %v1308_v37, 1  ;;  %v1312_v38 = vshll.u32 %v1308_v37, 16  ;;  %v1310_v40 = vshrl.u32 %v1308_v37, 16  ;;  %v5969_v30 = vpop.eup %5968 }
 0x9aa   : > { %v1599_v43 = vmul.f32 64.0, %v5969_v30  ;;  %vm1603_vm12 = vweird.f32 %v5969_v30 }
 0x9ab   : > { %1319 = vrot.lane.b32.xlu2 %v1318_v21, %s6322_s15  ;;  %v1314_v41 = vrot.slane %v1312_v38, 1 }
 0x9ac   : > { %v1600_v31 = vsub.f32 1.0, %v1599_v43 }
 0x9ad   : > { %v1315_v42 = vor.u32 %v1314_v41, %v1310_v40 }
 0x9ae   : > { %v1601_v46 = vmul.f32 %v5969_v30, %v1600_v31 }
 0x9af   : > { %1316 = vrot.lane.b32.xlu1 %v1315_v42, %s6323_s28 }
 0xa05   : > { %v1320_v61 = vpop.permute.xlu2 %1319 }
 0xa06   : > { %4756 = vmatmul.msk.bf16.vlgmr.msrb.gmra.mxu3 %vm1510_vm7, %v1320_v61 }
 0xa21   : > { %v1317_v62 = vpop.permute.xlu1 %1316 }
 0xa22   : > { %v1324_v63 = vsel %vm1321_vm8, %v1302_v32, %v1317_v62  ;;  %v1328_v0 = vsel %vm1326_vm11, %v1317_v62, %v1320_v61  ;;  %v1602_v32 = vadd.f32 %v5969_v30, %v1601_v46  ;;  %v5634_v62 = vld [vmem:[#allocation7 + $0x38] sm:$0xff] }
 0xa23   : > { %1524 = vmatmul.bf16.vlgmr.msrb.gmra.mxu0 %v1324_v63  ;;  %1537 = vmatmul.bf16.vlgmr.msrb.gmra.mxu2 %v1328_v0  ;;  %v5650_v63 = vld [vmem:[#allocation7 + $0xb8] sm:$0xff] }
 0xa24   : > { %v6705_v33 = vsel %vm1603_vm12, %v5969_v30, %v1602_v32  ;;  %v5642_v0 = vld [vmem:[#allocation7 + $0x78] sm:$0xff]  ;;  %1874 = vmatpush.bf16.msra.mxu1 %v5634_v62  ;;  %1900 = vmatpush.bf16.msra.mxu0 %v5650_v63 }
 0xa25   : > { %1887 = vmatpush.bf16.msra.mxu3 %v5642_v0 }
 0xa89   : > { %v1551_v1 = vpop.f32.mrf.mxu3 }
 0xa91   : > { %v1553_v2 = vpop.f32.mrf.mxu3 }
 0xa92   : > { %v5649_v2 = vld [vmem:[#allocation7 + $0xb0] sm:$0xff] }
 0xa93   : > { %1901 = vmatpush.bf16.msra.mxu0 %v5649_v2 }
 0xaa0   : > { %v1525_v3 = vpop.f32.mrf.mxu0 }
 0xaa6   : > { %v1538_v4 = vpop.f32.mrf.mxu2 }
 0xaa7   : > { %v1539_v5 = vadd.f32 %v1538_v4, %v1525_v3  ;;  %v5641_v3 = vld [vmem:[#allocation7 + $0x70] sm:$0xff]  ;;  %v5632_v4 = vld [vmem:[#allocation7 + $0x28] sm:$0xff] }
 0xaa8   : > { %v1527_v6 = vpop.f32.mrf.mxu0  ;;  %1888 = vmatpush.bf16.msra.mxu3 %v5641_v3 }
 0xaa9   : > { %v6693_v7 = vadd.f32 %v1551_v1, %v1539_v5  ;;  %v5633_v1 = vld [vmem:[#allocation7 + $0x30] sm:$0xff]  ;;  %v5648_v5 = vld [vmem:[#allocation7 + $0xa8] sm:$0xff] }
 0xaaa   : > { %1875 = vmatpush.bf16.msra.mxu1 %v5633_v1  ;;  %v5640_v6 = vld [vmem:[#allocation7 + $0x68] sm:$0xff]  ;;  %1902 = vmatpush.bf16.msra.mxu0 %v5648_v5 }
 0xaab   : > { %v1555_v53 = vrot.slane %v6693_v7, 4  ;;  %v1561_v56 = vmul.f32 %v6693_v7, %v6693_v7 }
 0xaac   : > { %1889 = vmatpush.bf16.msra.mxu3 %v5640_v6 }
 0xaad   : > { %v1556_v8 = vadd.f32 %v1555_v53, %v6693_v7  ;;  %v1562_v9 = vrot.slane %v1561_v56, 4  ;;  %v5631_v53 = vld [vmem:[#allocation7 + $0x20] sm:$0xff] }
 0xaae   : > { %v1540_v10 = vpop.f32.mrf.mxu2  ;;  %1876 = vmatpush.bf16.msra.mxu1 %v5632_v4 }
 0xaaf   : > { %v1557_v11 = vrot.slane %v1556_v8, 2  ;;  %v1563_v12 = vadd.f32 %v1562_v9, %v1561_v56  ;;  %v5647_v56 = vld [vmem:[#allocation7 + $0xa0] sm:$0xff]  ;;  %v5629_v9 = vld [vmem:[#allocation7 + $0x10] sm:$0xff] }
 0xab0   : > { %1903 = vmatpush.bf16.msra.mxu0 %v5647_v56  ;;  %v5639_v10 = vld [vmem:[#allocation7 + $0x60] sm:$0xff] }
 0xab1   : > { %v1558_v13 = vadd.f32 %v1557_v11, %v1556_v8  ;;  %v1564_v14 = vrot.slane %v1563_v12, 2  ;;  %v5630_v8 = vld [vmem:[#allocation7 + $0x18] sm:$0xff]  ;;  %1890 = vmatpush.bf16.msra.mxu3 %v5639_v10 }
 0xab2   : > { %1877 = vmatpush.bf16.msra.mxu1 %v5631_v53  ;;  %v5646_v11 = vld [vmem:[#allocation7 + $0x98] sm:$0xff] }
 0xab3   : > { %v1559_v15 = vrot.slane %v1558_v13, 1  ;;  %v1565_v16 = vadd.f32 %v1564_v14, %v1563_v12  ;;  %v5628_v12 = vld [vmem:[#allocation7 + $0x8] sm:$0xff]  ;;  %v5645_v14 = vld [vmem:[#allocation7 + $0x90] sm:$0xff] }
 0xab4   : > { %1904 = vmatpush.bf16.msra.mxu0 %v5646_v11 }
 0xab5   : > { %v1560_v17 = vadd.f32 %v1559_v15, %v1558_v13  ;;  %v1566_v18 = vrot.slane %v1565_v16, 1  ;;  %v5638_v13 = vld [vmem:[#allocation7 + $0x58] sm:$0xff]  ;;  %v5627_v15 = vld [vmem:[#allocation7] sm:$0xff] }
 0xab6   : > { %1878 = vmatpush.bf16.msra.mxu1 %v5630_v8  ;;  %1891 = vmatpush.bf16.msra.mxu3 %v5638_v13 }
 0xab7   : > { %1569 = vrot.lane.b32.xlu0 %v1560_v17, %s6320_s14  ;;  %v1567_v19 = vadd.f32 %v1566_v18, %v1565_v16  ;;  %v5637_v16 = vld [vmem:[#allocation7 + $0x50] sm:$0xff]  ;;  %v5636_v18 = vld [vmem:[#allocation7 + $0x48] sm:$0xff] }
 0xab8   : > { %1905 = vmatpush.bf16.msra.mxu0 %v5645_v14 }
 0xab9   : > { %1574 = vrot.lane.b32.xlu1 %v1567_v19, %s6320_s14 }
 0xaba   : > { %1879 = vmatpush.bf16.msra.mxu1 %v5629_v9  ;;  %1892 = vmatpush.bf16.msra.mxu3 %v5637_v16 }
 0xabe   : > { %1880 = vmatpush.bf16.msra.mxu1 %v5628_v12  ;;  %1893 = vmatpush.bf16.msra.mxu3 %v5636_v18 }
 0xac2   : > { %1881 = vmatpush.bf16.msra.mxu1 %v5627_v15 }
 0xb29   : > { %v1570_v20 = vpop.permute.xlu0 %1569 }
 0xb2a   : > { %v1572_v22 = vadd.f32 %v1570_v20, %v1560_v17  ;;  %v5644_v17 = vld [vmem:[#allocation7 + $0x88] sm:$0xff]  ;;  %v5635_v20 = vld [vmem:[#allocation7 + $0x40] sm:$0xff] }
 0xb2b   : > { %v1575_v23 = vpop.permute.xlu1 %1574  ;;  %1906 = vmatpush.bf16.msra.mxu0 %v5644_v17  ;;  %1894 = vmatpush.bf16.msra.mxu3 %v5635_v20 }
 0xb2c   : > { %v1577_v24 = vadd.f32 %v1575_v23, %v1567_v19  ;;  %1579 = vrot.lane.b32.xlu2 %v1572_v22, %s6321_s30  ;;  %v5643_v19 = vld [vmem:[#allocation7 + $0x80] sm:$0xff] }
 0xb2e   : > { %1584 = vrot.lane.b32.xlu0 %v1577_v24, %s6321_s30 }
 0xb2f   : > { %1907 = vmatpush.bf16.msra.mxu0 %v5643_v19 }
 0xb86   : > { %v1580_v25 = vpop.permute.xlu2 %1579 }
 0xb87   : > { %v1582_v26 = vadd.f32 %v1580_v25, %v1572_v22 }
 0xb89   : > { %1589 = vrot.lane.b32.xlu1 %v1582_v26, %s6322_s15 }
 0xba0   : > { %v1585_v27 = vpop.permute.xlu0 %1584 }
 0xba1   : > { %v1587_v28 = vadd.f32 %v1585_v27, %v1577_v24 }
 0xba3   : > { %1594 = vrot.lane.b32.xlu2 %v1587_v28, %s6322_s15 }
 0xbfb   : > { %v1590_v34 = vpop.permute.xlu1 %1589 }
 0xbfc   : > { %v1592_v35 = vadd.f32 %v1590_v34, %v1582_v26 }
 0xbfd   : > { %v1595_v36 = vpop.permute.xlu2 %1594 }
 0xbfe   : > { %v1605_v37 = vmul.f32 %v6705_v33, %v1592_v35  ;;  %v1597_v21 = vadd.f32 %v1595_v36, %v1587_v28 }
 0xc00   : > { %v1607_v38 = vmul.f32 %v1605_v37, %v1605_v37  ;;  %v1606_v39 = vmul.f32 %v6705_v33, %v1597_v21  ;;  %1622 = vrot.lane.b32.xlu0 %v1605_v37, %s6326_s17 }
 0xc02   : > { %v1608_v40 = vsub.f32 %v1606_v39, %v1607_v38 }
 0xc04   : > { %v1609_v41 = vmax.f32 %v1608_v40, 0.0 }
 0xc06   : > { %v1610_v42 = vadd.f32 1e-05, %v1609_v41 }
 0xc08   : > { %5970 = vrsqrt.f32 %v1610_v42  ;;  %vm1617_vm7 = vweird.f32 %v1610_v42 }
 0xc0e   : > { %v5971_v44 = vpop.eup %5970 }
 0xc0f   : > { %v1612_v45 = vmul.f32 %v5971_v44, %v1610_v42  ;;  %vm1618_vm13 = vweird.f32 %v5971_v44 }
 0xc10   : > { %vm1619_vm8 = vmor %vm1617_vm7, %vm1618_vm13 }
 0xc11   : > { %v1613_v47 = vmul.f32 %v5971_v44, %v1612_v45 }
 0xc13   : > { %v1614_v48 = vmul.f32 0.5, %v1613_v47 }
 0xc15   : > { %v1615_v49 = vsub.f32 1.5, %v1614_v48 }
 0xc17   : > { %v1616_v50 = vmul.f32 %v5971_v44, %v1615_v49 }
 0xc19   : > { %v1620_v51 = vsel %vm1619_vm8, %v5971_v44, %v1616_v50  ;;  %vm2227_vm8 = vcmask 654336  }
 0xc1a   : > { %1627 = vrot.lane.b32.xlu1 %v1620_v51, %s6326_s17 }
 0xc72   : > { %v1623_v52 = vpop.permute.xlu0 %1622 }
 0xc73   : > { %v1625_v54 = vsel %vm818_vm9, %v1605_v37, %v1623_v52 }
 0xc74   : > { %1632 = vrot.lane.b32.xlu2 %v1625_v54, %s6327_s3 }
 0xc8c   : > { %v1628_v55 = vpop.permute.xlu1 %1627 }
 0xc8d   : > { %v1630_v57 = vsel %vm818_vm9, %v1620_v51, %v1628_v55 }
 0xc8e   : > { %1637 = vrot.lane.b32.xlu0 %v1630_v57, %s6327_s3 }
 0xcce   : > { %v1633_v58 = vpop.permute.xlu2 %1632 }
 0xccf   : > { %v1635_v59 = vsel %vm829_vm10, %v1625_v54, %v1633_v58 }
 0xcd0   : > { %1642 = vrot.lane.b32.xlu1 %v1635_v59, %s6320_s14 }
 0xd00   : > { %v1638_v60 = vpop.permute.xlu0 %1637 }
 0xd01   : > { %v1640_v61 = vsel %vm829_vm10, %v1630_v57, %v1638_v60 }
 0xd02   : > { %1647 = vrot.lane.b32.xlu2 %v1640_v61, %s6320_s14 }
 0xd42   : > { %v1643_v22 = vpop.permute.xlu1 %1642 }
 0xd43   : > { %v1645_v23 = vsel %vm593_vm3, %v1635_v59, %v1643_v22 }
 0xd44   : > { %v1651_v24 = vperm.slane %v1645_v23, 0 }
 0xd46   : > { %v1652_v27 = vsub.f32 %v6693_v7, %v1651_v24 }
 0xd5c   : > { %v1648_v25 = vpop.permute.xlu2 %1647 }
 0xd5d   : > { %v1650_v26 = vsel %vm593_vm3, %v1640_v61, %v1648_v25 }
 0xd5e   : > { %v1653_v28 = vperm.slane %v1650_v26, 0 }
 0xd60   : > { %v1654_v29 = vmul.f32 %v1653_v28, %v1652_v27 }
 0xd62   : > { %v1655_v30 = vmax.f32 %v1654_v29, 0.0 }
 0xd64   : > { %v1657_v43 = vrot.slane %v1655_v30, 1  ;;  %v1659_v31 = vrot.slane %v1655_v30, 7  ;;  %v1661_v46 = vrot.slane %v1655_v30, 5 }
 0xd66   : > { %v1664_v32 = vsel %vm552_vm0, %v1659_v31, %v1661_v46  ;;  %v1663_v34 = vsel %vm552_vm0, %v1657_v43, %v1659_v31 }
 0xd67   : > { %v1666_v35 = vpack.c.bf16 %v1664_v32, %v1664_v32  ;;  %v1665_v36 = vpack.c.bf16 %v1663_v34, %v1663_v34 }
 0xd69   : > { %v1669_v37 = vunpack.c.l.b16 %v1665_v36  ;;  %v1670_v21 = vunpack.c.l.b16 %v1666_v35  ;;  %1882 = vmatmul.bf16.vlgmr.msra.gmra.mxu1 %v1665_v36 }
 0xd6b   : > { %v1671_v38 = vpack.c.b16 %v1670_v21, %v1669_v37 }
 0xd6d   : > { %v1680_v39 = vrot.slane %v1671_v38, 1  ;;  %v1675_v40 = vshll.u32 %v1671_v38, 16  ;;  %v1673_v7 = vshrl.u32 %v1671_v38, 16 }
 0xd6f   : > { %1908 = vmatmul.bf16.vlgmr.msra.gmra.mxu0 %v1680_v39  ;;  %v1677_v41 = vrot.slane %v1675_v40, 1 }
 0xd71   : > { %v1678_v42 = vor.u32 %v1677_v41, %v1673_v7 }
 0xd73   : > { %1895 = vmatmul.bf16.vlgmr.msra.gmra.mxu3 %v1678_v42 }
 0xde6   : > { %v1883_v44 = vpop.f32.mrf.mxu1 }
 0xdec   : > { %v1909_v45 = vpop.f32.mrf.mxu0 }
 0xdee   : > { %v1885_v47 = vpop.f32.mrf.mxu1 }
 0xdf4   : > { %v1911_v48 = vpop.f32.mrf.mxu0 }
 0xdf6   : > { %v1896_v49 = vpop.f32.mrf.mxu3 }
 0xdf7   : > { %v1897_v50 = vadd.f32 %v1896_v49, %v1883_v44 }
 0xdf9   : > { %v6724_v51 = vadd.f32 %v1909_v45, %v1897_v50 }
 0xdfb   : > { %v1913_v52 = vrot.slane %v6724_v51, 4  ;;  %v1919_v54 = vmul.f32 %v6724_v51, %v6724_v51 }
 0xdfd   : > { %v1914_v55 = vadd.f32 %v1913_v52, %v6724_v51  ;;  %v1920_v57 = vrot.slane %v1919_v54, 4 }
 0xdfe   : > { %v1898_v58 = vpop.f32.mrf.mxu3 }
 0xdff   : > { %v1915_v59 = vrot.slane %v1914_v55, 2  ;;  %v1921_v60 = vadd.f32 %v1920_v57, %v1919_v54 }
 0xe01   : > { %v1916_v61 = vadd.f32 %v1915_v59, %v1914_v55  ;;  %v1922_v62 = vrot.slane %v1921_v60, 2  ;;  %v5671_v59 = vld [vmem:[#allocation8 + $0xa0] sm:$0xff] }
 0xe02   : > { %2259 = vmatpush.bf16.msrb.mxu3 %v5671_v59 }
 0xe03   : > { %v1917_v63 = vrot.slane %v1916_v61, 1  ;;  %v1923_v0 = vadd.f32 %v1922_v62, %v1921_v60  ;;  %v5658_v60 = vld [vmem:[#allocation8 + $0x38] sm:$0xff] }
 0xe04   : > { %v5666_v62 = vld [vmem:[#allocation8 + $0x78] sm:$0xff]  ;;  %2230 = vmatpush.bf16.msra.mxu2 %v5658_v60 }
 0xe05   : > { %v1918_v1 = vadd.f32 %v1917_v63, %v1916_v61  ;;  %v1924_v2 = vrot.slane %v1923_v0, 1  ;;  %v5670_v61 = vld [vmem:[#allocation8 + $0x98] sm:$0xff]  ;;  %2243 = vmatpush.bf16.msrb.mxu1 %v5666_v62  ;;  %v5669_v63 = vld [vmem:[#allocation8 + $0x90] sm:$0xff] }
 0xe06   : > { %2260 = vmatpush.bf16.msrb.mxu3 %v5670_v61 }
 0xe07   : > { %1927 = vrot.lane.b32.xlu0 %v1918_v1, %s6320_s14  ;;  %v1925_v3 = vadd.f32 %v1924_v2, %v1923_v0  ;;  %v5668_v0 = vld [vmem:[#allocation8 + $0x88] sm:$0xff] }
 0xe09   : > { %1932 = vrot.lane.b32.xlu1 %v1925_v3, %s6320_s14 }
 0xe0a   : > { %2261 = vmatpush.bf16.msrb.mxu3 %v5669_v63 }
 0xe0e   : > { %2262 = vmatpush.bf16.msrb.mxu3 %v5668_v0 }
 0xe79   : > { %v1928_v4 = vpop.permute.xlu0 %1927 }
 0xe7a   : > { %v1930_v5 = vadd.f32 %v1928_v4, %v1918_v1 }
 0xe7b   : > { %v1933_v6 = vpop.permute.xlu1 %1932 }
 0xe7c   : > { %v1935_v53 = vadd.f32 %v1933_v6, %v1925_v3  ;;  %1937 = vrot.lane.b32.xlu2 %v1930_v5, %s6321_s30  ;;  %v5667_v3 = vld [vmem:[#allocation8 + $0x80] sm:$0xff] }
 0xe7d   : > { %2263 = vmatpush.bf16.msrb.mxu3 %v5667_v3 }
 0xe7e   : > { %1942 = vrot.lane.b32.xlu0 %v1935_v53, %s6321_s30 }
 0xed6   : > { %v1938_v56 = vpop.permute.xlu2 %1937 }
 0xed7   : > { %v1940_v8 = vadd.f32 %v1938_v56, %v1930_v5 }
 0xed9   : > { %1947 = vrot.lane.b32.xlu1 %v1940_v8, %s6322_s15 }
 0xef0   : > { %v1943_v9 = vpop.permute.xlu0 %1942 }
 0xef1   : > { %v1945_v10 = vadd.f32 %v1943_v9, %v1935_v53 }
 0xef3   : > { %1952 = vrot.lane.b32.xlu2 %v1945_v10, %s6322_s15 }
 0xf4b   : > { %v1948_v11 = vpop.permute.xlu1 %1947 }
 0xf4c   : > { %v1950_v12 = vadd.f32 %v1948_v11, %v1940_v8 }
 0xf4d   : > { %v1953_v13 = vpop.permute.xlu2 %1952 }
 0xf4e   : > { %v1956_v14 = vmul.f32 %v1950_v12, %v6705_v33  ;;  %v1955_v15 = vadd.f32 %v1953_v13, %v1945_v10 }
 0xf50   : > { %v1958_v16 = vmul.f32 %v1956_v14, %v1956_v14  ;;  %v1957_v17 = vmul.f32 %v1955_v15, %v6705_v33  ;;  %1973 = vrot.lane.b32.xlu0 %v1956_v14, %s6326_s17 }
 0xf52   : > { %v1959_v18 = vsub.f32 %v1957_v17, %v1958_v16  ;;  %v5657_v16 = vld [vmem:[#allocation8 + $0x30] sm:$0xff] }
 0xf53   : > { %v5665_v17 = vld [vmem:[#allocation8 + $0x70] sm:$0xff]  ;;  %2231 = vmatpush.bf16.msra.mxu2 %v5657_v16 }
 0xf54   : > { %v1960_v19 = vmax.f32 %v1959_v18, 0.0  ;;  %2244 = vmatpush.bf16.msrb.mxu1 %v5665_v17  ;;  %v5656_v18 = vld [vmem:[#allocation8 + $0x28] sm:$0xff] }
 0xf56   : > { %v1961_v20 = vadd.f32 1e-05, %v1960_v19  ;;  %v5664_v19 = vld [vmem:[#allocation8 + $0x68] sm:$0xff] }
 0xf57   : > { %2232 = vmatpush.bf16.msra.mxu2 %v5656_v18 }
 0xf58   : > { %5972 = vrsqrt.f32 %v1961_v20  ;;  %vm1968_vm13 = vweird.f32 %v1961_v20  ;;  %2245 = vmatpush.bf16.msrb.mxu1 %v5664_v19 }
 0xf5e   : > { %v5973_v22 = vpop.eup %5972 }
 0xf5f   : > { %v1963_v23 = vmul.f32 %v5973_v22, %v1961_v20  ;;  %vm1969_vm12 = vweird.f32 %v5973_v22  ;;  %v5655_v20 = vld [vmem:[#allocation8 + $0x20] sm:$0xff] }
 0xf60   : > { %vm1970_vm7 = vmor %vm1968_vm13, %vm1969_vm12  ;;  %2233 = vmatpush.bf16.msra.mxu2 %v5655_v20  ;;  %vm2055_vm12 = vcmask 785408  }
 0xf61   : > { %v1964_v24 = vmul.f32 %v5973_v22, %v1963_v23  ;;  %v5654_v23 = vld [vmem:[#allocation8 + $0x18] sm:$0xff] }
 0xf63   : > { %v1965_v25 = vmul.f32 0.5, %v1964_v24  ;;  %v5662_v24 = vld [vmem:[#allocation8 + $0x58] sm:$0xff] }
 0xf64   : > { %2234 = vmatpush.bf16.msra.mxu2 %v5654_v23 }
 0xf65   : > { %v1966_v26 = vsub.f32 1.5, %v1965_v25  ;;  %v5653_v25 = vld [vmem:[#allocation8 + $0x10] sm:$0xff] }
 0xf67   : > { %v1967_v27 = vmul.f32 %v5973_v22, %v1966_v26  ;;  %v5661_v26 = vld [vmem:[#allocation8 + $0x50] sm:$0xff] }
 0xf68   : > { %2235 = vmatpush.bf16.msra.mxu2 %v5653_v25 }
 0xf69   : > { %v1971_v28 = vsel %vm1970_vm7, %v5973_v22, %v1967_v27  ;;  %v5663_v22 = vld [vmem:[#allocation8 + $0x60] sm:$0xff]  ;;  %v5652_v27 = vld [vmem:[#allocation8 + $0x8] sm:$0xff] }
 0xf6a   : > { %1978 = vrot.lane.b32.xlu1 %v1971_v28, %s6326_s17  ;;  %2246 = vmatpush.bf16.msrb.mxu1 %v5663_v22 }
 0xf6c   : > { %2236 = vmatpush.bf16.msra.mxu2 %v5652_v27 }
 0xf6e   : > { %2247 = vmatpush.bf16.msrb.mxu1 %v5662_v24 }
 0xf72   : > { %2248 = vmatpush.bf16.msrb.mxu1 %v5661_v26 }
 0xfc2   : > { %v1974_v29 = vpop.permute.xlu0 %1973 }
 0xfc3   : > { %v1976_v30 = vsel %vm818_vm9, %v1956_v14, %v1974_v29  ;;  %v5651_v29 = vld [vmem:[#allocation8] sm:$0xff] }
 0xfc4   : > { %1983 = vrot.lane.b32.xlu2 %v1976_v30, %s6327_s3  ;;  %2237 = vmatpush.bf16.msra.mxu2 %v5651_v29  ;;  %v5679_v29 = vld [vmem:[#allocation10 + $0x38] sm:$0xff] }
 0xfc5   : > { %2567 = vmatpush.bf16.msrb.mxu0 %v5679_v29 }
 0xfdc   : > { %v1979_v43 = vpop.permute.xlu1 %1978 }
 0xfdd   : > { %v1981_v31 = vsel %vm818_vm9, %v1971_v28, %v1979_v43  ;;  %v5660_v28 = vld [vmem:[#allocation8 + $0x48] sm:$0xff] }
 0xfde   : > { %1988 = vrot.lane.b32.xlu0 %v1981_v31, %s6327_s3  ;;  %2249 = vmatpush.bf16.msrb.mxu1 %v5660_v28 }
0x101e   : > { %v1984_v46 = vpop.permute.xlu2 %1983 }
0x101f   : > { %v1986_v32 = vsel %vm829_vm10, %v1976_v30, %v1984_v46  ;;  %v5659_v30 = vld [vmem:[#allocation8 + $0x40] sm:$0xff] }
0x1020   : > { %1993 = vrot.lane.b32.xlu1 %v1986_v32, %s6320_s14  ;;  %2250 = vmatpush.bf16.msrb.mxu1 %v5659_v30  ;;  %v5695_v30 = vld [vmem:[#allocation10 + $0xb8] sm:$0xff] }
0x1024   : > { %2593 = vmatpush.bf16.msra.mxu1 %v5695_v30 }
0x1050   : > { %v1989_v34 = vpop.permute.xlu0 %1988 }
0x1051   : > { %v1991_v35 = vsel %vm829_vm10, %v1981_v31, %v1989_v34 }
0x1052   : > { %1998 = vrot.lane.b32.xlu2 %v1991_v35, %s6320_s14 }
0x1092   : > { %v1994_v36 = vpop.permute.xlu1 %1993 }
0x1093   : > { %v1996_v37 = vsel %vm593_vm3, %v1986_v32, %v1994_v36 }
0x1094   : > { %v2002_v21 = vperm.slane %v1996_v37, 0 }
0x1096   : > { %v2003_v40 = vsub.f32 %v6724_v51, %v2002_v21 }
0x10ac   : > { %v1999_v38 = vpop.permute.xlu2 %1998 }
0x10ad   : > { %v2001_v39 = vsel %vm593_vm3, %v1991_v35, %v1999_v38 }
0x10ae   : > { %v2004_v7 = vperm.slane %v2001_v39, 0 }
0x10b0   : > { %v2005_v41 = vmul.f32 %v2004_v7, %v2003_v40 }
0x10b2   : > { %v2006_v42 = vmax.f32 %v2005_v41, 0.0 }
0x10b4   : > { %v2008_v44 = vrot.slane %v2006_v42, 1  ;;  %v2962_v45 = vrot.slane %v2006_v42, 5  ;;  %v2960_v47 = vrot.slane %v2006_v42, 7 }
0x10b6   : > { %v2010_v48 = vmax.f32 %v2006_v42, %v2008_v44  ;;  %v6752_v49 = vsel %vm552_vm0, %v2008_v44, %v2960_v47  ;;  %v6755_v50 = vsel %vm552_vm0, %v2960_v47, %v2962_v45 }
0x10b8   : > { %v2012_v52 = vrot.slane %v2010_v48, 1  ;;  %v2014_v54 = vrot.slane %v2010_v48, 2  ;;  %v2016_v55 = vrot.slane %v2010_v48, 3 }
0x10ba   : > { %v2018_v57 = vsel %vm552_vm0, %v2010_v48, %v2012_v52 }
0x10bb   : > { %v2019_v51 = vsel %vm1276_vm14, %v2018_v57, %v2014_v54 }
0x10bc   : > { %v2020_v58 = vsel %vm1278_vm15, %v2019_v51, %v2016_v55 }
0x10bd   : > { %2022 = vrot.lane.b32.xlu0 %v2020_v58, %s6322_s15 }
0x112f   : > { %v2023_v1 = vpop.permute.xlu0 %2022 }
0x1130   : > { %v2025_v2 = vmax.f32 %v2020_v58, %v2023_v1  ;;  %v6329_v1 = vmov 16.0  }
0x1131   : > { %5974 = vrcp.f32 %v6329_v1 }
0x1132   : > { %v2027_v4 = vrot.slane %v2025_v2, 1  ;;  %v2029_v5 = vrot.slane %v2025_v2, 7  ;;  %v2031_v6 = vrot.slane %v2025_v2, 5 }
0x1134   : > { %v2033_v53 = vsel %vm552_vm0, %v2027_v4, %v2029_v5 }
0x1135   : > { %v2034_v56 = vsel %vm1282_vm5, %v2033_v53, %v2031_v6 }
0x1136   : > { %v2035_v8 = vpack.c.bf16 %v2034_v56, %v2034_v56 }
0x1137   : > { %v5975_v2 = vpop.eup %5974 }
0x1138   : > { %v2037_v9 = vunpack.c.l.b16 %v2035_v8  ;;  %v2305_v3 = vmul.f32 16.0, %v5975_v2 }
0x113a   : > { %v2038_v10 = vpack.c.b16 %v2037_v9, %v2037_v9  ;;  %v2306_v4 = vsub.f32 1.0, %v2305_v3 }
0x113c   : > { %v2048_v11 = vrot.slane %v2038_v10, 1  ;;  %v2042_v12 = vshll.u32 %v2038_v10, 16  ;;  %v2040_v13 = vshrl.u32 %v2038_v10, 16  ;;  %v2307_v5 = vmul.f32 %v5975_v2, %v2306_v4 }
0x113e   : > { %2049 = vrot.lane.b32.xlu2 %v2048_v11, %s6321_s30  ;;  %v2044_v14 = vrot.slane %v2042_v12, 1  ;;  %v2308_v6 = vadd.f32 %v5975_v2, %v2307_v5 }
0x1140   : > { %v2045_v15 = vor.u32 %v2044_v14, %v2040_v13 }
0x1142   : > { %2046 = vrot.lane.b32.xlu1 %v2045_v15, %s6322_s15 }
0x1198   : > { %v2050_v43 = vpop.permute.xlu2 %2049 }
0x1199   : > { %4937 = vmatmul.msk.bf16.vlgmr.msrb.gmra.mxu3 %vm2227_vm8, %v2050_v43 }
0x11b4   : > { %v2047_v31 = vpop.permute.xlu1 %2046 }
0x11b5   : > { %v2053_v46 = vsel %vm1326_vm11, %v2035_v8, %v2047_v31  ;;  %v2057_v32 = vsel %vm2055_vm12, %v2047_v31, %v2050_v43  ;;  %vm2309_vm11 = vweird.f32 %v5975_v2  ;;  %v5687_v43 = vld [vmem:[#allocation10 + $0x78] sm:$0xff]  ;;  %v5678_v31 = vld [vmem:[#allocation10 + $0x30] sm:$0xff] }
0x11b6   : > { %2238 = vmatmul.bf16.vlgmr.msra.gmra.mxu2 %v2053_v46  ;;  %2251 = vmatmul.bf16.vlgmr.msrb.gmra.mxu1 %v2057_v32  ;;  %v6777_v53 = vsel %vm2309_vm11, %v5975_v2, %v2308_v6  ;;  %v5694_v46 = vld [vmem:[#allocation10 + $0xb0] sm:$0xff] }
0x11b7   : > { %2580 = vmatpush.bf16.msrb.mxu2 %v5687_v43  ;;  %v5686_v32 = vld [vmem:[#allocation10 + $0x70] sm:$0xff]  ;;  %2568 = vmatpush.bf16.msrb.mxu0 %v5678_v31 }
0x11b8   : > { %2594 = vmatpush.bf16.msra.mxu1 %v5694_v46 }
0x11bb   : > { %2581 = vmatpush.bf16.msrb.mxu2 %v5686_v32 }
0x121c   : > { %v2265_v34 = vpop.f32.mrf.mxu3 }
0x1224   : > { %v2267_v35 = vpop.f32.mrf.mxu3 }
0x1225   : > { %v5693_v35 = vld [vmem:[#allocation10 + $0xa8] sm:$0xff] }
0x1226   : > { %2595 = vmatpush.bf16.msra.mxu1 %v5693_v35 }
0x1233   : > { %v2252_v36 = vpop.f32.mrf.mxu1 }
0x1239   : > { %v2239_v37 = vpop.f32.mrf.mxu2 }
0x123a   : > { %v2253_v21 = vadd.f32 %v2252_v36, %v2239_v37  ;;  %v5676_v36 = vld [vmem:[#allocation10 + $0x20] sm:$0xff]  ;;  %v5675_v37 = vld [vmem:[#allocation10 + $0x18] sm:$0xff] }
0x123b   : > { %v2254_v38 = vpop.f32.mrf.mxu1 }
0x123c   : > { %v6766_v39 = vadd.f32 %v2265_v34, %v2253_v21  ;;  %v5677_v34 = vld [vmem:[#allocation10 + $0x28] sm:$0xff]  ;;  %v5692_v38 = vld [vmem:[#allocation10 + $0xa0] sm:$0xff] }
0x123d   : > { %2569 = vmatpush.bf16.msrb.mxu0 %v5677_v34  ;;  %v5685_v21 = vld [vmem:[#allocation10 + $0x68] sm:$0xff]  ;;  %2596 = vmatpush.bf16.msra.mxu1 %v5692_v38 }
0x123e   : > { %v2269_v40 = vsel %vm1280_vm4, %v6766_v39, 0.0  ;;  %v2276_v7 = vmul.f32 %v6766_v39, %v6766_v39  ;;  %2582 = vmatpush.bf16.msrb.mxu2 %v5685_v21 }
0x123f   : > { %v2270_v41 = vrot.slane %v2269_v40, 4 }
0x1240   : > { %v2277_v42 = vsel %vm1280_vm4, %v2276_v7, 0.0  ;;  %v5684_v7 = vld [vmem:[#allocation10 + $0x60] sm:$0xff] }
0x1241   : > { %v2241_v44 = vpop.f32.mrf.mxu2  ;;  %v2271_v45 = vadd.f32 %v2270_v41, %v2269_v40  ;;  %v2278_v47 = vrot.slane %v2277_v42, 4  ;;  %2570 = vmatpush.bf16.msrb.mxu0 %v5676_v36  ;;  %v5674_v40 = vld [vmem:[#allocation10 + $0x10] sm:$0xff]  ;;  %v5691_v41 = vld [vmem:[#allocation10 + $0x98] sm:$0xff] }
0x1242   : > { %2583 = vmatpush.bf16.msrb.mxu2 %v5684_v7  ;;  %2597 = vmatpush.bf16.msra.mxu1 %v5691_v41  ;;  %v5683_v44 = vld [vmem:[#allocation10 + $0x58] sm:$0xff] }
0x1243   : > { %v2272_v48 = vrot.slane %v2271_v45, 2  ;;  %v2279_v52 = vadd.f32 %v2278_v47, %v2277_v42  ;;  %v5673_v42 = vld [vmem:[#allocation10 + $0x8] sm:$0xff]  ;;  %v5672_v47 = vld [vmem:[#allocation10] sm:$0xff] }
0x1245   : > { %v2273_v54 = vadd.f32 %v2272_v48, %v2271_v45  ;;  %v2280_v55 = vrot.slane %v2279_v52, 2  ;;  %2571 = vmatpush.bf16.msrb.mxu0 %v5675_v37  ;;  %v5690_v45 = vld [vmem:[#allocation10 + $0x90] sm:$0xff] }
0x1246   : > { %2584 = vmatpush.bf16.msrb.mxu2 %v5683_v44  ;;  %2598 = vmatpush.bf16.msra.mxu1 %v5690_v45  ;;  %v5682_v48 = vld [vmem:[#allocation10 + $0x50] sm:$0xff] }
0x1247   : > { %v2274_v57 = vrot.slane %v2273_v54, 1  ;;  %v2281_v51 = vadd.f32 %v2280_v55, %v2279_v52  ;;  %v5689_v52 = vld [vmem:[#allocation10 + $0x88] sm:$0xff]  ;;  %v5688_v55 = vld [vmem:[#allocation10 + $0x80] sm:$0xff] }
0x1249   : > { %v2275_v58 = vadd.f32 %v2274_v57, %v2273_v54  ;;  %v2282_v59 = vrot.slane %v2281_v51, 1  ;;  %2572 = vmatpush.bf16.msrb.mxu0 %v5674_v40  ;;  %v5681_v54 = vld [vmem:[#allocation10 + $0x48] sm:$0xff]  ;;  %v5680_v57 = vld [vmem:[#allocation10 + $0x40] sm:$0xff] }
0x124a   : > { %2585 = vmatpush.bf16.msrb.mxu2 %v5682_v48  ;;  %2599 = vmatpush.bf16.msra.mxu1 %v5689_v52 }
0x124b   : > { %2285 = vrot.lane.b32.xlu0 %v2275_v58, %s6320_s14  ;;  %v2283_v60 = vadd.f32 %v2282_v59, %v2281_v51 }
0x124d   : > { %2290 = vrot.lane.b32.xlu1 %v2283_v60, %s6320_s14  ;;  %2573 = vmatpush.bf16.msrb.mxu0 %v5673_v42 }
0x124e   : > { %2586 = vmatpush.bf16.msrb.mxu2 %v5681_v54  ;;  %2600 = vmatpush.bf16.msra.mxu1 %v5688_v55 }
0x1251   : > { %2574 = vmatpush.bf16.msrb.mxu0 %v5672_v47 }
0x1252   : > { %2587 = vmatpush.bf16.msrb.mxu2 %v5680_v57 }
0x12bd   : > { %v2286_v61 = vpop.permute.xlu0 %2285 }
0x12be   : > { %v2288_v62 = vadd.f32 %v2286_v61, %v2275_v58 }
0x12bf   : > { %v2291_v63 = vpop.permute.xlu1 %2290 }
0x12c0   : > { %v2293_v0 = vadd.f32 %v2291_v63, %v2283_v60  ;;  %2295 = vrot.lane.b32.xlu2 %v2288_v62, %s6321_s30 }
0x12c2   : > { %2300 = vrot.lane.b32.xlu0 %v2293_v0, %s6321_s30 }
0x131a   : > { %v2296_v56 = vpop.permute.xlu2 %2295 }
0x131b   : > { %v2298_v8 = vadd.f32 %v2296_v56, %v2288_v62 }
0x131d   : > { %v2311_v9 = vmul.f32 %v6777_v53, %v2298_v8 }
0x131f   : > { %2328 = vrot.lane.b32.xlu1 %v2311_v9, %s6327_s3  ;;  %v2313_v12 = vmul.f32 %v2311_v9, %v2311_v9 }
0x1334   : > { %v2301_v10 = vpop.permute.xlu0 %2300 }
0x1335   : > { %v2303_v11 = vadd.f32 %v2301_v10, %v2293_v0 }
0x1337   : > { %v2312_v13 = vmul.f32 %v6777_v53, %v2303_v11 }
0x1339   : > { %v2314_v14 = vsub.f32 %v2312_v13, %v2313_v12 }
0x133b   : > { %v2315_v15 = vmax.f32 %v2314_v14, 0.0 }
0x133d   : > { %v2316_v16 = vadd.f32 1e-05, %v2315_v15 }
0x133f   : > { %5976 = vrsqrt.f32 %v2316_v16  ;;  %vm2323_vm7 = vweird.f32 %v2316_v16 }
0x1345   : > { %v5977_v17 = vpop.eup %5976 }
0x1346   : > { %v2318_v18 = vmul.f32 %v5977_v17, %v2316_v16  ;;  %vm2324_vm13 = vweird.f32 %v5977_v17 }
0x1347   : > { %vm2325_vm8 = vmor %vm2323_vm7, %vm2324_vm13 }
0x1348   : > { %v2319_v19 = vmul.f32 %v5977_v17, %v2318_v18 }
0x134a   : > { %v2320_v20 = vmul.f32 0.5, %v2319_v19 }
0x134c   : > { %v2321_v22 = vsub.f32 1.5, %v2320_v20 }
0x134e   : > { %v2322_v23 = vmul.f32 %v5977_v17, %v2321_v22 }
0x1350   : > { %v2326_v24 = vsel %vm2325_vm8, %v5977_v17, %v2322_v23 }
0x1351   : > { %2333 = vrot.lane.b32.xlu2 %v2326_v24, %s6327_s3 }
0x1391   : > { %v2329_v25 = vpop.permute.xlu1 %2328 }
0x1392   : > { %v2331_v26 = vsel %vm829_vm10, %v2311_v9, %v2329_v25 }
0x1393   : > { %2338 = vrot.lane.b32.xlu0 %v2331_v26, %s6320_s14 }
0x13ab   : > { %v2334_v27 = vpop.permute.xlu2 %2333 }
0x13ac   : > { %v2336_v28 = vsel %vm829_vm10, %v2326_v24, %v2334_v27 }
0x13ad   : > { %2343 = vrot.lane.b32.xlu1 %v2336_v28, %s6320_s14 }
0x1405   : > { %v2339_v51 = vpop.permute.xlu0 %2338 }
0x1406   : > { %v2341_v58 = vsel %vm593_vm3, %v2331_v26, %v2339_v51 }
0x1407   : > { %v2347_v59 = vperm.slane %v2341_v58, 0 }
0x1409   : > { %v2348_v62 = vsub.f32 %v6766_v39, %v2347_v59 }
0x141f   : > { %v2344_v60 = vpop.permute.xlu1 %2343 }
0x1420   : > { %v2346_v61 = vsel %vm593_vm3, %v2336_v28, %v2344_v60 }
0x1421   : > { %v2349_v63 = vperm.slane %v2346_v61, 0 }
0x1423   : > { %v2350_v0 = vmul.f32 %v2349_v63, %v2348_v62 }
0x1425   : > { %v2351_v1 = vmax.f32 %v2350_v0, 0.0 }
0x1427   : > { %v2353_v2 = vrot.slane %v2351_v1, 1  ;;  %v2355_v3 = vrot.slane %v2351_v1, 7  ;;  %v2357_v4 = vrot.slane %v2351_v1, 5 }
0x1429   : > { %v2359_v5 = vsel %vm552_vm0, %v2353_v2, %v2355_v3  ;;  %v5719_v2 = vld [vmem:[#allocation11 + $0xb8] sm:$0xff] }
0x142a   : > { %v2360_v6 = vsel %vm1282_vm5, %v2359_v5, %v2357_v4  ;;  %v5703_v3 = vld [vmem:[#allocation11 + $0x38] sm:$0xff]  ;;  %2938 = vmatpush.bf16.msra.mxu2 %v5719_v2  ;;  %v5718_v4 = vld [vmem:[#allocation11 + $0xb0] sm:$0xff] }
0x142b   : > { %v2361_v56 = vpack.c.bf16 %v2360_v6, %v2360_v6  ;;  %2912 = vmatpush.bf16.msra.mxu3 %v5703_v3  ;;  %v5702_v5 = vld [vmem:[#allocation11 + $0x30] sm:$0xff]  ;;  %v5711_v6 = vld [vmem:[#allocation11 + $0x78] sm:$0xff] }
0x142c   : > { %2925 = vmatpush.bf16.msra.mxu0 %v5711_v6  ;;  %v5725_v2 = vld [vmem:[%s7138_s8 + $0x28] sm:$0xff] }
0x142d   : > { %v2363_v8 = vunpack.c.l.b16 %v2361_v56  ;;  %2575 = vmatmul.bf16.vlgmr.msrb.gmra.mxu0 %v2361_v56  ;;  %v5717_v56 = vld [vmem:[#allocation11 + $0xa8] sm:$0xff] }
0x142e   : > { %2939 = vmatpush.bf16.msra.mxu2 %v5718_v4  ;;  %v5733_v4 = vld [vmem:[%s7138_s8 + $0x68] sm:$0xff] }
0x142f   : > { %v2364_v9 = vpack.c.b16 %v2363_v8, %v2363_v8  ;;  %2913 = vmatpush.bf16.msra.mxu3 %v5702_v5  ;;  %v5701_v8 = vld [vmem:[#allocation11 + $0x28] sm:$0xff] }
0x1430   : > { %v5741_v6 = vld [vmem:[%s7138_s8 + $0xa8] sm:$0xff] }
0x1431   : > { %v2373_v10 = vrot.slane %v2364_v9, 1  ;;  %v2368_v11 = vshll.u32 %v2364_v9, 16  ;;  %v2366_v12 = vshrl.u32 %v2364_v9, 16  ;;  %v5716_v9 = vld [vmem:[#allocation11 + $0xa0] sm:$0xff] }
0x1432   : > { %2940 = vmatpush.bf16.msra.mxu2 %v5717_v56 }
0x1433   : > { %2601 = vmatmul.bf16.vlgmr.msra.gmra.mxu1 %v2373_v10  ;;  %v2370_v13 = vrot.slane %v2368_v11, 1  ;;  %2914 = vmatpush.bf16.msra.mxu3 %v5701_v8  ;;  %v5700_v10 = vld [vmem:[#allocation11 + $0x20] sm:$0xff]  ;;  %v5715_v11 = vld [vmem:[#allocation11 + $0x98] sm:$0xff] }
0x1435   : > { %v2371_v39 = vor.u32 %v2370_v13, %v2366_v12  ;;  %v5714_v12 = vld [vmem:[#allocation11 + $0x90] sm:$0xff] }
0x1436   : > { %2941 = vmatpush.bf16.msra.mxu2 %v5716_v9  ;;  %v5710_v13 = vld [vmem:[#allocation11 + $0x70] sm:$0xff]  ;;  %v5724_v9 = vld [vmem:[%s7138_s8 + $0x20] sm:$0xff] }
0x1437   : > { %2588 = vmatmul.bf16.vlgmr.msrb.gmra.mxu2 %v2371_v39  ;;  %2915 = vmatpush.bf16.msra.mxu3 %v5700_v10  ;;  %v5699_v39 = vld [vmem:[#allocation11 + $0x18] sm:$0xff]  ;;  %v5732_v10 = vld [vmem:[%s7138_s8 + $0x60] sm:$0xff] }
0x1438   : > { %2926 = vmatpush.bf16.msra.mxu0 %v5710_v13 }
0x143a   : > { %2942 = vmatpush.bf16.msra.mxu2 %v5715_v11 }
0x143b   : > { %2916 = vmatpush.bf16.msra.mxu3 %v5699_v39  ;;  %v5723_v39 = vld [vmem:[%s7138_s8 + $0x18] sm:$0xff] }
0x143e   : > { %2943 = vmatpush.bf16.msra.mxu2 %v5714_v12 }
0x14aa   : > { %v2576_v14 = vpop.f32.mrf.mxu0 }
0x14b0   : > { %v2602_v15 = vpop.f32.mrf.mxu1 }
0x14b2   : > { %v2578_v16 = vpop.f32.mrf.mxu0 }
0x14b3   : > { %v5698_v16 = vld [vmem:[#allocation11 + $0x10] sm:$0xff] }
0x14b4   : > { %2917 = vmatpush.bf16.msra.mxu3 %v5698_v16 }
0x14b8   : > { %v2604_v17 = vpop.f32.mrf.mxu1 }
0x14b9   : > { %v5712_v17 = vld [vmem:[#allocation11 + $0x80] sm:$0xff] }
0x14ba   : > { %v2589_v18 = vpop.f32.mrf.mxu2 }
0x14bb   : > { %v2590_v19 = vadd.f32 %v2589_v18, %v2576_v14  ;;  %v5713_v14 = vld [vmem:[#allocation11 + $0x88] sm:$0xff]  ;;  %v5708_v18 = vld [vmem:[#allocation11 + $0x60] sm:$0xff] }
0x14bc   : > { %2944 = vmatpush.bf16.msra.mxu2 %v5713_v14  ;;  %v5731_v14 = vld [vmem:[%s7138_s8 + $0x58] sm:$0xff] }
0x14bd   : > { %v6792_v20 = vadd.f32 %v2602_v15, %v2590_v19  ;;  %v5709_v15 = vld [vmem:[#allocation11 + $0x68] sm:$0xff]  ;;  %v5751_v19 = vld [vmem:[%s7138_s8 + $0xf8] sm:$0xff] }
0x14be   : > { %2927 = vmatpush.bf16.msra.mxu0 %v5709_v15 }
0x14bf   : > { %v2606_v22 = vsel %vm1280_vm4, %v6792_v20, 0.0  ;;  %v2613_v23 = vmul.f32 %v6792_v20, %v6792_v20 }
0x14c0   : > { %v2607_v24 = vrot.slane %v2606_v22, 4  ;;  %2945 = vmatpush.bf16.msra.mxu2 %v5712_v17 }
0x14c1   : > { %v2614_v25 = vsel %vm1280_vm4, %v2613_v23, 0.0  ;;  %v5707_v23 = vld [vmem:[#allocation11 + $0x58] sm:$0xff] }
0x14c2   : > { %v2591_v26 = vpop.f32.mrf.mxu2  ;;  %v2608_v27 = vadd.f32 %v2607_v24, %v2606_v22  ;;  %v2615_v28 = vrot.slane %v2614_v25, 4  ;;  %v5697_v22 = vld [vmem:[#allocation11 + $0x8] sm:$0xff]  ;;  %2928 = vmatpush.bf16.msra.mxu0 %v5708_v18  ;;  %v5750_v24 = vld [vmem:[%s7138_s8 + $0xf0] sm:$0xff] }
0x14c3   : > { %2918 = vmatpush.bf16.msra.mxu3 %v5697_v22  ;;  %v5706_v26 = vld [vmem:[#allocation11 + $0x50] sm:$0xff]  ;;  %v5720_v22 = vld [vmem:[%s7138_s8] sm:$0xff] }
0x14c4   : > { %v2609_v29 = vrot.slane %v2608_v27, 2  ;;  %v2616_v30 = vadd.f32 %v2615_v28, %v2614_v25  ;;  %3423 = vmatpush.bf16.msrb.mxu2 %v5751_v19  ;;  %v5696_v25 = vld [vmem:[#allocation11] sm:$0xff]  ;;  %v5705_v28 = vld [vmem:[#allocation11 + $0x48] sm:$0xff]  ;;  %v5722_v18 = vld [vmem:[%s7138_s8 + $0x10] sm:$0xff] }
0x14c5   : > { %v5721_v19 = vld [vmem:[%s7138_s8 + $0x8] sm:$0xff] }
0x14c6   : > { %v2610_v43 = vadd.f32 %v2609_v29, %v2608_v27  ;;  %v2617_v31 = vrot.slane %v2616_v30, 2  ;;  %2929 = vmatpush.bf16.msra.mxu0 %v5707_v23  ;;  %v5749_v27 = vld [vmem:[%s7138_s8 + $0xe8] sm:$0xff]  ;;  %v5748_v29 = vld [vmem:[%s7138_s8 + $0xe0] sm:$0xff]  ;;  %v5759_v23 = vld [vmem:[%s7138_s8 + $0x138] sm:$0xff] }
0x14c7   : > { %2919 = vmatpush.bf16.msra.mxu3 %v5696_v25  ;;  %v5730_v25 = vld [vmem:[%s7138_s8 + $0x50] sm:$0xff] }
0x14c8   : > { %v2611_v46 = vrot.slane %v2610_v43, 1  ;;  %v2618_v32 = vadd.f32 %v2617_v31, %v2616_v30  ;;  %3424 = vmatpush.bf16.msrb.mxu2 %v5750_v24  ;;  %v5747_v31 = vld [vmem:[%s7138_s8 + $0xd8] sm:$0xff]  ;;  %v6907_v24 = vpack.c.bf16 %v6752_v49, %v6752_v49  ;;  %v5729_v49 = vld [vmem:[%s7138_s8 + $0x48] sm:$0xff] }
0x14ca   : > { %v2612_v34 = vadd.f32 %v2611_v46, %v2610_v43  ;;  %v2619_v35 = vrot.slane %v2618_v32, 1  ;;  %2930 = vmatpush.bf16.msra.mxu0 %v5706_v26  ;;  %v5704_v43 = vld [vmem:[#allocation11 + $0x40] sm:$0xff] }
0x14cb   : > { %v5740_v26 = vld [vmem:[%s7138_s8 + $0xa0] sm:$0xff] }
0x14cc   : > { %2622 = vrot.lane.b32.xlu2 %v2612_v34, %s6320_s14  ;;  %v2620_v36 = vadd.f32 %v2619_v35, %v2618_v32  ;;  %3425 = vmatpush.bf16.msrb.mxu2 %v5749_v27  ;;  %v5746_v32 = vld [vmem:[%s7138_s8 + $0xd0] sm:$0xff]  ;;  %v5745_v35 = vld [vmem:[%s7138_s8 + $0xc8] sm:$0xff] }
0x14cd   : > { %v5758_v27 = vld [vmem:[%s7138_s8 + $0x130] sm:$0xff] }
0x14ce   : > { %2627 = vrot.lane.b32.xlu0 %v2620_v36, %s6320_s14  ;;  %2931 = vmatpush.bf16.msra.mxu0 %v5705_v28  ;;  %v5739_v28 = vld [vmem:[%s7138_s8 + $0x98] sm:$0xff] }
0x14d0   : > { %3426 = vmatpush.bf16.msrb.mxu2 %v5748_v29  ;;  %v5757_v29 = vld [vmem:[%s7138_s8 + $0x128] sm:$0xff] }
0x14d2   : > { %2932 = vmatpush.bf16.msra.mxu0 %v5704_v43  ;;  %v5738_v43 = vld [vmem:[%s7138_s8 + $0x90] sm:$0xff] }
0x14d4   : > { %3427 = vmatpush.bf16.msrb.mxu2 %v5747_v31  ;;  %v5767_v31 = vld [vmem:[%s7138_s8 + $0x178] sm:$0xff] }
0x14d8   : > { %3428 = vmatpush.bf16.msrb.mxu2 %v5746_v32  ;;  %v5737_v32 = vld [vmem:[%s7138_s8 + $0x88] sm:$0xff] }
0x14dc   : > { %3429 = vmatpush.bf16.msrb.mxu2 %v5745_v35  ;;  %v5755_v35 = vld [vmem:[%s7138_s8 + $0x118] sm:$0xff] }
0x1526   : > { %v2623_v37 = vpop.permute.xlu2 %2622 }
0x1527   : > { %v2625_v21 = vadd.f32 %v2623_v37, %v2612_v34 }
0x1529   : > { %2632 = vrot.lane.b32.xlu1 %v2625_v21, %s6321_s30 }
0x1540   : > { %v2628_v38 = vpop.permute.xlu0 %2627 }
0x1541   : > { %v2630_v40 = vadd.f32 %v2628_v38, %v2620_v36 }
0x1543   : > { %2637 = vrot.lane.b32.xlu2 %v2630_v40, %s6321_s30 }
0x159b   : > { %v2633_v7 = vpop.permute.xlu1 %2632 }
0x159c   : > { %v2635_v41 = vadd.f32 %v2633_v7, %v2625_v21 }
0x159d   : > { %v2638_v42 = vpop.permute.xlu2 %2637 }
0x159e   : > { %v2641_v44 = vmul.f32 %v2635_v41, %v6777_v53  ;;  %v2640_v45 = vadd.f32 %v2638_v42, %v2630_v40  ;;  %v5744_v40 = vld [vmem:[%s7138_s8 + $0xc0] sm:$0xff] }
0x159f   : > { %3430 = vmatpush.bf16.msrb.mxu2 %v5744_v40  ;;  %v5753_v40 = vld [vmem:[%s7138_s8 + $0x108] sm:$0xff] }
0x15a0   : > { %v2643_v47 = vmul.f32 %v2641_v44, %v2641_v44  ;;  %v2642_v48 = vmul.f32 %v2640_v45, %v6777_v53  ;;  %2658 = vrot.lane.b32.xlu0 %v2641_v44, %s6327_s3 }
0x15a2   : > { %v2644_v52 = vsub.f32 %v2642_v48, %v2643_v47  ;;  %v5727_v48 = vld [vmem:[%s7138_s8 + $0x38] sm:$0xff] }
0x15a3   : > { %3384 = vmatpush.bf16.msrb.mxu1 %v5727_v48 }
0x15a4   : > { %v2645_v54 = vmax.f32 %v2644_v52, 0.0 }
0x15a6   : > { %v2646_v55 = vadd.f32 1e-05, %v2645_v54 }
0x15a8   : > { %5978 = vrsqrt.f32 %v2646_v55  ;;  %vm2653_vm11 = vweird.f32 %v2646_v55 }
0x15ae   : > { %v5979_v57 = vpop.eup %5978 }
0x15af   : > { %v2648_v51 = vmul.f32 %v5979_v57, %v2646_v55  ;;  %vm2654_vm12 = vweird.f32 %v5979_v57 }
0x15b0   : > { %vm2655_vm13 = vmor %vm2653_vm11, %vm2654_vm12 }
0x15b1   : > { %v2649_v58 = vmul.f32 %v5979_v57, %v2648_v51  ;;  %v5743_v51 = vld [vmem:[%s7138_s8 + $0xb8] sm:$0xff] }
0x15b2   : > { %3410 = vmatpush.bf16.msrb.mxu0 %v5743_v51 }
0x15b3   : > { %v2650_v59 = vmul.f32 0.5, %v2649_v58 }
0x15b5   : > { %v2651_v60 = vsub.f32 1.5, %v2650_v59 }
0x15b7   : > { %v2652_v61 = vmul.f32 %v5979_v57, %v2651_v60  ;;  %v5734_v60 = vld [vmem:[%s7138_s8 + $0x70] sm:$0xff] }
0x15b9   : > { %v2656_v62 = vsel %vm2655_vm13, %v5979_v57, %v2652_v61  ;;  %v5726_v57 = vld [vmem:[%s7138_s8 + $0x30] sm:$0xff] }
0x15ba   : > { %2663 = vrot.lane.b32.xlu1 %v2656_v62, %s6327_s3  ;;  %3385 = vmatpush.bf16.msrb.mxu1 %v5726_v57 }
0x15be   : > { %3386 = vmatpush.bf16.msrb.mxu1 %v5725_v2 }
0x15c2   : > { %3387 = vmatpush.bf16.msrb.mxu1 %v5724_v9 }
0x15c6   : > { %3388 = vmatpush.bf16.msrb.mxu1 %v5723_v39 }
0x15ca   : > { %3389 = vmatpush.bf16.msrb.mxu1 %v5722_v18 }
0x15ce   : > { %3390 = vmatpush.bf16.msrb.mxu1 %v5721_v19 }
0x15d2   : > { %3391 = vmatpush.bf16.msrb.mxu1 %v5720_v22 }
0x15d6   : > { %3436 = vmatpush.bf16.msra.mxu1 %v5759_v23 }
0x15da   : > { %3437 = vmatpush.bf16.msra.mxu1 %v5758_v27 }
0x15de   : > { %3438 = vmatpush.bf16.msra.mxu1 %v5757_v29 }
0x1612   : > { %v2659_v63 = vpop.permute.xlu0 %2658 }
0x1613   : > { %v6808_v53 = vsel %vm829_vm10, %v2641_v44, %v2659_v63  ;;  %v5742_v63 = vld [vmem:[%s7138_s8 + $0xb0] sm:$0xff] }
0x1614   : > { %2668 = vrot.lane.b32.xlu2 %v6808_v53, %s6320_s14  ;;  %3411 = vmatpush.bf16.msrb.mxu0 %v5742_v63 }
0x1618   : > { %3412 = vmatpush.bf16.msrb.mxu0 %v5741_v6 }
0x161c   : > { %3413 = vmatpush.bf16.msrb.mxu0 %v5740_v26 }
0x1620   : > { %3414 = vmatpush.bf16.msrb.mxu0 %v5739_v28 }
0x1624   : > { %3415 = vmatpush.bf16.msrb.mxu0 %v5738_v43 }
0x1628   : > { %3416 = vmatpush.bf16.msrb.mxu0 %v5737_v32 }
0x162c   : > { %v2664_v0 = vpop.permute.xlu1 %2663 }
0x162d   : > { %v6813_v1 = vsel %vm829_vm10, %v2656_v62, %v2664_v0 }
0x162e   : > { %2673 = vrot.lane.b32.xlu0 %v6813_v1, %s6320_s14 }
0x166e   : > { %v2669_v30 = vpop.permute.xlu2 %2668 }
0x166f   : > { %v2671_v46 = vsel %vm593_vm3, %v6808_v53, %v2669_v30  ;;  %v5728_v30 = vld [vmem:[%s7138_s8 + $0x40] sm:$0xff] }
0x1670   : > { %v2677_v34 = vperm.slane %v2671_v46, 0  ;;  %v5756_v46 = vld [vmem:[%s7138_s8 + $0x120] sm:$0xff] }
0x1671   : > { %3439 = vmatpush.bf16.msra.mxu1 %v5756_v46 }
0x1672   : > { %v2678_v21 = vsub.f32 %v6792_v20, %v2677_v34  ;;  %v5735_v20 = vld [vmem:[%s7138_s8 + $0x78] sm:$0xff]  ;;  %v5766_v34 = vld [vmem:[%s7138_s8 + $0x170] sm:$0xff] }
0x1673   : > { %3397 = vmatpush.bf16.msrb.mxu3 %v5735_v20 }
0x1675   : > { %3440 = vmatpush.bf16.msra.mxu1 %v5755_v35 }
0x1677   : > { %3398 = vmatpush.bf16.msrb.mxu3 %v5734_v60 }
0x167b   : > { %3399 = vmatpush.bf16.msrb.mxu3 %v5733_v4 }
0x167f   : > { %3400 = vmatpush.bf16.msrb.mxu3 %v5732_v10 }
0x1683   : > { %3401 = vmatpush.bf16.msrb.mxu3 %v5731_v14 }
0x1687   : > { %3402 = vmatpush.bf16.msrb.mxu3 %v5730_v25 }
0x168b   : > { %3403 = vmatpush.bf16.msrb.mxu3 %v5729_v49 }
0x168f   : > { %3404 = vmatpush.bf16.msrb.mxu3 %v5728_v30 }
0x16a0   : > { %v2674_v36 = vpop.permute.xlu0 %2673 }
0x16a1   : > { %v2676_v37 = vsel %vm593_vm3, %v6813_v1, %v2674_v36  ;;  %v5736_v36 = vld [vmem:[%s7138_s8 + $0x80] sm:$0xff] }
0x16a2   : > { %v2679_v38 = vperm.slane %v2676_v37, 0  ;;  %v5765_v37 = vld [vmem:[%s7138_s8 + $0x168] sm:$0xff]  ;;  %3417 = vmatpush.bf16.msrb.mxu0 %v5736_v36 }
0x16a4   : > { %v2680_v7 = vmul.f32 %v2679_v38, %v2678_v21  ;;  %v5754_v21 = vld [vmem:[%s7138_s8 + $0x110] sm:$0xff]  ;;  %v5764_v38 = vld [vmem:[%s7138_s8 + $0x160] sm:$0xff] }
0x16a5   : > { %3441 = vmatpush.bf16.msra.mxu1 %v5754_v21 }
0x16a6   : > { %v2681_v41 = vmax.f32 %v2680_v7, 0.0  ;;  %v5763_v7 = vld [vmem:[%s7138_s8 + $0x158] sm:$0xff] }
0x16a8   : > { %v2683_v42 = vrot.slane %v2681_v41, 7  ;;  %v2685_v44 = vrot.slane %v2681_v41, 6  ;;  %v2691_v45 = vrot.slane %v2681_v41, 3  ;;  %v2693_v47 = vrot.slane %v2681_v41, 2 }
0x16a9   : > { %v2687_v54 = vrot.slane %v2681_v41, 5  ;;  %v2689_v61 = vrot.slane %v2681_v41, 4  ;;  %3442 = vmatpush.bf16.msra.mxu1 %v5753_v40 }
0x16aa   : > { %v2695_v52 = vsel %vm552_vm0, %v2681_v41, %v2683_v42  ;;  %v2702_v59 = vsel %vm552_vm0, %v2691_v45, %v2693_v47  ;;  %v5752_v41 = vld [vmem:[%s7138_s8 + $0x100] sm:$0xff]  ;;  %v5762_v42 = vld [vmem:[%s7138_s8 + $0x150] sm:$0xff] }
0x16ab   : > { %v2696_v55 = vsel %vm1276_vm14, %v2695_v52, %v2685_v44  ;;  %v2704_v1 = vpack.c.bf16 %v2702_v59, %v2702_v59  ;;  %v5760_v47 = vld [vmem:[%s7138_s8 + $0x140] sm:$0xff] }
0x16ac   : > { %v2697_v58 = vsel %vm1278_vm15, %v2696_v55, %v2685_v44  ;;  %v5761_v44 = vld [vmem:[%s7138_s8 + $0x148] sm:$0xff]  ;;  %v2969_v55 = vpack.c.bf16 %v6755_v50, %v6755_v50 }
0x16ad   : > { %v2698_v62 = vsel %vm1280_vm4, %v2697_v58, %v2687_v54  ;;  %v2708_v8 = vunpack.c.l.b16 %v2704_v1  ;;  %3443 = vmatpush.bf16.msra.mxu1 %v5752_v41 }
0x16ae   : > { %v2699_v53 = vsel %vm1282_vm5, %v2698_v62, %v2687_v54  ;;  %v2987_v62 = vunpack.c.l.b16 %v6907_v24  ;;  %v2988_v63 = vunpack.c.l.b16 %v2969_v55 }
0x16af   : > { %v2700_v0 = vsel %vm1284_vm6, %v2699_v53, %v2689_v61 }
0x16b0   : > { %v2701_v3 = vsel %vm589_vm2, %v2700_v0, %v2689_v61 }
0x16b1   : > { %v2703_v5 = vpack.c.bf16 %v2701_v3, %v2701_v3 }
0x16b3   : > { %v2707_v56 = vunpack.c.l.b16 %v2703_v5  ;;  %2920 = vmatmul.bf16.vlgmr.msra.gmra.mxu3 %v2703_v5  ;;  %v2989_v5 = vpack.c.b16 %v2988_v63, %v2987_v62 }
0x16b4   : > { %3449 = vmatpush.bf16.msra.mxu3 %v5767_v31 }
0x16b5   : > { %v2709_v11 = vpack.c.b16 %v2708_v8, %v2707_v56  ;;  %v2993_v10 = vshll.u32 %v2989_v5, 16  ;;  %v2991_v39 = vshrl.u32 %v2989_v5, 16 }
0x16b7   : > { %v2718_v12 = vrot.slane %v2709_v11, 1  ;;  %v2713_v13 = vshll.u32 %v2709_v11, 16  ;;  %v2711_v15 = vshrl.u32 %v2709_v11, 16 }
0x16b8   : > { %3450 = vmatpush.bf16.msra.mxu3 %v5766_v34 }
0x16b9   : > { %2946 = vmatmul.bf16.vlgmr.msra.gmra.mxu2 %v2718_v12  ;;  %v2715_v16 = vrot.slane %v2713_v13, 1  ;;  %v2995_v13 = vrot.slane %v2993_v10, 1 }
0x16bb   : > { %v2716_v17 = vor.u32 %v2715_v16, %v2711_v15  ;;  %v2996_v14 = vor.u32 %v2995_v13, %v2991_v39  ;;  %v2998_v16 = vrot.slane %v2989_v5, 1 }
0x16bc   : > { %3451 = vmatpush.bf16.msra.mxu3 %v5765_v37 }
0x16bd   : > { %2933 = vmatmul.bf16.vlgmr.msra.gmra.mxu0 %v2716_v17 }
0x16c0   : > { %3452 = vmatpush.bf16.msra.mxu3 %v5764_v38 }
0x16c4   : > { %3453 = vmatpush.bf16.msra.mxu3 %v5763_v7 }
0x16c8   : > { %3454 = vmatpush.bf16.msra.mxu3 %v5762_v42 }
0x16c9   : > { %3431 = vmatmul.bf16.vlgmr.msrb.gmra.mxu2 %v6907_v24 }
0x16cc   : > { %3455 = vmatpush.bf16.msra.mxu3 %v5761_v44 }
0x16d0   : > { %3456 = vmatpush.bf16.msra.mxu3 %v5760_v47 }
0x1736   : > { %v2921_v45 = vpop.f32.mrf.mxu3 }
0x173a   : > { %v2934_v48 = vpop.f32.mrf.mxu0 }
0x173b   : > { %v2935_v52 = vadd.f32 %v2934_v48, %v2921_v45 }
0x173c   : > { %v2947_v20 = vpop.f32.mrf.mxu2 }
0x173d   : > { %v2948_v54 = vadd.f32 %v2947_v20, %v2935_v52 }
0x173e   : > { %v2923_v57 = vpop.f32.mrf.mxu3 }
0x173f   : > { %v2952_v51 = vrot.slane %v2948_v54, 1  ;;  %v2954_v58 = vrot.slane %v2948_v54, 7  ;;  %v2956_v59 = vrot.slane %v2948_v54, 5 }
0x1741   : > { %v2959_v60 = vsel %vm552_vm0, %v2954_v58, %v2956_v59  ;;  %v2958_v61 = vsel %vm552_vm0, %v2952_v51, %v2954_v58 }
0x1742   : > { %v2967_v53 = vpack.c.bf16 %v2959_v60, %v2959_v60  ;;  %v2936_v0 = vpop.f32.mrf.mxu0  ;;  %v2966_v1 = vpack.c.bf16 %v2958_v61, %v2958_v61 }
0x1744   : > { %v2973_v2 = vunpack.c.l.b16 %v2967_v53  ;;  %v2949_v3 = vpop.f32.mrf.mxu2  ;;  %v2972_v4 = vunpack.c.l.b16 %v2966_v1  ;;  %3392 = vmatmul.bf16.vlgmr.msrb.gmra.mxu1 %v2966_v1 }
0x1746   : > { %v2974_v50 = vpack.c.b16 %v2973_v2, %v2972_v4 }
0x1748   : > { %v2983_v6 = vrot.slane %v2974_v50, 1  ;;  %v2978_v56 = vshll.u32 %v2974_v50, 16  ;;  %v2976_v8 = vshrl.u32 %v2974_v50, 16 }
0x174a   : > { %3418 = vmatmul.bf16.vlgmr.msrb.gmra.mxu0 %v2983_v6  ;;  %v2980_v9 = vrot.slane %v2978_v56, 1 }
0x174c   : > { %v3432_v11 = vpop.f32.mrf.mxu2  ;;  %v2981_v12 = vor.u32 %v2980_v9, %v2976_v8 }
0x174e   : > { %3405 = vmatmul.bf16.vlgmr.msrb.gmra.mxu3 %v2981_v12 }
0x1754   : > { %v3434_v15 = vpop.f32.mrf.mxu2  ;;  %3444 = vmatmul.bf16.vlgmr.msra.gmra.mxu1 %v2996_v14 }
0x1755   : > { %v5775_v15 = vld [vmem:[#allocation13 + $0x38] sm:$0xff] }
0x1756   : > { %3774 = vmatpush.bf16.msra.mxu0 %v5775_v15 }
0x175e   : > { %3457 = vmatmul.bf16.vlgmr.msra.gmra.mxu3 %v2998_v16  ;;  %v5791_v16 = vld [vmem:[#allocation13 + $0xb8] sm:$0xff] }
0x175f   : > { %3800 = vmatpush.bf16.msrb.mxu1 %v5791_v16 }
0x17c1   : > { %v3393_v17 = vpop.f32.mrf.mxu1 }
0x17c7   : > { %v3419_v18 = vpop.f32.mrf.mxu0 }
0x17c9   : > { %v3395_v19 = vpop.f32.mrf.mxu1 }
0x17ca   : > { %v5790_v19 = vld [vmem:[#allocation13 + $0xb0] sm:$0xff] }
0x17cb   : > { %3801 = vmatpush.bf16.msrb.mxu1 %v5790_v19 }
0x17cf   : > { %v3421_v22 = vpop.f32.mrf.mxu0 }
0x17d0   : > { %v5782_v22 = vld [vmem:[#allocation13 + $0x70] sm:$0xff] }
0x17d1   : > { %v3406_v23 = vpop.f32.mrf.mxu3  ;;  %v3445_v24 = vpop.f32.mrf.mxu1 }
0x17d2   : > { %v3407_v25 = vadd.f32 %v3406_v23, %v3393_v17  ;;  %v5783_v17 = vld [vmem:[#allocation13 + $0x78] sm:$0xff]  ;;  %v5773_v23 = vld [vmem:[#allocation13 + $0x28] sm:$0xff] }
0x17d3   : > { %3787 = vmatpush.bf16.msra.mxu2 %v5783_v17 }
0x17d4   : > { %v3420_v26 = vadd.f32 %v3419_v18, %v3407_v25  ;;  %v5774_v18 = vld [vmem:[#allocation13 + $0x30] sm:$0xff]  ;;  %v5781_v25 = vld [vmem:[#allocation13 + $0x68] sm:$0xff] }
0x17d5   : > { %3775 = vmatpush.bf16.msra.mxu0 %v5774_v18 }
0x17d6   : > { %v3433_v28 = vadd.f32 %v3432_v11, %v3420_v26  ;;  %v5772_v26 = vld [vmem:[#allocation13 + $0x20] sm:$0xff] }
0x17d7   : > { %3788 = vmatpush.bf16.msra.mxu2 %v5782_v22 }
0x17d8   : > { %v3446_v29 = vadd.f32 %v3445_v24, %v3433_v28  ;;  %v5789_v24 = vld [vmem:[#allocation13 + $0xa8] sm:$0xff]  ;;  %v5770_v28 = vld [vmem:[#allocation13 + $0x10] sm:$0xff] }
0x17d9   : > { %v3408_v27 = vpop.f32.mrf.mxu3  ;;  %v3447_v49 = vpop.f32.mrf.mxu1  ;;  %3776 = vmatpush.bf16.msra.mxu0 %v5773_v23  ;;  %3802 = vmatpush.bf16.msrb.mxu1 %v5789_v24 }
0x17da   : > { %v5788_v27 = vld [vmem:[#allocation13 + $0xa0] sm:$0xff]  ;;  %v5771_v49 = vld [vmem:[#allocation13 + $0x18] sm:$0xff] }
0x17db   : > { %3789 = vmatpush.bf16.msra.mxu2 %v5781_v25 }
0x17dd   : > { %3777 = vmatpush.bf16.msra.mxu0 %v5772_v26  ;;  %3803 = vmatpush.bf16.msrb.mxu1 %v5788_v27 }
0x17e1   : > { %v3458_v30 = vpop.f32.mrf.mxu3  ;;  %3778 = vmatpush.bf16.msra.mxu0 %v5771_v49 }
0x17e2   : > { %v6984_v43 = vadd.f32 %v3458_v30, %v3446_v29  ;;  %v5780_v29 = vld [vmem:[#allocation13 + $0x60] sm:$0xff]  ;;  %v5787_v30 = vld [vmem:[#allocation13 + $0x98] sm:$0xff] }
0x17e3   : > { %3790 = vmatpush.bf16.msra.mxu2 %v5780_v29  ;;  %3804 = vmatpush.bf16.msrb.mxu1 %v5787_v30 }
0x17e4   : > { %v3462_v31 = vrot.slane %v6984_v43, 4  ;;  %v3468_v46 = vmul.f32 %v6984_v43, %v6984_v43 }
0x17e5   : > { %3779 = vmatpush.bf16.msra.mxu0 %v5770_v28 }
0x17e6   : > { %v3463_v32 = vadd.f32 %v3462_v31, %v6984_v43  ;;  %v3469_v34 = vrot.slane %v3468_v46, 4  ;;  %v5769_v31 = vld [vmem:[#allocation13 + $0x8] sm:$0xff] }
0x17e8   : > { %v3464_v35 = vrot.slane %v3463_v32, 2  ;;  %v3470_v36 = vadd.f32 %v3469_v34, %v3468_v46  ;;  %v5779_v46 = vld [vmem:[#allocation13 + $0x58] sm:$0xff]  ;;  %v5768_v34 = vld [vmem:[#allocation13] sm:$0xff] }
0x17e9   : > { %v3460_v37 = vpop.f32.mrf.mxu3  ;;  %3780 = vmatpush.bf16.msra.mxu0 %v5769_v31  ;;  %3791 = vmatpush.bf16.msra.mxu2 %v5779_v46 }
0x17ea   : > { %v3465_v21 = vadd.f32 %v3464_v35, %v3463_v32  ;;  %v3471_v38 = vrot.slane %v3470_v36, 2  ;;  %v5786_v32 = vld [vmem:[#allocation13 + $0x90] sm:$0xff]  ;;  %v5777_v37 = vld [vmem:[#allocation13 + $0x48] sm:$0xff] }
0x17eb   : > { %3805 = vmatpush.bf16.msrb.mxu1 %v5786_v32  ;;  %v5778_v35 = vld [vmem:[#allocation13 + $0x50] sm:$0xff] }
0x17ec   : > { %v3466_v40 = vrot.slane %v3465_v21, 1  ;;  %v3472_v7 = vadd.f32 %v3471_v38, %v3470_v36  ;;  %v5785_v36 = vld [vmem:[#allocation13 + $0x88] sm:$0xff]  ;;  %v5776_v38 = vld [vmem:[#allocation13 + $0x40] sm:$0xff] }
0x17ed   : > { %3781 = vmatpush.bf16.msra.mxu0 %v5768_v34  ;;  %3792 = vmatpush.bf16.msra.mxu2 %v5778_v35 }
0x17ee   : > { %v3467_v41 = vadd.f32 %v3466_v40, %v3465_v21  ;;  %v3473_v42 = vrot.slane %v3472_v7, 1  ;;  %v5784_v21 = vld [vmem:[#allocation13 + $0x80] sm:$0xff] }
0x17ef   : > { %3806 = vmatpush.bf16.msrb.mxu1 %v5785_v36 }
0x17f0   : > { %3476 = vrot.lane.b32.xlu1 %v3467_v41, %s6320_s14  ;;  %v3474_v44 = vadd.f32 %v3473_v42, %v3472_v7 }
0x17f1   : > { %3793 = vmatpush.bf16.msra.mxu2 %v5777_v37 }
0x17f2   : > { %3481 = vrot.lane.b32.xlu2 %v3474_v44, %s6320_s14 }
0x17f3   : > { %3807 = vmatpush.bf16.msrb.mxu1 %v5784_v21 }
0x17f5   : > { %3794 = vmatpush.bf16.msra.mxu2 %v5776_v38 }
0x184c   : > { %v3482_v45 = vpop.permute.xlu2 %3481 }
0x184d   : > { %v3484_v47 = vadd.f32 %v3482_v45, %v3474_v44 }
0x184f   : > { %3491 = vrot.lane.b32.xlu1 %v3484_v47, %s6321_s30 }
0x1862   : > { %v3477_v48 = vpop.permute.xlu1 %3476 }
0x1863   : > { %v3479_v52 = vadd.f32 %v3477_v48, %v3467_v41 }
0x1865   : > { %3486 = vrot.lane.b32.xlu0 %v3479_v52, %s6321_s30 }
0x18c1   : > { %v3492_v20 = vpop.permute.xlu1 %3491 }
0x18c2   : > { %v3494_v54 = vadd.f32 %v3492_v20, %v3484_v47 }
0x18c4   : > { %3501 = vrot.lane.b32.xlu0 %v3494_v54, %s6322_s15 }
0x18d7   : > { %v3487_v55 = vpop.permute.xlu0 %3486 }
0x18d8   : > { %v3489_v57 = vadd.f32 %v3487_v55, %v3479_v52 }
0x18da   : > { %3496 = vrot.lane.b32.xlu2 %v3489_v57, %s6322_s15 }
0x1934   : > { %v3497_v51 = vpop.permute.xlu2 %3496 }
0x1935   : > { %v3499_v58 = vadd.f32 %v3497_v51, %v3489_v57 }
0x1936   : > { %v3502_v59 = vpop.permute.xlu0 %3501 }
0x1937   : > { %v3505_v60 = vmul.f32 %v3499_v58, %v6705_v33  ;;  %v3504_v61 = vadd.f32 %v3502_v59, %v3494_v54 }
0x1939   : > { %v3507_v62 = vmul.f32 %v3505_v60, %v3505_v60  ;;  %v3506_v63 = vmul.f32 %v3504_v61, %v6705_v33  ;;  %3522 = vrot.lane.b32.xlu1 %v3505_v60, %s6326_s17 }
0x193b   : > { %v3508_v53 = vsub.f32 %v3506_v63, %v3507_v62 }
0x193d   : > { %v3509_v0 = vmax.f32 %v3508_v53, 0.0 }
0x193f   : > { %v3510_v1 = vadd.f32 1e-05, %v3509_v0 }
0x1941   : > { %5980 = vrsqrt.f32 %v3510_v1  ;;  %vm3517_vm8 = vweird.f32 %v3510_v1 }
0x1947   : > { %v5981_v2 = vpop.eup %5980 }
0x1948   : > { %v3512_v3 = vmul.f32 %v5981_v2, %v3510_v1  ;;  %vm3518_vm7 = vweird.f32 %v5981_v2 }
0x1949   : > { %vm3519_vm12 = vmor %vm3517_vm8, %vm3518_vm7 }
0x194a   : > { %v3513_v4 = vmul.f32 %v5981_v2, %v3512_v3 }
0x194c   : > { %v3514_v5 = vmul.f32 0.5, %v3513_v4 }
0x194e   : > { %v3515_v50 = vsub.f32 1.5, %v3514_v5 }
0x1950   : > { %v3516_v6 = vmul.f32 %v5981_v2, %v3515_v50 }
0x1952   : > { %v3520_v56 = vsel %vm3519_vm12, %v5981_v2, %v3516_v6 }
0x1953   : > { %3527 = vrot.lane.b32.xlu2 %v3520_v56, %s6326_s17 }
0x19ab   : > { %v3523_v8 = vpop.permute.xlu1 %3522 }
0x19ac   : > { %v3525_v9 = vsel %vm818_vm9, %v3505_v60, %v3523_v8 }
0x19ad   : > { %v3528_v10 = vpop.permute.xlu2 %3527  ;;  %3532 = vrot.lane.b32.xlu0 %v3525_v9, %s6327_s3 }
0x19ae   : > { %v3530_v11 = vsel %vm818_vm9, %v3520_v56, %v3528_v10 }
0x19af   : > { %3537 = vrot.lane.b32.xlu1 %v3530_v11, %s6327_s3 }
0x1a1f   : > { %v3533_v12 = vpop.permute.xlu0 %3532 }
0x1a20   : > { %v3535_v13 = vsel %vm829_vm10, %v3525_v9, %v3533_v12 }
0x1a21   : > { %3542 = vrot.lane.b32.xlu2 %v3535_v13, %s6320_s14  ;;  %v3538_v39 = vpop.permute.xlu1 %3537 }
0x1a22   : > { %v3540_v14 = vsel %vm829_vm10, %v3530_v11, %v3538_v39 }
0x1a23   : > { %3547 = vrot.lane.b32.xlu0 %v3540_v14, %s6320_s14 }
0x1a7b   : > { %v3543_v40 = vpop.permute.xlu2 %3542 }
0x1a7c   : > { %v3545_v7 = vsel %vm593_vm3, %v3535_v13, %v3543_v40 }
0x1a7d   : > { %v3551_v41 = vperm.slane %v3545_v7, 0 }
0x1a7f   : > { %v3552_v45 = vsub.f32 %v6984_v43, %v3551_v41 }
0x1a95   : > { %v3548_v42 = vpop.permute.xlu0 %3547 }
0x1a96   : > { %v3550_v44 = vsel %vm593_vm3, %v3540_v14, %v3548_v42 }
0x1a97   : > { %v3553_v47 = vperm.slane %v3550_v44, 0 }
0x1a99   : > { %v3554_v48 = vmul.f32 %v3553_v47, %v3552_v45 }
0x1a9b   : > { %v3555_v52 = vmax.f32 %v3554_v48, 0.0 }
0x1a9d   : > { %v3557_v20 = vrot.slane %v3555_v52, 1  ;;  %v3559_v54 = vrot.slane %v3555_v52, 7  ;;  %v3561_v55 = vrot.slane %v3555_v52, 5 }
0x1a9f   : > { %v3564_v57 = vsel %vm552_vm0, %v3559_v54, %v3561_v55  ;;  %v3563_v51 = vsel %vm552_vm0, %v3557_v20, %v3559_v54 }
0x1aa0   : > { %v3566_v58 = vpack.c.bf16 %v3564_v57, %v3564_v57  ;;  %v3565_v59 = vpack.c.bf16 %v3563_v51, %v3563_v51 }
0x1aa2   : > { %v3569_v60 = vunpack.c.l.b16 %v3565_v59  ;;  %v3570_v61 = vunpack.c.l.b16 %v3566_v58  ;;  %3782 = vmatmul.bf16.vlgmr.msra.gmra.mxu0 %v3565_v59  ;;  %v5799_v58 = vld [vmem:[#allocation14 + $0x38] sm:$0xff] }
0x1aa3   : > { %v5815_v59 = vld [vmem:[#allocation14 + $0xb8] sm:$0xff]  ;;  %4157 = vmatpush.bf16.msrb.mxu3 %v5799_v58 }
0x1aa4   : > { %v3571_v62 = vpack.c.b16 %v3570_v61, %v3569_v60  ;;  %v5807_v60 = vld [vmem:[#allocation14 + $0x78] sm:$0xff]  ;;  %4185 = vmatpush.bf16.msrb.mxu2 %v5815_v59  ;;  %v5798_v61 = vld [vmem:[#allocation14 + $0x30] sm:$0xff] }
0x1aa5   : > { %4171 = vmatpush.bf16.msrb.mxu0 %v5807_v60 }
0x1aa6   : > { %v3580_v63 = vrot.slane %v3571_v62, 1  ;;  %v3575_v53 = vshll.u32 %v3571_v62, 16  ;;  %v3573_v43 = vshrl.u32 %v3571_v62, 16  ;;  %v5814_v62 = vld [vmem:[#allocation14 + $0xb0] sm:$0xff] }
0x1aa7   : > { %4158 = vmatpush.bf16.msrb.mxu3 %v5798_v61 }
0x1aa8   : > { %3808 = vmatmul.bf16.vlgmr.msrb.gmra.mxu1 %v3580_v63  ;;  %v3577_v0 = vrot.slane %v3575_v53, 1  ;;  %4186 = vmatpush.bf16.msrb.mxu2 %v5814_v62  ;;  %v5797_v63 = vld [vmem:[#allocation14 + $0x28] sm:$0xff]  ;;  %v5806_v53 = vld [vmem:[#allocation14 + $0x70] sm:$0xff] }
0x1aa9   : > { %4172 = vmatpush.bf16.msrb.mxu0 %v5806_v53 }
0x1aaa   : > { %v3578_v1 = vor.u32 %v3577_v0, %v3573_v43  ;;  %v5813_v43 = vld [vmem:[#allocation14 + $0xa8] sm:$0xff]  ;;  %v5796_v0 = vld [vmem:[#allocation14 + $0x20] sm:$0xff] }
0x1aab   : > { %4159 = vmatpush.bf16.msrb.mxu3 %v5797_v63 }
0x1aac   : > { %3795 = vmatmul.bf16.vlgmr.msra.gmra.mxu2 %v3578_v1  ;;  %v5805_v1 = vld [vmem:[#allocation14 + $0x68] sm:$0xff] }
0x1aad   : > { %4187 = vmatpush.bf16.msrb.mxu2 %v5813_v43  ;;  %4173 = vmatpush.bf16.msrb.mxu0 %v5805_v1 }
0x1aaf   : > { %4160 = vmatpush.bf16.msrb.mxu3 %v5796_v0 }
0x1b1f   : > { %v3783_v2 = vpop.f32.mrf.mxu0 }
0x1b25   : > { %v3809_v3 = vpop.f32.mrf.mxu1 }
0x1b27   : > { %v3785_v4 = vpop.f32.mrf.mxu0 }
0x1b28   : > { %v5804_v4 = vld [vmem:[#allocation14 + $0x60] sm:$0xff] }
0x1b29   : > { %4174 = vmatpush.bf16.msrb.mxu0 %v5804_v4 }
0x1b2d   : > { %v3811_v5 = vpop.f32.mrf.mxu1 }
0x1b2e   : > { %v5811_v5 = vld [vmem:[#allocation14 + $0x98] sm:$0xff] }
0x1b2f   : > { %v3796_v50 = vpop.f32.mrf.mxu2 }
0x1b30   : > { %v3797_v6 = vadd.f32 %v3796_v50, %v3783_v2  ;;  %v5812_v2 = vld [vmem:[#allocation14 + $0xa0] sm:$0xff]  ;;  %v5794_v50 = vld [vmem:[#allocation14 + $0x10] sm:$0xff] }
0x1b31   : > { %4188 = vmatpush.bf16.msrb.mxu2 %v5812_v2 }
0x1b32   : > { %v7013_v56 = vadd.f32 %v3809_v3, %v3797_v6  ;;  %v5795_v3 = vld [vmem:[#allocation14 + $0x18] sm:$0xff] }
0x1b33   : > { %4161 = vmatpush.bf16.msrb.mxu3 %v5795_v3  ;;  %v5803_v6 = vld [vmem:[#allocation14 + $0x58] sm:$0xff] }
0x1b34   : > { %v3813_v8 = vrot.slane %v7013_v56, 4  ;;  %v3819_v9 = vmul.f32 %v7013_v56, %v7013_v56  ;;  %4175 = vmatpush.bf16.msrb.mxu0 %v5803_v6  ;;  %v5984_v6 = vld [vmem:[%s6548_s20] sm:$0xff] }
0x1b35   : > { %4189 = vmatpush.bf16.msrb.mxu2 %v5811_v5 }
0x1b36   : > { %v3814_v10 = vadd.f32 %v3813_v8, %v7013_v56  ;;  %v3820_v11 = vrot.slane %v3819_v9, 4  ;;  %v5810_v8 = vld [vmem:[#allocation14 + $0x90] sm:$0xff] }
0x1b37   : > { %v3798_v12 = vpop.f32.mrf.mxu2  ;;  %4162 = vmatpush.bf16.msrb.mxu3 %v5794_v50  ;;  %v5820_v50 = vld [vmem:[%s7141_s11 + $0x20] sm:$0xff] }
0x1b38   : > { %v3815_v13 = vrot.slane %v3814_v10, 2  ;;  %v3821_v39 = vadd.f32 %v3820_v11, %v3819_v9  ;;  %v5793_v9 = vld [vmem:[#allocation14 + $0x8] sm:$0xff]  ;;  %v5792_v12 = vld [vmem:[#allocation14] sm:$0xff] }
0x1b39   : > { %4190 = vmatpush.bf16.msrb.mxu2 %v5810_v8  ;;  %v5809_v11 = vld [vmem:[#allocation14 + $0x88] sm:$0xff]  ;;  %v4201_v8 = vpack.c.bf16 %v5984_v6, %v5984_v6 }
0x1b3a   : > { %v3816_v14 = vadd.f32 %v3815_v13, %v3814_v10  ;;  %v3822_v15 = vrot.slane %v3821_v39, 2  ;;  %v5802_v10 = vld [vmem:[#allocation14 + $0x50] sm:$0xff]  ;;  %v5801_v13 = vld [vmem:[#allocation14 + $0x48] sm:$0xff] }
0x1b3b   : > { %4163 = vmatpush.bf16.msrb.mxu3 %v5793_v9  ;;  %4176 = vmatpush.bf16.msrb.mxu0 %v5802_v10  ;;  %v5985_v9 = vld [vmem:[%s6548_s20 + $0x8] sm:$0xff] }
0x1b3c   : > { %v3817_v16 = vrot.slane %v3816_v14, 1  ;;  %v3823_v17 = vadd.f32 %v3822_v15, %v3821_v39  ;;  %v5808_v39 = vld [vmem:[#allocation14 + $0x80] sm:$0xff]  ;;  %v4202_v10 = vpack.c.bf16 %v5985_v9, %v5985_v9 }
0x1b3d   : > { %4191 = vmatpush.bf16.msrb.mxu2 %v5809_v11  ;;  %v5800_v15 = vld [vmem:[#allocation14 + $0x40] sm:$0xff] }
0x1b3e   : > { %v3818_v18 = vadd.f32 %v3817_v16, %v3816_v14  ;;  %v3824_v19 = vrot.slane %v3823_v17, 1  ;;  %v5824_v11 = vld [vmem:[%s7141_s11 + $0x40] sm:$0xff] }
0x1b3f   : > { %4164 = vmatpush.bf16.msrb.mxu3 %v5792_v12  ;;  %4177 = vmatpush.bf16.msrb.mxu0 %v5801_v13  ;;  %v4211_v12 = vunpack.c.l.b16 %v4201_v8  ;;  %v4212_v13 = vunpack.c.l.b16 %v4202_v10 }
0x1b40   : > { %3827 = vrot.lane.b32.xlu1 %v3818_v18, %s6320_s14  ;;  %v3825_v22 = vadd.f32 %v3824_v19, %v3823_v17  ;;  %v5827_v19 = vld [vmem:[%s7141_s11 + $0x58] sm:$0xff] }
0x1b41   : > { %4192 = vmatpush.bf16.msrb.mxu2 %v5808_v39  ;;  %v5819_v39 = vld [vmem:[%s7141_s11 + $0x18] sm:$0xff] }
0x1b42   : > { %3832 = vrot.lane.b32.xlu2 %v3825_v22, %s6320_s14 }
0x1b43   : > { %4178 = vmatpush.bf16.msrb.mxu0 %v5800_v15  ;;  %4331 = vmatpush.bf16.msra.mxu3 %v5827_v19  ;;  %v5818_v15 = vld [vmem:[%s7141_s11 + $0x10] sm:$0xff] }
0x1b9c   : > { %v3833_v23 = vpop.permute.xlu2 %3832 }
0x1b9d   : > { %v3835_v24 = vadd.f32 %v3833_v23, %v3825_v22  ;;  %v5822_v23 = vld [vmem:[%s7141_s11 + $0x30] sm:$0xff] }
0x1b9f   : > { %3842 = vrot.lane.b32.xlu1 %v3835_v24, %s6321_s30 }
0x1bb2   : > { %v3828_v25 = vpop.permute.xlu1 %3827 }
0x1bb3   : > { %v3830_v26 = vadd.f32 %v3828_v25, %v3818_v18  ;;  %v5823_v18 = vld [vmem:[%s7141_s11 + $0x38] sm:$0xff] }
0x1bb4   : > { %4313 = vmatpush.bf16.msra.mxu1 %v5823_v18 }
0x1bb5   : > { %3837 = vrot.lane.b32.xlu0 %v3830_v26, %s6321_s30  ;;  %s4358_s30 = sshll.u32 %s4355_s19, 4  ;;  %s4359_s30 = int_to_ptr.hbm [resolvable:$true] %s4358_s30 }
0x1bb6   : > { %s6240_s25 = sshra.s32 %s4359_s30, 4  ;;  %s6241_s25 = int_to_ptr.hbm [resolvable:$true] %s6240_s25 }
0x1bb7   : > { %p6247_p3 = scmp.lt.s32.totalorder %s6241_s25, %s7142_s12 }
0x1bb8   : > { %4314 = vmatpush.bf16.msra.mxu1 %v5822_v23 }
0x1c11   : > { %v3843_v27 = vpop.permute.xlu1 %3842 }
0x1c12   : > { %v3845_v49 = vadd.f32 %v3843_v27, %v3835_v24  ;;  %v5826_v24 = vld [vmem:[%s7141_s11 + $0x50] sm:$0xff] }
0x1c13   : > { %4332 = vmatpush.bf16.msra.mxu3 %v5826_v24 }
0x1c14   : > { %3852 = vrot.lane.b32.xlu0 %v3845_v49, %s6322_s15 }
0x1c27   : > { %v3838_v28 = vpop.permute.xlu0 %3837 }
0x1c28   : > { %v3840_v29 = vadd.f32 %v3838_v28, %v3830_v26  ;;  %v5821_v28 = vld [vmem:[%s7141_s11 + $0x28] sm:$0xff] }
0x1c29   : > { %4315 = vmatpush.bf16.msra.mxu1 %v5821_v28 }
0x1c2a   : > { %3847 = vrot.lane.b32.xlu2 %v3840_v29, %s6322_s15  ;;  %s4344_s15 = scalar_lea.sflag [#allocation4], %s537_s27 }
0x1c2d   : > { %4316 = vmatpush.bf16.msra.mxu1 %v5820_v50 }
0x1c31   : > { %4317 = vmatpush.bf16.msra.mxu1 %v5819_v39 }
0x1c35   : > { %4318 = vmatpush.bf16.msra.mxu1 %v5818_v15 }
0x1c84   : > { %v3848_v30 = vpop.permute.xlu2 %3847 }
0x1c85   : > { %v3850_v31 = vadd.f32 %v3848_v30, %v3840_v29  ;;  %v5825_v29 = vld [vmem:[%s7141_s11 + $0x48] sm:$0xff] }
0x1c86   : > { %v3853_v46 = vpop.permute.xlu0 %3852  ;;  %4333 = vmatpush.bf16.msra.mxu3 %v5825_v29 }
0x1c87   : > { %v3856_v32 = vmul.f32 %v3850_v31, %v6705_v33  ;;  %v3855_v34 = vadd.f32 %v3853_v46, %v3845_v49 }
0x1c89   : > { %v3858_v35 = vmul.f32 %v3856_v32, %v3856_v32  ;;  %v3857_v36 = vmul.f32 %v3855_v34, %v6705_v33  ;;  %3873 = vrot.lane.b32.xlu1 %v3856_v32, %s6326_s17 }
0x1c8a   : > { %4334 = vmatpush.bf16.msra.mxu3 %v5824_v11 }
0x1c8b   : > { %v3859_v37 = vsub.f32 %v3857_v36, %v3858_v35 }
0x1c8d   : > { %v3860_v21 = vmax.f32 %v3859_v37, 0.0 }
0x1c8f   : > { %v3861_v38 = vadd.f32 1e-05, %v3860_v21 }
0x1c91   : > { %5982 = vrsqrt.f32 %v3861_v38  ;;  %vm3868_vm13 = vweird.f32 %v3861_v38 }
0x1c97   : > { %v5983_v40 = vpop.eup %5982 }
0x1c98   : > { %v3863_v7 = vmul.f32 %v5983_v40, %v3861_v38  ;;  %vm3869_vm11 = vweird.f32 %v5983_v40 }
0x1c99   : > { %vm3870_vm7 = vmor %vm3868_vm13, %vm3869_vm11 }
0x1c9a   : > { %v3864_v41 = vmul.f32 %v5983_v40, %v3863_v7 }
0x1c9c   : > { %v3865_v42 = vmul.f32 0.5, %v3864_v41 }
0x1c9e   : > { %v3866_v44 = vsub.f32 1.5, %v3865_v42 }
0x1ca0   : > { %v3867_v45 = vmul.f32 %v5983_v40, %v3866_v44 }
0x1ca2   : > { %v3871_v47 = vsel %vm3870_vm7, %v5983_v40, %v3867_v45 }
0x1ca3   : > { %3878 = vrot.lane.b32.xlu2 %v3871_v47, %s6326_s17  ;;  %s6242_s17 = scalar_lea.hbm %s6241_s25, 16 }
0x1ca4   : > { %p6243_p0 = scmp.ne.s32.totalorder %s6241_s25, %s6242_s17  ;;  %p6248_p4 = scmp.lt.s32.totalorder %s6246_s5, %s6242_s17 }
0x1ca6   : > { %p6244_p1 = pnand %p6243_p0, %p6434_p5  ;;  %p6249_p7 = por %p6248_p4, %p6247_p3 }
0x1ca8   : > { %p6245_p2 = pneg %p6244_p1 }
0x1caa   : > { %p6250_p8 = pnand %p6249_p7, %p6245_p2 }
0x1cfb   : > { %v3874_v48 = vpop.permute.xlu1 %3873 }
0x1cfc   : > { %v3876_v33 = vsel %vm818_vm9, %v3856_v32, %v3874_v48 }
0x1cfd   : > { %v3879_v52 = vpop.permute.xlu2 %3878  ;;  %3883 = vrot.lane.b32.xlu0 %v3876_v33, %s6327_s3 }
0x1cfe   : > { %v3881_v20 = vsel %vm818_vm9, %v3871_v47, %v3879_v52 }
0x1cff   : > { %3888 = vrot.lane.b32.xlu1 %v3881_v20, %s6327_s3 }
0x1d6f   : > { %v3884_v54 = vpop.permute.xlu0 %3883 }
0x1d70   : > { %v3886_v55 = vsel %vm829_vm10, %v3876_v33, %v3884_v54 }
0x1d71   : > { %3893 = vrot.lane.b32.xlu2 %v3886_v55, %s6320_s14  ;;  %v3889_v57 = vpop.permute.xlu1 %3888 }
0x1d72   : > { %v3891_v51 = vsel %vm829_vm10, %v3881_v20, %v3889_v57 }
0x1d73   : > { %3898 = vrot.lane.b32.xlu0 %v3891_v51, %s6320_s14  ;;  %s4356_s14 = sshll.u32 %s539_s23, 4  ;;  %s4357_s14 = int_to_ptr.vmem [resolvable:$true] %s4356_s14 }
0x1dcb   : > { %v3894_v14 = vpop.permute.xlu2 %3893 }
0x1dcc   : > { %v3896_v16 = vsel %vm593_vm3, %v3886_v55, %v3894_v14  ;;  %v4213_v14 = vpack.c.b16 %v4212_v13, %v4211_v12 }
0x1dcd   : > { %v3902_v17 = vperm.slane %v3896_v16, 0  ;;  %v5817_v16 = vld [vmem:[%s7141_s11 + $0x8] sm:$0xff] }
0x1dce   : > { %4319 = vmatpush.bf16.msra.mxu1 %v5817_v16 }
0x1dcf   : > { %v3903_v26 = vsub.f32 %v7013_v56, %v3902_v17  ;;  %v5816_v17 = vld [vmem:[%s7141_s11] sm:$0xff] }
0x1dd2   : > { %4320 = vmatpush.bf16.msra.mxu1 %v5816_v17 }
0x1de5   : > { %v3899_v22 = vpop.permute.xlu0 %3898 }
0x1de6   : > { %v3901_v25 = vsel %vm593_vm3, %v3891_v51, %v3899_v22 }
0x1de7   : > { %v3904_v27 = vperm.slane %v3901_v25, 0 }
0x1de9   : > { %v3905_v49 = vmul.f32 %v3904_v27, %v3903_v26 }
0x1deb   : > { %v3906_v30 = vmax.f32 %v3905_v49, 0.0 }
0x1ded   : > { %v3908_v31 = vrot.slane %v3906_v30, 7  ;;  %v3910_v46 = vrot.slane %v3906_v30, 6  ;;  %v3916_v32 = vrot.slane %v3906_v30, 3  ;;  %v3918_v34 = vrot.slane %v3906_v30, 2 }
0x1dee   : > { %v3912_v56 = vrot.slane %v3906_v30, 5  ;;  %v3920_v37 = vrot.slane %v3906_v30, 1  ;;  %v3914_v42 = vrot.slane %v3906_v30, 4 }
0x1def   : > { %v3922_v35 = vsel %vm552_vm0, %v3906_v30, %v3908_v31  ;;  %v3935_v36 = vsel %vm552_vm0, %v3908_v31, %v3910_v46  ;;  %v3929_v38 = vsel %vm1276_vm14, %v3916_v32, %v3918_v34 }
0x1df0   : > { %v3923_v21 = vsel %vm1276_vm14, %v3922_v35, %v3910_v46  ;;  %v3938_v40 = vpack.c.bf16 %v3935_v36, %v3935_v36  ;;  %v3930_v41 = vsel %vm1278_vm15, %v3929_v38, %v3918_v34 }
0x1df1   : > { %v3924_v7 = vsel %vm1278_vm15, %v3923_v21, %v3910_v46  ;;  %v3931_v45 = vsel %vm1280_vm4, %v3930_v41, %v3920_v37 }
0x1df2   : > { %v3925_v44 = vsel %vm1280_vm4, %v3924_v7, %v3912_v56  ;;  %v3932_v48 = vsel %vm1282_vm5, %v3931_v45, %v3920_v37  ;;  %v3946_v20 = vunpack.c.l.b16 %v3938_v40 }
0x1df3   : > { %v3926_v47 = vsel %vm1282_vm5, %v3925_v44, %v3912_v56  ;;  %v3933_v52 = vsel %vm1284_vm6, %v3932_v48, %v3906_v30 }
0x1df4   : > { %v3927_v33 = vsel %vm1284_vm6, %v3926_v47, %v3914_v42  ;;  %v3934_v55 = vsel %vm589_vm2, %v3933_v52, %v3906_v30  ;;  %v3947_v60 = vpack.c.b16 %v3946_v20, %v3946_v20 }
0x1df5   : > { %v3928_v54 = vsel %vm589_vm2, %v3927_v33, %v3914_v42  ;;  %v3937_v51 = vpack.c.bf16 %v3934_v55, %v3934_v55 }
0x1df6   : > { %v3936_v57 = vpack.c.bf16 %v3928_v54, %v3928_v54  ;;  %v3962_v63 = vrot.slane %v3947_v60, 1  ;;  %v3956_v43 = vshll.u32 %v3947_v60, 16 }
0x1df7   : > { %v3942_v59 = vunpack.c.l.b16 %v3937_v51 }
0x1df8   : > { %v3941_v58 = vunpack.c.l.b16 %v3936_v57  ;;  %v3958_v4 = vrot.slane %v3956_v43, 1 }
0x1dfa   : > { %v3943_v61 = vpack.c.b16 %v3942_v59, %v3941_v58 }
0x1dfc   : > { %4165 = vmatmul.bf16.vlgmr.msrb.gmra.mxu3 %v3943_v61  ;;  %v3961_v62 = vrot.slane %v3943_v61, 1  ;;  %v3951_v53 = vshll.u32 %v3943_v61, 16  ;;  %v3949_v1 = vshrl.u32 %v3943_v61, 16 }
0x1dfe   : > { %v3963_v0 = vsel %vm589_vm2, %v3961_v62, %v3962_v63  ;;  %v3953_v2 = vrot.slane %v3951_v53, 1 }
0x1dff   : > { %4193 = vmatmul.bf16.vlgmr.msrb.gmra.mxu2 %v3963_v0 }
0x1e00   : > { %v3954_v3 = vor.u32 %v3953_v2, %v3949_v1 }
0x1e02   : > { %v3959_v5 = vsel %vm574_vm1, %v3954_v3, %v3958_v4 }
0x1e03   : > { %4179 = vmatmul.bf16.vlgmr.msrb.gmra.mxu0 %v3959_v5 }
0x1e0c   : > { %5562 = vmatmul.msk.bf16.vlgmr.msra.gmra.mxu3 %vm593_vm3, %v4213_v14 }
0x1e7f   : > { %v4166_v18 = vpop.f32.mrf.mxu3 }
0x1e80   : > { %v4180_v19 = vpop.f32.mrf.mxu0 }
0x1e81   : > { %v4181_v23 = vadd.f32 %v4180_v19, %v4166_v18 }
0x1e82   : > { %v4194_v22 = vpop.f32.mrf.mxu2 }
0x1e83   : > { %v4195_v24 = vadd.f32 %v4194_v22, %v4181_v23 }
0x1e85   : > { %v4199_v28 = vpack.c.bf16 %v4195_v24, %v4195_v24 }
0x1e87   : > { %v4168_v25 = vpop.f32.mrf.mxu3  ;;  %v4205_v31 = vunpack.c.l.b16 %v4199_v28 }
0x1e88   : > { %v4182_v26 = vpop.f32.mrf.mxu0 }
0x1e89   : > { %v4183_v27 = vadd.f32 %v4182_v26, %v4168_v25 }
0x1e8a   : > { %v4196_v49 = vpop.f32.mrf.mxu2 }
0x1e8b   : > { %v4197_v29 = vadd.f32 %v4196_v49, %v4183_v27 }
0x1e8d   : > { %v4200_v30 = vpack.c.bf16 %v4197_v29, %v4197_v29 }
0x1e8f   : > { %v4206_v46 = vunpack.c.l.b16 %v4200_v30  ;;  %v4336_v34 = vpop.f32.mrf.mxu3 }
0x1e91   : > { %v4207_v32 = vpack.c.b16 %v4206_v46, %v4205_v31 }
0x1e93   : > { %4321 = vmatmul.bf16.vlgmr.msra.gmra.mxu1 %v4207_v32 }
0x1e97   : > { %v4338_v36 = vpop.f32.mrf.mxu3 }
0x1f10   : > { %v4322_v56 = vpop.f32.mrf.mxu1 }
0x1f11   : > { %v4337_v35 = vadd.f32 %v4336_v34, %v4322_v56 }
0x1f13   : > { %4341 = vst.msk [vmem:[%s539_s23] sm:$0xff] %vm818_vm9, %v4337_v35 }
0x1f18   : > { %v4324_v37 = vpop.f32.mrf.mxu1 }
0x1f19   : > { %v4339_v21 = vadd.f32 %v4338_v36, %v4324_v37 }
0x1f1b   : > { %4342 = vst.msk [vmem:[%s539_s23 + $0x8] sm:$0xff] %vm818_vm9, %v4339_v21 }
0x1f1c   : > { %6253 = shalt.err (!%p6250_p8)
}
0x1f1d   : > { %s6330_s27 = smov 128   ;;  %s7162_s29 = smov 8  }
0x1f1e   : > { %5861 = dma.vmem_to_hbm [thread:$0]  (%p6434_p5), %s4357_s14, 256, %s4359_s30, %s4344_s15, %s6330_s27, %s6330_s27, %s7162_s29  }
0x1f1f PF: > { %s7163_s26 = sld [smem:[#allocation23_spill]]  ;;  %p5908_p9 = scmp.ge.s32.totalorder %s6308_s24, 2 }
0x1f21   : > { %p5889_p10 = pnand %p5908_p9, %p6438_p6 }
0x1f23   : > { %p5890_p11 = pneg %p5889_p10 }
0x1f25   : > { %s4373_s28 = sand.u32 1, %s7163_s26  }
0x1f26   : > { %s4374_s18 = scalar_lea.sflag [#allocation4], %s4373_s28 }
0x1f27   : > { %6291 = dma.done.wait (%p5890_p11), %s4374_s18, 256  }
0x1f28   : > { %6293 = vsyncadd (%p5890_p11), %s4374_s18, 4294967040  ;;  %s7165_s24 = sld [smem:[#allocation25_spill]]  ;;  %s7168_s21 = smov %s6300_s22 }
0x1f29   : > { %s7166_s19 = sld [smem:[#allocation24_spill]] }
0x1f2a   : > { %s7167_s23 = sld [smem:[#allocation26_spill]] }
0x1f2e   : > { %p27_p12 = scmp.ge.s32.totalorder %s7165_s24, 4  }
0x1f2f   : > { %s7169_s22 = smov %s7166_s19 }
0x1f30   :  { %29 = sbr.rel (!%p27_p12) target bundleno = 11 (0xb), region = 136 }
0x1f35   :  { %4380 = vsyncpa [#allocation3], 1 }
0x1f36   :  { %4382 = vsyncpa [#allocation3 + $0x1], 1 }
0x1f37   :  { %4383 = vsyncpa [#allocation6], 1 }
0x1f38   :  { %4384 = vsyncpa [#allocation9], 1 }
0x1f39   :  { %4385 = vsyncpa [#allocation12], 1 }
0x1f3a   :  { %4386 = vsyncpa [#allocation15], 1 }
0x1f3b   :  { %4387 = vsyncpa [#allocation4], 1 }
0x1f3c   :  { %4389 = vsyncpa [#allocation4 + $0x1], 1 }

</bundles_post_ra>
